<compile_context>
chip_gen: v7x
topology: tpu7x:2x2x1
jax: 0.10.0
libtpu: 0.0.40
codegen_flags: <defaults>
</compile_context>

<pallas_src>
import numpy as np
import jax
import jax.numpy as jnp
from jax.experimental import pallas as pl
from jax.experimental.pallas import tpu as pltpu

KTAPS = 5
PAD = 2


def make_pass_kernel(L, T, CH, CX, compute_dtype):
    """One directional GRU pass on an (L, T, .) block.

    L: the convolved (sliding) spatial axis -- leading, so tap/halo slices are
       free address offsets.
    T: the banded (non-convolved) spatial axis (multiple of 8 or full extent).
    """
    M = L * T

    def kernel(h_ref, x_ref, w1x_ref, wzrh_ref, wqh_ref, b_ref,
               out_ref, ph, px):
        # Zero only the 2-wide "same"-padding halos (leading-axis slices);
        # interiors are fully rewritten every grid step, so this stays correct
        # under a fully "parallel" grid.
        ph[:PAD, :, :] = jnp.zeros((PAD, T, CH), compute_dtype)
        ph[PAD + L:, :, :] = jnp.zeros((PAD, T, CH), compute_dtype)
        px[:PAD, :, :] = jnp.zeros((PAD, T, CX), compute_dtype)
        px[PAD + L:, :, :] = jnp.zeros((PAD, T, CX), compute_dtype)

        h = h_ref[...]                                     # (L, T, CH) f32
        ph[PAD:PAD + L, :, :] = h.astype(compute_dtype)
        px[PAD:PAD + L, :, :] = x_ref[...]                 # already compute_dtype
        hf = h.reshape(M, CH)                              # f32 recurrent state

        # ---- stage 1: per-tap accumulation, gates fused along the N dim ----
        #   acc_x: x-channel taps -> [z | r | q_x]   (N = 3*CH)
        #   acc_h: h-channel taps -> [z | r]         (N = 2*CH)
        acc_x = jnp.broadcast_to(b_ref[...], (M, 3 * CH))  # f32 bias init
        acc_h = jnp.zeros((M, 2 * CH), jnp.float32)
        for k in range(KTAPS):
            acc_x = acc_x + jnp.dot(px[k:k + L, :, :].reshape(M, CX),
                                    w1x_ref[k],
                                    preferred_element_type=jnp.float32)
            acc_h = acc_h + jnp.dot(ph[k:k + L, :, :].reshape(M, CH),
                                    wzrh_ref[k],
                                    preferred_element_type=jnp.float32)
        z = jax.nn.sigmoid(acc_x[:, :CH] + acc_h[:, :CH])
        r = jax.nn.sigmoid(acc_x[:, CH:2 * CH] + acc_h[:, CH:])

        # ---- stage 2: q gate only sees the r*h channels (K = 5*CH) ----
        ph[PAD:PAD + L, :, :] = (r * hf).reshape(L, T, CH).astype(compute_dtype)
        q_pre = acc_x[:, 2 * CH:]                          # bq + Wq_x taps
        for k in range(KTAPS):
            q_pre = q_pre + jnp.dot(ph[k:k + L, :, :].reshape(M, CH),
                                    wqh_ref[k],
                                    preferred_element_type=jnp.float32)
        q = jnp.tanh(q_pre)

        hf = (1.0 - z) * hf + z * q                        # f32 GRU blend
        out_ref[...] = hf.reshape(L, T, CH)

    return kernel


def _gru_pass(h, x, weights, band, compute_dtype):
    """Run one directional pass.  h, x: (B, L, S, C*); the conv slides along
    axis 1 (L) and the grid bands along axis 2 (S)."""
    B, L, S, CH = h.shape
    CX = x.shape[-1]
    w1x, wzrh, wqh, b_all = weights
    T = band
    assert S % T == 0, (S, T)
    kernel = make_pass_kernel(L, T, CH, CX, compute_dtype)

    def act_spec(c):
        return pl.BlockSpec((None, L, T, c), lambda b, i: (b, 0, i, 0))

    def const_spec(shape):
        return pl.BlockSpec(shape, lambda b, i: (0,) * len(shape))

    grid_spec = pltpu.PrefetchScalarGridSpec(
        num_scalar_prefetch=0,
        grid=(B, S // T),
        in_specs=[
            act_spec(CH),                          # hidden state (f32)
            act_spec(CX),                          # x (compute_dtype)
            const_spec((KTAPS, CX, 3 * CH)),       # [Wz_x | Wr_x | Wq_x]
            const_spec((KTAPS, CH, 2 * CH)),       # [Wz_h | Wr_h]
            const_spec((KTAPS, CH, CH)),           # Wq_h
            const_spec((1, 3 * CH)),               # [bz | br | bq] (f32)
        ],
        out_specs=act_spec(CH),
        scratch_shapes=[
            pltpu.VMEM((L + 2 * PAD, T, CH), compute_dtype),   # padded h / r*h
            pltpu.VMEM((L + 2 * PAD, T, CX), compute_dtype),   # padded x
        ],
    )
    return pl.pallas_call(
        kernel,
        out_shape=jax.ShapeDtypeStruct((B, L, S, CH), jnp.float32),
        grid_spec=grid_spec,
        compiler_params=pltpu.CompilerParams(
            dimension_semantics=("parallel", "parallel"),
            # Explicit scoped-VMEM budget: well above the 16/32 MiB defaults
            # (v5e / v6e+), conservative for v7x's 64 MiB physical VMEM.
            vmem_limit_bytes=48 * 1024 * 1024),
    )(h, x, w1x, wzrh, wqh, b_all)


def _pack_pass(params, kz, kr, kq, CH, compute_dtype):
    """Split / fuse the (5, CH+CX, CH) conv weights for one pass."""
    wz, bz = params[kz]
    wr, br = params[kr]
    wq, bq = params[kq]
    # x-channel rows (CH:) of z, r, q fused along the output dim -> (5, CX, 3CH)
    w1x = jnp.concatenate([wz[:, CH:, :], wr[:, CH:, :], wq[:, CH:, :]], axis=-1)
    # h-channel rows (:CH) of z, r fused along the output dim -> (5, CH, 2CH)
    wzrh = jnp.concatenate([wz[:, :CH, :], wr[:, :CH, :]], axis=-1)
    # h-channel rows of q, used against r*h in stage 2 -> (5, CH, CH)
    wqh = wq[:, :CH, :]
    b_all = jnp.concatenate([bz, br, bq]).reshape(1, 3 * CH)
    return (w1x.astype(compute_dtype), wzrh.astype(compute_dtype),
            wqh.astype(compute_dtype), b_all.astype(jnp.float32))


def _pick_band(n, max_band=128):
    """Largest multiple-of-8 divisor of n that is <= max_band, else n."""
    cands = [b for b in range(8, min(n, max_band) + 1, 8) if n % b == 0]
    return cands[-1] if cands else n


def sepconv_gru_pallas(h, x, params, compute_dtype=jnp.bfloat16,
                       band_h=None, band_w=None):
    """Dense SepConvGRU / DeltaSepConvGRU(thresh=0) forward, NHWC layout.

    h: (B, H, W, CH) float32, x: (B, H, W, CX).  Returns (B, H, W, CH) f32.
    """
    B, H, W, CH = h.shape
    band_h = _pick_band(H) if band_h is None else band_h
    band_w = _pick_band(W) if band_w is None else band_w

    pack1 = _pack_pass(params, "z1", "r1", "q1", CH, compute_dtype)
    pack2 = _pack_pass(params, "z2", "r2", "q2", CH, compute_dtype)

    # x only ever feeds MXU operands -> hand it to the kernels pre-cast.
    x_c = x.astype(compute_dtype)

    # Pass 1: (1,5) conv slides along W -> run on W-leading (transposed) data
    # so all tap / halo slices hit the untiled leading axis.  Host transposes
    # are cheap XLA layout plumbing.
    h_t = jnp.transpose(h, (0, 2, 1, 3))            # (B, W, H, CH)
    x_t = jnp.transpose(x_c, (0, 2, 1, 3))          # (B, W, H, CX)
    h1_t = _gru_pass(h_t, x_t, pack1, band_h, compute_dtype)
    h1 = jnp.transpose(h1_t, (0, 2, 1, 3))          # back to (B, H, W, CH)

    # Pass 2: (5,1) conv slides along H -> natural layout, bands along W.
    return _gru_pass(h1, x_c, pack2, band_w, compute_dtype)


# ---------------- pure-JAX reference (for correctness check) ----------------
def _ref_conv(inp, w, b, axis):
    padcfg = [(0, 0)] * 4
    padcfg[axis] = (PAD, PAD)
    p = jnp.pad(inp, padcfg)
    L = inp.shape[axis]
    out = 0.0
    for k in range(KTAPS):
        sl = [slice(None)] * 4
        sl[axis] = slice(k, k + L)
        out = out + jnp.einsum('bhwc,cd->bhwd', p[tuple(sl)], w[k],
                               precision=jax.lax.Precision.HIGHEST)
    return out + b


def sepconv_gru_ref(h, x, params):
    def step(h, axis, kz, kr, kq):
        hx = jnp.concatenate([h, x], axis=-1)
        z = jax.nn.sigmoid(_ref_conv(hx, *params[kz], axis))
        r = jax.nn.sigmoid(_ref_conv(hx, *params[kr], axis))
        rhx = jnp.concatenate([r * h, x], axis=-1)
        q = jnp.tanh(_ref_conv(rhx, *params[kq], axis))
        return (1.0 - z) * h + z * q

    h = step(h, 2, "z1", "r1", "q1")   # (1,5): slide along W
    h = step(h, 1, "z2", "r2", "q2")   # (5,1): slide along H
    return h


if __name__ == "__main__":
    # Small shapes consistent with the module (hidden_dim, input_dim scaled down).
    B, H, W = 2, 16, 16
    CH, CX = 32, 32          # hidden_dim=32, input_dim=32
    CIN = CH + CX

    key = jax.random.PRNGKey(0)
    keys = jax.random.split(key, 14)
    h0 = jax.random.normal(keys[0], (B, H, W, CH), jnp.float32)
    x0 = jax.random.normal(keys[1], (B, H, W, CX), jnp.float32)

    params = {}
    for i, name in enumerate(("z1", "r1", "q1", "z2", "r2", "q2")):
        kw, kb = keys[2 + 2 * i], keys[3 + 2 * i]
        w = 0.05 * jax.random.normal(kw, (KTAPS, CIN, CH), jnp.float32)
        b = 0.05 * jax.random.normal(kb, (CH,), jnp.float32)
        params[name] = (w, b)

    ref = sepconv_gru_ref(h0, x0, params)

    # f32 MXU path with explicit 8-row/col bands: tight check of the per-tap
    # accumulation, split Wq_x/Wq_h gate fusion and the banded grid.
    out_f32 = jax.block_until_ready(
        sepconv_gru_pallas(h0, x0, params, compute_dtype=jnp.float32,
                           band_h=8, band_w=8))
    np.testing.assert_allclose(np.asarray(out_f32), np.asarray(ref),
                               rtol=5e-3, atol=5e-3)

    # bf16 MXU-operand fast path (default dtype, auto band size); f32
    # accumulate / gates / blend, looser tolerance for bf16 operand rounding.
    out_bf16 = jax.block_until_ready(sepconv_gru_pallas(h0, x0, params))
    np.testing.assert_allclose(np.asarray(out_bf16), np.asarray(ref),
                               rtol=5e-2, atol=5e-2)

    print("KERNEL_OK")
</pallas_src>

<mosaic_0001>
module attributes {stable_mosaic.version = 11 : i64} {
  func.func @kernel(%arg0: i32, %arg1: i32, %arg2: memref<1x16x8x32xf32, #tpu.memory_space<vmem>>, %arg3: memref<1x16x8x32xf32, #tpu.memory_space<vmem>>, %arg4: memref<5x32x96xf32, #tpu.memory_space<vmem>>, %arg5: memref<5x32x64xf32, #tpu.memory_space<vmem>>, %arg6: memref<5x32x32xf32, #tpu.memory_space<vmem>>, %arg7: memref<1x96xf32, #tpu.memory_space<vmem>>, %arg8: memref<1x16x8x32xf32, #tpu.memory_space<vmem>>, %arg9: memref<20x8x32xf32, #tpu.memory_space<vmem>>, %arg10: memref<20x8x32xf32, #tpu.memory_space<vmem>>) attributes {dimension_semantics = [#tpu.dimension_semantics<parallel>, #tpu.dimension_semantics<parallel>], iteration_bounds = array<i64: 2, 2>, scalar_prefetch = 0 : i64, scratch_operands = 2 : i64, tpu.core_type = #tpu.core_type<tc>, window_params = [{transform_indices = @transform_0, window_bounds = array<i64: 1, 16, 8, 32>}, {transform_indices = @transform_1, window_bounds = array<i64: 1, 16, 8, 32>}, {pipeline_mode = #tpu.pipeline_mode<synchronous>, transform_indices = @transform_2, window_bounds = array<i64: 5, 32, 96>}, {pipeline_mode = #tpu.pipeline_mode<synchronous>, transform_indices = @transform_3, window_bounds = array<i64: 5, 32, 64>}, {pipeline_mode = #tpu.pipeline_mode<synchronous>, transform_indices = @transform_4, window_bounds = array<i64: 5, 32, 32>}, {pipeline_mode = #tpu.pipeline_mode<synchronous>, transform_indices = @transform_5, window_bounds = array<i64: 1, 96>}, {transform_indices = @transform_6, window_bounds = array<i64: 1, 16, 8, 32>}]} {
    %cst = arith.constant 0.000000e+00 : f32
    %0 = vector.broadcast %cst : f32 to vector<2x8x32xf32>
    %c0 = arith.constant 0 : index
    %c0_0 = arith.constant 0 : index
    %c0_1 = arith.constant 0 : index
    %1 = vector.load %arg9[%c0, %c0_0, %c0_1] : memref<20x8x32xf32, #tpu.memory_space<vmem>>, vector<2x8x32xf32>
    tpu.vector_store %arg9[%c0, %c0_0, %c0_1], %0 {strides = array<i32>} : memref<20x8x32xf32, #tpu.memory_space<vmem>>, vector<2x8x32xf32>,
    %cst_2 = arith.constant 0.000000e+00 : f32
    %2 = vector.broadcast %cst_2 : f32 to vector<2x8x32xf32>
    %c18 = arith.constant 18 : index
    %c0_3 = arith.constant 0 : index
    %c0_4 = arith.constant 0 : index
    %3 = vector.load %arg9[%c18, %c0_3, %c0_4] : memref<20x8x32xf32, #tpu.memory_space<vmem>>, vector<2x8x32xf32>
    tpu.vector_store %arg9[%c18, %c0_3, %c0_4], %2 {strides = array<i32>} : memref<20x8x32xf32, #tpu.memory_space<vmem>>, vector<2x8x32xf32>,
    %cst_5 = arith.constant 0.000000e+00 : f32
    %4 = vector.broadcast %cst_5 : f32 to vector<2x8x32xf32>
    %c0_6 = arith.constant 0 : index
    %c0_7 = arith.constant 0 : index
    %c0_8 = arith.constant 0 : index
    %5 = vector.load %arg10[%c0_6, %c0_7, %c0_8] : memref<20x8x32xf32, #tpu.memory_space<vmem>>, vector<2x8x32xf32>
    tpu.vector_store %arg10[%c0_6, %c0_7, %c0_8], %4 {strides = array<i32>} : memref<20x8x32xf32, #tpu.memory_space<vmem>>, vector<2x8x32xf32>,
    %cst_9 = arith.constant 0.000000e+00 : f32
    %6 = vector.broadcast %cst_9 : f32 to vector<2x8x32xf32>
    %c18_10 = arith.constant 18 : index
    %c0_11 = arith.constant 0 : index
    %c0_12 = arith.constant 0 : index
    %7 = vector.load %arg10[%c18_10, %c0_11, %c0_12] : memref<20x8x32xf32, #tpu.memory_space<vmem>>, vector<2x8x32xf32>
    tpu.vector_store %arg10[%c18_10, %c0_11, %c0_12], %6 {strides = array<i32>} : memref<20x8x32xf32, #tpu.memory_space<vmem>>, vector<2x8x32xf32>,
    %c0_13 = arith.constant 0 : index
    %c0_14 = arith.constant 0 : index
    %c0_15 = arith.constant 0 : index
    %c0_16 = arith.constant 0 : index
    %8 = vector.load %arg2[%c0_13, %c0_14, %c0_15, %c0_16] : memref<1x16x8x32xf32, #tpu.memory_space<vmem>>, vector<1x16x8x32xf32>
    %9 = vector.shape_cast %8 : vector<1x16x8x32xf32> to vector<16x8x32xf32>
    %c2 = arith.constant 2 : index
    %c0_17 = arith.constant 0 : index
    %c0_18 = arith.constant 0 : index
    %10 = vector.load %arg9[%c2, %c0_17, %c0_18] : memref<20x8x32xf32, #tpu.memory_space<vmem>>, vector<16x8x32xf32>
    tpu.vector_store %arg9[%c2, %c0_17, %c0_18], %9 {strides = array<i32>} : memref<20x8x32xf32, #tpu.memory_space<vmem>>, vector<16x8x32xf32>,
    %c0_19 = arith.constant 0 : index
    %c0_20 = arith.constant 0 : index
    %c0_21 = arith.constant 0 : index
    %c0_22 = arith.constant 0 : index
    %11 = vector.load %arg3[%c0_19, %c0_20, %c0_21, %c0_22] : memref<1x16x8x32xf32, #tpu.memory_space<vmem>>, vector<1x16x8x32xf32>
    %12 = vector.shape_cast %11 : vector<1x16x8x32xf32> to vector<16x8x32xf32>
    %c2_23 = arith.constant 2 : index
    %c0_24 = arith.constant 0 : index
    %c0_25 = arith.constant 0 : index
    %13 = vector.load %arg10[%c2_23, %c0_24, %c0_25] : memref<20x8x32xf32, #tpu.memory_space<vmem>>, vector<16x8x32xf32>
    tpu.vector_store %arg10[%c2_23, %c0_24, %c0_25], %12 {strides = array<i32>} : memref<20x8x32xf32, #tpu.memory_space<vmem>>, vector<16x8x32xf32>,
    %14 = vector.shape_cast %9 : vector<16x8x32xf32> to vector<128x32xf32>
    %c0_26 = arith.constant 0 : index
    %c0_27 = arith.constant 0 : index
    %15 = vector.load %arg7[%c0_26, %c0_27] : memref<1x96xf32, #tpu.memory_space<vmem>>, vector<1x96xf32>
    %16 = vector.shape_cast %15 : vector<1x96xf32> to vector<1x96xf32>
    %17 = vector.broadcast %16 : vector<1x96xf32> to vector<128x96xf32>
    %cst_28 = arith.constant 0.000000e+00 : f32
    %18 = vector.broadcast %cst_28 : f32 to vector<128x64xf32>
    %c0_29 = arith.constant 0 : index
    %c0_30 = arith.constant 0 : index
    %c0_31 = arith.constant 0 : index
    %19 = vector.load %arg10[%c0_29, %c0_30, %c0_31] : memref<20x8x32xf32, #tpu.memory_space<vmem>>, vector<16x8x32xf32>
    %20 = vector.shape_cast %19 : vector<16x8x32xf32> to vector<128x32xf32>
    %c0_32 = arith.constant 0 : index
    %c0_33 = arith.constant 0 : index
    %c0_34 = arith.constant 0 : index
    %21 = vector.load %arg4[%c0_32, %c0_33, %c0_34] : memref<5x32x96xf32, #tpu.memory_space<vmem>>, vector<1x32x96xf32>
    %22 = vector.shape_cast %21 : vector<1x32x96xf32> to vector<32x96xf32>
    %cst_35 = arith.constant dense<0.000000e+00> : vector<128x96xf32>
    %23 = tpu.matmul %20, %22, %cst_35 {dimension_numbers = #tpu.dot_dimension_numbers<[1], [0], [0], [1], [0, 0, 1, 1], [], []>} : vector<128x32xf32>, vector<32x96xf32>, vector<128x96xf32> -> vector<128x96xf32>
    %24 = arith.addf %17, %23 : vector<128x96xf32>
    %c0_36 = arith.constant 0 : index
    %c0_37 = arith.constant 0 : index
    %c0_38 = arith.constant 0 : index
    %25 = vector.load %arg9[%c0_36, %c0_37, %c0_38] : memref<20x8x32xf32, #tpu.memory_space<vmem>>, vector<16x8x32xf32>
    %26 = vector.shape_cast %25 : vector<16x8x32xf32> to vector<128x32xf32>
    %c0_39 = arith.constant 0 : index
    %c0_40 = arith.constant 0 : index
    %c0_41 = arith.constant 0 : index
    %27 = vector.load %arg5[%c0_39, %c0_40, %c0_41] : memref<5x32x64xf32, #tpu.memory_space<vmem>>, vector<1x32x64xf32>
    %28 = vector.shape_cast %27 : vector<1x32x64xf32> to vector<32x64xf32>
    %cst_42 = arith.constant dense<0.000000e+00> : vector<128x64xf32>
    %29 = tpu.matmul %26, %28, %cst_42 {dimension_numbers = #tpu.dot_dimension_numbers<[1], [0], [0], [1], [0, 0, 1, 1], [], []>} : vector<128x32xf32>, vector<32x64xf32>, vector<128x64xf32> -> vector<128x64xf32>
    %30 = arith.addf %18, %29 : vector<128x64xf32>
    %c1 = arith.constant 1 : index
    %c0_43 = arith.constant 0 : index
    %c0_44 = arith.constant 0 : index
    %31 = vector.load %arg10[%c1, %c0_43, %c0_44] : memref<20x8x32xf32, #tpu.memory_space<vmem>>, vector<16x8x32xf32>
    %32 = vector.shape_cast %31 : vector<16x8x32xf32> to vector<128x32xf32>
    %c1_45 = arith.constant 1 : index
    %c0_46 = arith.constant 0 : index
    %c0_47 = arith.constant 0 : index
    %33 = vector.load %arg4[%c1_45, %c0_46, %c0_47] : memref<5x32x96xf32, #tpu.memory_space<vmem>>, vector<1x32x96xf32>
    %34 = vector.shape_cast %33 : vector<1x32x96xf32> to vector<32x96xf32>
    %cst_48 = arith.constant dense<0.000000e+00> : vector<128x96xf32>
    %35 = tpu.matmul %32, %34, %cst_48 {dimension_numbers = #tpu.dot_dimension_numbers<[1], [0], [0], [1], [0, 0, 1, 1], [], []>} : vector<128x32xf32>, vector<32x96xf32>, vector<128x96xf32> -> vector<128x96xf32>
    %36 = arith.addf %24, %35 : vector<128x96xf32>
    %c1_49 = arith.constant 1 : index
    %c0_50 = arith.constant 0 : index
    %c0_51 = arith.constant 0 : index
    %37 = vector.load %arg9[%c1_49, %c0_50, %c0_51] : memref<20x8x32xf32, #tpu.memory_space<vmem>>, vector<16x8x32xf32>
    %38 = vector.shape_cast %37 : vector<16x8x32xf32> to vector<128x32xf32>
    %c1_52 = arith.constant 1 : index
    %c0_53 = arith.constant 0 : index
    %c0_54 = arith.constant 0 : index
    %39 = vector.load %arg5[%c1_52, %c0_53, %c0_54] : memref<5x32x64xf32, #tpu.memory_space<vmem>>, vector<1x32x64xf32>
    %40 = vector.shape_cast %39 : vector<1x32x64xf32> to vector<32x64xf32>
    %cst_55 = arith.constant dense<0.000000e+00> : vector<128x64xf32>
    %41 = tpu.matmul %38, %40, %cst_55 {dimension_numbers = #tpu.dot_dimension_numbers<[1], [0], [0], [1], [0, 0, 1, 1], [], []>} : vector<128x32xf32>, vector<32x64xf32>, vector<128x64xf32> -> vector<128x64xf32>
    %42 = arith.addf %30, %41 : vector<128x64xf32>
    %c2_56 = arith.constant 2 : index
    %c0_57 = arith.constant 0 : index
    %c0_58 = arith.constant 0 : index
    %43 = vector.load %arg10[%c2_56, %c0_57, %c0_58] : memref<20x8x32xf32, #tpu.memory_space<vmem>>, vector<16x8x32xf32>
    %44 = vector.shape_cast %43 : vector<16x8x32xf32> to vector<128x32xf32>
    %c2_59 = arith.constant 2 : index
    %c0_60 = arith.constant 0 : index
    %c0_61 = arith.constant 0 : index
    %45 = vector.load %arg4[%c2_59, %c0_60, %c0_61] : memref<5x32x96xf32, #tpu.memory_space<vmem>>, vector<1x32x96xf32>
    %46 = vector.shape_cast %45 : vector<1x32x96xf32> to vector<32x96xf32>
    %cst_62 = arith.constant dense<0.000000e+00> : vector<128x96xf32>
    %47 = tpu.matmul %44, %46, %cst_62 {dimension_numbers = #tpu.dot_dimension_numbers<[1], [0], [0], [1], [0, 0, 1, 1], [], []>} : vector<128x32xf32>, vector<32x96xf32>, vector<128x96xf32> -> vector<128x96xf32>
    %48 = arith.addf %36, %47 : vector<128x96xf32>
    %c2_63 = arith.constant 2 : index
    %c0_64 = arith.constant 0 : index
    %c0_65 = arith.constant 0 : index
    %49 = vector.load %arg9[%c2_63, %c0_64, %c0_65] : memref<20x8x32xf32, #tpu.memory_space<vmem>>, vector<16x8x32xf32>
    %50 = vector.shape_cast %49 : vector<16x8x32xf32> to vector<128x32xf32>
    %c2_66 = arith.constant 2 : index
    %c0_67 = arith.constant 0 : index
    %c0_68 = arith.constant 0 : index
    %51 = vector.load %arg5[%c2_66, %c0_67, %c0_68] : memref<5x32x64xf32, #tpu.memory_space<vmem>>, vector<1x32x64xf32>
    %52 = vector.shape_cast %51 : vector<1x32x64xf32> to vector<32x64xf32>
    %cst_69 = arith.constant dense<0.000000e+00> : vector<128x64xf32>
    %53 = tpu.matmul %50, %52, %cst_69 {dimension_numbers = #tpu.dot_dimension_numbers<[1], [0], [0], [1], [0, 0, 1, 1], [], []>} : vector<128x32xf32>, vector<32x64xf32>, vector<128x64xf32> -> vector<128x64xf32>
    %54 = arith.addf %42, %53 : vector<128x64xf32>
    %c3 = arith.constant 3 : index
    %c0_70 = arith.constant 0 : index
    %c0_71 = arith.constant 0 : index
    %55 = vector.load %arg10[%c3, %c0_70, %c0_71] : memref<20x8x32xf32, #tpu.memory_space<vmem>>, vector<16x8x32xf32>
    %56 = vector.shape_cast %55 : vector<16x8x32xf32> to vector<128x32xf32>
    %c3_72 = arith.constant 3 : index
    %c0_73 = arith.constant 0 : index
    %c0_74 = arith.constant 0 : index
    %57 = vector.load %arg4[%c3_72, %c0_73, %c0_74] : memref<5x32x96xf32, #tpu.memory_space<vmem>>, vector<1x32x96xf32>
    %58 = vector.shape_cast %57 : vector<1x32x96xf32> to vector<32x96xf32>
    %cst_75 = arith.constant dense<0.000000e+00> : vector<128x96xf32>
    %59 = tpu.matmul %56, %58, %cst_75 {dimension_numbers = #tpu.dot_dimension_numbers<[1], [0], [0], [1], [0, 0, 1, 1], [], []>} : vector<128x32xf32>, vector<32x96xf32>, vector<128x96xf32> -> vector<128x96xf32>
    %60 = arith.addf %48, %59 : vector<128x96xf32>
    %c3_76 = arith.constant 3 : index
    %c0_77 = arith.constant 0 : index
    %c0_78 = arith.constant 0 : index
    %61 = vector.load %arg9[%c3_76, %c0_77, %c0_78] : memref<20x8x32xf32, #tpu.memory_space<vmem>>, vector<16x8x32xf32>
    %62 = vector.shape_cast %61 : vector<16x8x32xf32> to vector<128x32xf32>
    %c3_79 = arith.constant 3 : index
    %c0_80 = arith.constant 0 : index
    %c0_81 = arith.constant 0 : index
    %63 = vector.load %arg5[%c3_79, %c0_80, %c0_81] : memref<5x32x64xf32, #tpu.memory_space<vmem>>, vector<1x32x64xf32>
    %64 = vector.shape_cast %63 : vector<1x32x64xf32> to vector<32x64xf32>
    %cst_82 = arith.constant dense<0.000000e+00> : vector<128x64xf32>
    %65 = tpu.matmul %62, %64, %cst_82 {dimension_numbers = #tpu.dot_dimension_numbers<[1], [0], [0], [1], [0, 0, 1, 1], [], []>} : vector<128x32xf32>, vector<32x64xf32>, vector<128x64xf32> -> vector<128x64xf32>
    %66 = arith.addf %54, %65 : vector<128x64xf32>
    %c4 = arith.constant 4 : index
    %c0_83 = arith.constant 0 : index
    %c0_84 = arith.constant 0 : index
    %67 = vector.load %arg10[%c4, %c0_83, %c0_84] : memref<20x8x32xf32, #tpu.memory_space<vmem>>, vector<16x8x32xf32>
    %68 = vector.shape_cast %67 : vector<16x8x32xf32> to vector<128x32xf32>
    %c4_85 = arith.constant 4 : index
    %c0_86 = arith.constant 0 : index
    %c0_87 = arith.constant 0 : index
    %69 = vector.load %arg4[%c4_85, %c0_86, %c0_87] : memref<5x32x96xf32, #tpu.memory_space<vmem>>, vector<1x32x96xf32>
    %70 = vector.shape_cast %69 : vector<1x32x96xf32> to vector<32x96xf32>
    %cst_88 = arith.constant dense<0.000000e+00> : vector<128x96xf32>
    %71 = tpu.matmul %68, %70, %cst_88 {dimension_numbers = #tpu.dot_dimension_numbers<[1], [0], [0], [1], [0, 0, 1, 1], [], []>} : vector<128x32xf32>, vector<32x96xf32>, vector<128x96xf32> -> vector<128x96xf32>
    %72 = arith.addf %60, %71 : vector<128x96xf32>
    %c4_89 = arith.constant 4 : index
    %c0_90 = arith.constant 0 : index
    %c0_91 = arith.constant 0 : index
    %73 = vector.load %arg9[%c4_89, %c0_90, %c0_91] : memref<20x8x32xf32, #tpu.memory_space<vmem>>, vector<16x8x32xf32>
    %74 = vector.shape_cast %73 : vector<16x8x32xf32> to vector<128x32xf32>
    %c4_92 = arith.constant 4 : index
    %c0_93 = arith.constant 0 : index
    %c0_94 = arith.constant 0 : index
    %75 = vector.load %arg5[%c4_92, %c0_93, %c0_94] : memref<5x32x64xf32, #tpu.memory_space<vmem>>, vector<1x32x64xf32>
    %76 = vector.shape_cast %75 : vector<1x32x64xf32> to vector<32x64xf32>
    %cst_95 = arith.constant dense<0.000000e+00> : vector<128x64xf32>
    %77 = tpu.matmul %74, %76, %cst_95 {dimension_numbers = #tpu.dot_dimension_numbers<[1], [0], [0], [1], [0, 0, 1, 1], [], []>} : vector<128x32xf32>, vector<32x64xf32>, vector<128x64xf32> -> vector<128x64xf32>
    %78 = arith.addf %66, %77 : vector<128x64xf32>
    %79 = vector.extract_strided_slice %72 {offsets = [0, 0], sizes = [128, 32], strides = [1, 1]} : vector<128x96xf32> to vector<128x32xf32>
    %80 = vector.extract_strided_slice %78 {offsets = [0, 0], sizes = [128, 32], strides = [1, 1]} : vector<128x64xf32> to vector<128x32xf32>
    %81 = arith.addf %79, %80 : vector<128x32xf32>
    %82 = arith.negf %81 : vector<128x32xf32>
    %83 = math.exp %82 : vector<128x32xf32>
    %cst_96 = arith.constant 1.000000e+00 : f32
    %84 = vector.broadcast %cst_96 : f32 to vector<128x32xf32>
    %85 = arith.addf %84, %83 : vector<128x32xf32>
    %86 = arith.divf %84, %85 : vector<128x32xf32>
    %87 = vector.extract_strided_slice %72 {offsets = [0, 32], sizes = [128, 32], strides = [1, 1]} : vector<128x96xf32> to vector<128x32xf32>
    %88 = vector.extract_strided_slice %78 {offsets = [0, 32], sizes = [128, 32], strides = [1, 1]} : vector<128x64xf32> to vector<128x32xf32>
    %89 = arith.addf %87, %88 : vector<128x32xf32>
    %90 = arith.negf %89 : vector<128x32xf32>
    %91 = math.exp %90 : vector<128x32xf32>
    %cst_97 = arith.constant 1.000000e+00 : f32
    %92 = vector.broadcast %cst_97 : f32 to vector<128x32xf32>
    %93 = arith.addf %92, %91 : vector<128x32xf32>
    %94 = arith.divf %92, %93 : vector<128x32xf32>
    %95 = arith.mulf %94, %14 : vector<128x32xf32>
    %96 = vector.shape_cast %95 : vector<128x32xf32> to vector<16x8x32xf32>
    %c2_98 = arith.constant 2 : index
    %c0_99 = arith.constant 0 : index
    %c0_100 = arith.constant 0 : index
    %97 = vector.load %arg9[%c2_98, %c0_99, %c0_100] : memref<20x8x32xf32, #tpu.memory_space<vmem>>, vector<16x8x32xf32>
    tpu.vector_store %arg9[%c2_98, %c0_99, %c0_100], %96 {strides = array<i32>} : memref<20x8x32xf32, #tpu.memory_space<vmem>>, vector<16x8x32xf32>,
    %98 = vector.extract_strided_slice %72 {offsets = [0, 64], sizes = [128, 32], strides = [1, 1]} : vector<128x96xf32> to vector<128x32xf32>
    %c0_101 = arith.constant 0 : index
    %c0_102 = arith.constant 0 : index
    %c0_103 = arith.constant 0 : index
    %99 = vector.load %arg9[%c0_101, %c0_102, %c0_103] : memref<20x8x32xf32, #tpu.memory_space<vmem>>, vector<16x8x32xf32>
    %100 = vector.shape_cast %99 : vector<16x8x32xf32> to vector<128x32xf32>
    %c0_104 = arith.constant 0 : index
    %c0_105 = arith.constant 0 : index
    %c0_106 = arith.constant 0 : index
    %101 = vector.load %arg6[%c0_104, %c0_105, %c0_106] : memref<5x32x32xf32, #tpu.memory_space<vmem>>, vector<1x32x32xf32>
    %102 = vector.shape_cast %101 : vector<1x32x32xf32> to vector<32x32xf32>
    %cst_107 = arith.constant dense<0.000000e+00> : vector<128x32xf32>
    %103 = tpu.matmul %100, %102, %cst_107 {dimension_numbers = #tpu.dot_dimension_numbers<[1], [0], [0], [1], [0, 0, 1, 1], [], []>} : vector<128x32xf32>, vector<32x32xf32>, vector<128x32xf32> -> vector<128x32xf32>
    %104 = arith.addf %98, %103 : vector<128x32xf32>
    %c1_108 = arith.constant 1 : index
    %c0_109 = arith.constant 0 : index
    %c0_110 = arith.constant 0 : index
    %105 = vector.load %arg9[%c1_108, %c0_109, %c0_110] : memref<20x8x32xf32, #tpu.memory_space<vmem>>, vector<16x8x32xf32>
    %106 = vector.shape_cast %105 : vector<16x8x32xf32> to vector<128x32xf32>
    %c1_111 = arith.constant 1 : index
    %c0_112 = arith.constant 0 : index
    %c0_113 = arith.constant 0 : index
    %107 = vector.load %arg6[%c1_111, %c0_112, %c0_113] : memref<5x32x32xf32, #tpu.memory_space<vmem>>, vector<1x32x32xf32>
    %108 = vector.shape_cast %107 : vector<1x32x32xf32> to vector<32x32xf32>
    %cst_114 = arith.constant dense<0.000000e+00> : vector<128x32xf32>
    %109 = tpu.matmul %106, %108, %cst_114 {dimension_numbers = #tpu.dot_dimension_numbers<[1], [0], [0], [1], [0, 0, 1, 1], [], []>} : vector<128x32xf32>, vector<32x32xf32>, vector<128x32xf32> -> vector<128x32xf32>
    %110 = arith.addf %104, %109 : vector<128x32xf32>
    %c2_115 = arith.constant 2 : index
    %c0_116 = arith.constant 0 : index
    %c0_117 = arith.constant 0 : index
    %111 = vector.load %arg9[%c2_115, %c0_116, %c0_117] : memref<20x8x32xf32, #tpu.memory_space<vmem>>, vector<16x8x32xf32>
    %112 = vector.shape_cast %111 : vector<16x8x32xf32> to vector<128x32xf32>
    %c2_118 = arith.constant 2 : index
    %c0_119 = arith.constant 0 : index
    %c0_120 = arith.constant 0 : index
    %113 = vector.load %arg6[%c2_118, %c0_119, %c0_120] : memref<5x32x32xf32, #tpu.memory_space<vmem>>, vector<1x32x32xf32>
    %114 = vector.shape_cast %113 : vector<1x32x32xf32> to vector<32x32xf32>
    %cst_121 = arith.constant dense<0.000000e+00> : vector<128x32xf32>
    %115 = tpu.matmul %112, %114, %cst_121 {dimension_numbers = #tpu.dot_dimension_numbers<[1], [0], [0], [1], [0, 0, 1, 1], [], []>} : vector<128x32xf32>, vector<32x32xf32>, vector<128x32xf32> -> vector<128x32xf32>
    %116 = arith.addf %110, %115 : vector<128x32xf32>
    %c3_122 = arith.constant 3 : index
    %c0_123 = arith.constant 0 : index
    %c0_124 = arith.constant 0 : index
    %117 = vector.load %arg9[%c3_122, %c0_123, %c0_124] : memref<20x8x32xf32, #tpu.memory_space<vmem>>, vector<16x8x32xf32>
    %118 = vector.shape_cast %117 : vector<16x8x32xf32> to vector<128x32xf32>
    %c3_125 = arith.constant 3 : index
    %c0_126 = arith.constant 0 : index
    %c0_127 = arith.constant 0 : index
    %119 = vector.load %arg6[%c3_125, %c0_126, %c0_127] : memref<5x32x32xf32, #tpu.memory_space<vmem>>, vector<1x32x32xf32>
    %120 = vector.shape_cast %119 : vector<1x32x32xf32> to vector<32x32xf32>
    %cst_128 = arith.constant dense<0.000000e+00> : vector<128x32xf32>
    %121 = tpu.matmul %118, %120, %cst_128 {dimension_numbers = #tpu.dot_dimension_numbers<[1], [0], [0], [1], [0, 0, 1, 1], [], []>} : vector<128x32xf32>, vector<32x32xf32>, vector<128x32xf32> -> vector<128x32xf32>
    %122 = arith.addf %116, %121 : vector<128x32xf32>
    %c4_129 = arith.constant 4 : index
    %c0_130 = arith.constant 0 : index
    %c0_131 = arith.constant 0 : index
    %123 = vector.load %arg9[%c4_129, %c0_130, %c0_131] : memref<20x8x32xf32, #tpu.memory_space<vmem>>, vector<16x8x32xf32>
    %124 = vector.shape_cast %123 : vector<16x8x32xf32> to vector<128x32xf32>
    %c4_132 = arith.constant 4 : index
    %c0_133 = arith.constant 0 : index
    %c0_134 = arith.constant 0 : index
    %125 = vector.load %arg6[%c4_132, %c0_133, %c0_134] : memref<5x32x32xf32, #tpu.memory_space<vmem>>, vector<1x32x32xf32>
    %126 = vector.shape_cast %125 : vector<1x32x32xf32> to vector<32x32xf32>
    %cst_135 = arith.constant dense<0.000000e+00> : vector<128x32xf32>
    %127 = tpu.matmul %124, %126, %cst_135 {dimension_numbers = #tpu.dot_dimension_numbers<[1], [0], [0], [1], [0, 0, 1, 1], [], []>} : vector<128x32xf32>, vector<32x32xf32>, vector<128x32xf32> -> vector<128x32xf32>
    %128 = arith.addf %122, %127 : vector<128x32xf32>
    %129 = math.tanh %128 : vector<128x32xf32>
    %cst_136 = arith.constant 1.000000e+00 : f32
    %130 = vector.broadcast %cst_136 : f32 to vector<128x32xf32>
    %131 = arith.subf %130, %86 : vector<128x32xf32>
    %132 = arith.mulf %131, %14 : vector<128x32xf32>
    %133 = arith.mulf %86, %129 : vector<128x32xf32>
    %134 = arith.addf %132, %133 : vector<128x32xf32>
    %135 = vector.shape_cast %134 : vector<128x32xf32> to vector<16x8x32xf32>
    %c0_137 = arith.constant 0 : index
    %c0_138 = arith.constant 0 : index
    %c0_139 = arith.constant 0 : index
    %c0_140 = arith.constant 0 : index
    %136 = vector.load %arg8[%c0_137, %c0_138, %c0_139, %c0_140] : memref<1x16x8x32xf32, #tpu.memory_space<vmem>>, vector<1x16x8x32xf32>
    %137 = vector.shape_cast %136 : vector<1x16x8x32xf32> to vector<16x8x32xf32>
    %138 = vector.shape_cast %135 : vector<16x8x32xf32> to vector<1x16x8x32xf32>
    tpu.vector_store %arg8[%c0_137, %c0_138, %c0_139, %c0_140], %138 {strides = array<i32>} : memref<1x16x8x32xf32, #tpu.memory_space<vmem>>, vector<1x16x8x32xf32>,
    return
  }
  func.func @transform_0(%arg0: i32, %arg1: i32) -> (i32, i32, i32, i32) {
    %c0_i32 = arith.constant 0 : i32
    %c0_i32_0 = arith.constant 0 : i32
    %c0_i32_1 = arith.constant 0 : i32
    return %arg0, %c0_i32, %arg1, %c0_i32_0 : i32, i32, i32, i32
  }
  func.func @transform_1(%arg0: i32, %arg1: i32) -> (i32, i32, i32, i32) {
    %c0_i32 = arith.constant 0 : i32
    %c0_i32_0 = arith.constant 0 : i32
    %c0_i32_1 = arith.constant 0 : i32
    return %arg0, %c0_i32, %arg1, %c0_i32_0 : i32, i32, i32, i32
  }
  func.func @transform_2(%arg0: i32, %arg1: i32) -> (i32, i32, i32) {
    %c0_i32 = arith.constant 0 : i32
    %c0_i32_0 = arith.constant 0 : i32
    %c0_i32_1 = arith.constant 0 : i32
    %c0_i32_2 = arith.constant 0 : i32
    return %c0_i32, %c0_i32_0, %c0_i32_1 : i32, i32, i32
  }
  func.func @transform_3(%arg0: i32, %arg1: i32) -> (i32, i32, i32) {
    %c0_i32 = arith.constant 0 : i32
    %c0_i32_0 = arith.constant 0 : i32
    %c0_i32_1 = arith.constant 0 : i32
    %c0_i32_2 = arith.constant 0 : i32
    return %c0_i32, %c0_i32_0, %c0_i32_1 : i32, i32, i32
  }
  func.func @transform_4(%arg0: i32, %arg1: i32) -> (i32, i32, i32) {
    %c0_i32 = arith.constant 0 : i32
    %c0_i32_0 = arith.constant 0 : i32
    %c0_i32_1 = arith.constant 0 : i32
    %c0_i32_2 = arith.constant 0 : i32
    return %c0_i32, %c0_i32_0, %c0_i32_1 : i32, i32, i32
  }
  func.func @transform_5(%arg0: i32, %arg1: i32) -> (i32, i32) {
    %c0_i32 = arith.constant 0 : i32
    %c0_i32_0 = arith.constant 0 : i32
    %c0_i32_1 = arith.constant 0 : i32
    return %c0_i32, %c0_i32_0 : i32, i32
  }
  func.func @transform_6(%arg0: i32, %arg1: i32) -> (i32, i32, i32, i32) {
    %c0_i32 = arith.constant 0 : i32
    %c0_i32_0 = arith.constant 0 : i32
    %c0_i32_1 = arith.constant 0 : i32
    return %arg0, %c0_i32, %arg1, %c0_i32_0 : i32, i32, i32, i32
  }
}

</mosaic_0001>

<bundles_post_ra>
// kernel: tpu_custom_call.1
= control target key start
LH: loop header
LB: loop body
LE: loop exit
PB: predicated region body
PF: predicated region fallthrough
CT: control target
= control target key end

     0   :  { %s8178_s0 = inlined_call_operand.hbm [shape: f32[2,16,16,32], index: 0, kind: input, shape index: {}]   ;;  %s8179_s1 = inlined_call_operand.hbm [shape: f32[2,16,16,32], index: 1, kind: input, shape index: {}]   ;;  %s8180_s2 = inlined_call_operand.hbm [shape: f32[5,32,96], index: 2, kind: input, shape index: {}]   ;;  %s8181_s3 = inlined_call_operand.hbm [shape: f32[5,32,64], index: 3, kind: input, shape index: {}]   ;;  %s8182_s4 = inlined_call_operand.hbm [shape: f32[5,32,32], index: 4, kind: input, shape index: {}]   ;;  %s8183_s5 = inlined_call_operand.vmem [shape: f32[1,96], index: 5, kind: input, shape index: {}]   ;;  %s8184_s6 = inlined_call_operand.hbm [shape: f32[2,16,16,32], index: 6, kind: output, shape index: {}]  }
   0x1   :  { %8242 = sst [smem:[#allocation55_spill]] %s8178_s0 }
   0x2   :  { %8243 = sst [smem:[#allocation56_spill]] %s8180_s2 }
   0x3   :  { %8244 = sst [smem:[#allocation57_spill]] %s8181_s3 }
   0x4   :  { %8245 = sst [smem:[#allocation58_spill]] %s8183_s5 }
   0x5   :  { %8246 = sst [smem:[#allocation59_spill]] %s8184_s6 }
   0x6   :  { %11 = vsyncpa [#allocation5], 0 }
   0x7   :  { %13 = vsyncpa [#allocation5 + $0x1], 0 }
   0x8   :  { %14 = vsyncpa [#allocation8], 0 }
   0x9   :  { %16 = vsyncpa [#allocation8 + $0x1], 0 }
   0xa   :  { %17 = vsyncpa [#allocation11], 0 }
   0xb   :  { %18 = vsyncpa [#allocation6], 0 }
   0xc   :  { %20 = vsyncpa [#allocation6 + $0x1], 0  ;;  %s6643_s21 = smov 0   ;;  %s6645_s22 = smov 0  }
   0xd   :  { %s6647_s23 = smov 0   ;;  %s6649_s24 = smov 0  }
   0xe   :  { %s6651_s25 = smov 0   ;;  %s6653_s26 = smov 0  }
   0xf   :  { %s6655_s27 = smov 0   ;;  %s6657_s28 = smov 0  }
  0x10 LB: > { %8247 = sst [smem:[#allocation19_spill]] %s6562_s21  ;;  %s6684_s29 = sadd.s32 4294967295, %s6590_s28   ;;  %s6590_s28 = sphi %s6657_s28, %s26_s28   ;;  %s6586_s27 = sphi %s6655_s27, %s8350_s27   ;;  %s6582_s26 = sphi %s6653_s26, %s8349_s26   ;;  %s6578_s25 = sphi %s6651_s25, %s8348_s25   ;;  %s6574_s24 = sphi %s6649_s24, %s8347_s24   ;;  %s6570_s23 = sphi %s6647_s23, %s8346_s23   ;;  %s6566_s22 = sphi %s6645_s22, %s8345_s22   ;;  %s6562_s21 = sphi %s6643_s21, %s8344_s21  }
  0x11   : > { %8248 = sst [smem:[#allocation20_spill]] %s6574_s24  ;;  %s4787_s30 = sadd.s32 4294967294, %s6590_s28  }
  0x12   : > { %8249 = sst [smem:[#allocation21_spill]] %s6578_s25  ;;  %p54_p0 = scmp.ne.s32.totalorder %s6570_s23, %s6566_s22 }
  0x13   : > { %p55_p1 = scmp.eq.s32.totalorder %s6590_s28, 0  ;;  %p60_p2 = scmp.ne.s32.totalorder %s6566_s22, %s6562_s21 }
  0x14   : > { %p8186_p3 = scmp.eq.s32.totalorder %s6684_s29, 0  ;;  %p198_p4 = scmp.eq.s32.totalorder %s6684_s29, 3 }
  0x15   : > { %p6695_p5 = por %p55_p1, %p54_p0  ;;  %p204_p6 = scmp.eq.s32.totalorder %s4787_s30, 3 }
  0x16   : > { %p6701_p7 = por %p8186_p3, %p60_p2  ;;  %p6705_p8 = por %p198_p4, %p54_p0 }
  0x17   : > { %p6709_p9 = por %p204_p6, %p60_p2  ;;  %p4788_p10 = scmp.ge.s32.totalorder %s6590_s28, 1 }
  0x18   : > { %s8251_s9 = scalar_select %p6701_p7, 1, 0 }
  0x19   : > { %s8252_s10 = scalar_select %p6705_p8, 1, 0 }
  0x1a   : > { %s8254_s11 = scalar_select %p6709_p9, 1, 0 }
  0x1b   : > { %8253 = sst [smem:[#allocation22_spill]] %s8252_s10  ;;  %p211_p11 = scmp.lt.s32.totalorder %s6590_s28, 5 }
  0x1c   : > { %8255 = sst [smem:[#allocation23_spill]] %s8254_s11  ;;  %s6592_s13 = smov [#allocation9]  }
  0x1d   : > { %p6715_p12 = pnand %p4788_p10, %p211_p11  ;;  %s223_s14 = sshll.u32 %s6592_s13, 4  ;;  %s6719_s14 = int_to_ptr.vmem [resolvable:$true] %s223_s14 }
  0x1e   : > { %p6158_p0 = scmp.lt.s32.totalorder %s6590_s28, 4  ;;  %s6593_s16 = smov [#allocation10]  }
  0x1f   : > { %s8256_s12 = scalar_select %p6715_p12, 1, 0 }
  0x20   : > { %p6134_p13 = pneg %p6715_p12  ;;  %s236_s17 = sshll.u32 %s6593_s16, 4  ;;  %s6736_s17 = int_to_ptr.vmem [resolvable:$true] %s236_s17 }
  0x21   : > { %p6732_p2 = pnand %p6158_p0, %p6695_p5  ;;  %s8259_s2 = sld [smem:[#allocation56_spill]] }
  0x22   : > { %p6726_p1 = pnand %p6134_p13, %p8186_p3 }
  0x23   : > { %s8258_s18 = scalar_select %p6732_p2, 1, 0 }
  0x24   : > { %p6746_p6 = pneg %p6726_p1 }
  0x27   : > { %s6336_s30 = scalar_lea.hbm %s8259_s2, 2560 }
  0x28   : > { %p6337_p4 = scmp.ne.s32.totalorder %s8259_s2, %s6336_s30  ;;  %p6343_p11 = scmp.lt.u32.totalorder %s6336_s30, %s8259_s2 }
  0x2a   : > { %p6339_p5 = pnand %p6746_p6, %p6337_p4 }
  0x2c   : > { %p6340_p10 = pneg %p6339_p5 }
  0x2e   : > { %p6345_p13 = pnand %p6343_p11, %p6340_p10 }
  0x30   : > { %6348 = shalt.err (!%p6345_p13)
}
  0x31   : > { %s6349_s7 = scalar_lea.vmem %s6719_s14, 2560  ;;  %p6357_p8 = scmp.lt.s32.totalorder %s6719_s14, %s6719_s14 }
  0x32   : > { %p6350_p0 = scmp.ne.s32.totalorder %s6719_s14, %s6349_s7  ;;  %p6358_p7 = scmp.lt.s32.totalorder %s6349_s7, %s6349_s7 }
  0x34   : > { %p6352_p3 = pnand %p6350_p0, %p6746_p6  ;;  %p6359_p4 = por %p6358_p7, %p6357_p8 }
  0x36   : > { %p6353_p9 = pneg %p6352_p3 }
  0x38   : > { %p6360_p5 = pnand %p6359_p4, %p6353_p9 }
  0x3a   : > { %6363 = shalt.err (!%p6360_p5)
}
  0x3b   : > { %s6594_s19 = smov 128   ;;  %s6595_s20 = smov 8  }
  0x3c   : > { %6137 = dma.hbm_to_vmem [thread:$0]  (!%p6726_p1), %s8259_s2, 2560, %s6719_s14, [#allocation8], %s6594_s19, %s6594_s19, %s6595_s20  }
  0x3d   : > { %s6596_s8 = smov [#allocation12]   ;;  %s8261_s3 = sld [smem:[#allocation57_spill]] }
  0x3e   : > { %s249_s16 = sshll.u32 %s6596_s8, 4  ;;  %s250_s16 = int_to_ptr.vmem [resolvable:$true] %s249_s16 }
  0x43   : > { %s6364_s6 = scalar_lea.hbm %s8261_s3, 2560 }
  0x44   : > { %p6365_p3 = scmp.ne.s32.totalorder %s8261_s3, %s6364_s6  ;;  %p6371_p9 = scmp.lt.u32.totalorder %s6364_s6, %s8261_s3 }
  0x46   : > { %p6367_p7 = pnand %p6365_p3, %p6746_p6 }
  0x48   : > { %p6368_p8 = pneg %p6367_p7 }
  0x4a   : > { %p6373_p10 = pnand %p6371_p9, %p6368_p8 }
  0x4c   : > { %6376 = shalt.err (!%p6373_p10)
}
  0x4d   : > { %s6377_s14 = scalar_lea.vmem %s6736_s17, 2560  ;;  %p6385_p4 = scmp.lt.s32.totalorder %s6736_s17, %s6736_s17 }
  0x4e   : > { %p6378_p11 = scmp.ne.s32.totalorder %s6736_s17, %s6377_s14  ;;  %p6386_p5 = scmp.lt.s32.totalorder %s6377_s14, %s6377_s14 }
  0x50   : > { %p6380_p13 = pnand %p6378_p11, %p6746_p6  ;;  %p6387_p3 = por %p6386_p5, %p6385_p4 }
  0x52   : > { %p6381_p0 = pneg %p6380_p13 }
  0x54   : > { %p6388_p7 = pnand %p6387_p3, %p6381_p0 }
  0x56   : > { %6391 = shalt.err (!%p6388_p7)
}
  0x57   : > { %6140 = dma.hbm_to_vmem [thread:$0]  (!%p6726_p1), %s8261_s3, 2560, %s6736_s17, [#allocation11], %s6594_s19, %s6594_s19, %s6595_s20  }
  0x58   : > { %s6392_s25 = scalar_lea.hbm %s8182_s4, 2560 }
  0x59   : > { %p6393_p8 = scmp.ne.s32.totalorder %s8182_s4, %s6392_s25  ;;  %p6399_p11 = scmp.lt.u32.totalorder %s6392_s25, %s8182_s4 }
  0x5b   : > { %p6395_p9 = pnand %p6393_p8, %p6746_p6 }
  0x5d   : > { %p6396_p10 = pneg %p6395_p9 }
  0x5f   : > { %p6401_p13 = pnand %p6399_p11, %p6396_p10 }
  0x61   : > { %6404 = shalt.err (!%p6401_p13)
}
  0x62   : > { %s6405_s7 = scalar_lea.vmem %s250_s16, 2560  ;;  %p6413_p3 = scmp.lt.s32.totalorder %s250_s16, %s250_s16 }
  0x63   : > { %p6406_p0 = scmp.ne.s32.totalorder %s250_s16, %s6405_s7  ;;  %p6414_p7 = scmp.lt.s32.totalorder %s6405_s7, %s6405_s7 }
  0x65   : > { %p6408_p4 = pnand %p6406_p0, %p6746_p6  ;;  %p6415_p12 = por %p6414_p7, %p6413_p3 }
  0x67   : > { %p6409_p5 = pneg %p6408_p4 }
  0x69   : > { %p6416_p2 = pnand %p6415_p12, %p6409_p5 }
  0x6b   : > { %6419 = shalt.err (!%p6416_p2)
}
  0x6c   : > { %6143 = dma.hbm_to_vmem [thread:$0]  (!%p6726_p1), %s8182_s4, 2560, %s250_s16, [#allocation11], %s6594_s19, %s6594_s19, %s6595_s20  }
  0x6d   : > { %s35_s11 = sadd.s32 1, %s6582_s26  ;;  %s38_s5 = sadd.s32 1, %s6586_s27 }
  0x6e   : > { %p36_p12 = scmp.ge.s32.totalorder %s35_s11, 2  ;;  %s266_s6 = sand.u32 1, %s6570_s23  }
  0x6f   : > { %s4794_s15 = sshll.u32 %s6586_s27, 5  ;;  %s6826_s24 = sshll.u32 %s266_s6, 7 }
  0x70   : > { %s8352_s11 = smov (%p36_p12, %s35_s11), 0  ;;  %s8354_s5 = smov (!%p36_p12, %s38_s5), %s6586_s27 }
  0x71   : > { %s43_s21 = ssub.s32 %s6582_s26, %s8352_s11  ;;  %p40_p2 = scmp.ge.s32.totalorder %s8354_s5, 2 }
  0x72   : > { %s6829_s25 = sadd.s32 %s6582_s26, %s4794_s15  ;;  %s270_s10 = scalar_lea.vmem [#allocation4], %s6826_s24 }
  0x73   : > { %s8356_s5 = smov (%p40_p2, %s8354_s5), 0  ;;  %s8195_s16 = sshll.u32 %s6829_s25, 7 }
  0x74   : > { %s278_s30 = sshll.u32 %s270_s10, 4  ;;  %s42_s13 = ssub.s32 %s6586_s27, %s8356_s5  ;;  %s6846_s30 = int_to_ptr.vmem [resolvable:$true] %s278_s30 }
  0x75   : > { %s8262_s0 = sld [smem:[#allocation55_spill]]  ;;  %s6844_s14 = sor.u32 %s43_s21, %s42_s13 }
  0x76   : > { %p45_p1 = scmp.eq.s32.totalorder %s6844_s14, 0  ;;  %s6849_s15 = scalar_lea.sflag [#allocation5], %s266_s6 }
  0x77   : > { %p8263_p8 = scmp.ne.s32.totalorder %s8258_s18, 0 }
  0x79   : > { %p6422_p9 = pneg %p8263_p8 }
  0x7b   : > { %s6842_s17 = scalar_lea.hbm %s8262_s0, %s8195_s16  ;;  %s6425_s16 = scalar_lea.hbm %s8262_s0, 8192 }
  0x7c   : > { %s6420_s10 = scalar_lea.hbm %s6842_s17, 2048  ;;  %p6426_p13 = scmp.lt.u32.totalorder %s6842_s17, %s8262_s0 }
  0x7d   : > { %p6421_p6 = scmp.ne.s32.totalorder %s6842_s17, %s6420_s10  ;;  %p6427_p0 = scmp.lt.u32.totalorder %s6425_s16, %s6420_s10 }
  0x7e   : > { %p6429_p5 = scmp.lt.u32.totalorder %s6420_s10, %s6842_s17 }
  0x7f   : > { %p6423_p10 = pnand %p6422_p9, %p6421_p6  ;;  %p6428_p4 = por %p6427_p0, %p6426_p13 }
  0x81   : > { %p6424_p11 = pneg %p6423_p10  ;;  %p6430_p3 = por %p6429_p5, %p6428_p4 }
  0x83   : > { %p6431_p7 = pnand %p6430_p3, %p6424_p11 }
  0x85   : > { %6434 = shalt.err (!%p6431_p7)
}
  0x86   : > { %s6435_s6 = scalar_lea.vmem %s6846_s30, 2048  ;;  %s6597_s8 = smov [#allocation4]  }
  0x87   : > { %p6436_p12 = scmp.ne.s32.totalorder %s6846_s30, %s6435_s6  ;;  %s6440_s7 = sshll.u32 %s6597_s8, 4  ;;  %s6441_s7 = int_to_ptr.vmem [resolvable:$false] %s6440_s7 }
  0x88   : > { %s6442_s21 = scalar_lea.vmem %s6441_s7, 4096  ;;  %p6443_p10 = scmp.lt.s32.totalorder %s6846_s30, %s6441_s7 }
  0x89   : > { %p6438_p2 = pnand %p6436_p12, %p6422_p9  ;;  %p6444_p13 = scmp.lt.s32.totalorder %s6442_s21, %s6435_s6 }
  0x8b   : > { %p6439_p6 = pneg %p6438_p2  ;;  %p6445_p0 = por %p6444_p13, %p6443_p10 }
  0x8d   : > { %p6446_p4 = pnand %p6445_p0, %p6439_p6 }
  0x8f   : > { %6449 = shalt.err (!%p6446_p4)
}
  0x90   : > { %s6598_s16 = smov 256   ;;  %s8264_s10 = sadd.s32 1, %s6570_s23 }
  0x91   : > { %6147 = dma.hbm_to_vmem [thread:$0]  (!%p8263_p8), %s6842_s17, 2048, %s6846_s30, %s6849_s15, %s6598_s16, %s6594_s19, %s6595_s20  }
  0x92   : > { %s6885_s13 = scalar_select %p45_p1, %s6570_s23, %s8264_s10  }
  0x93   : > { %s8265_s6 = sshll.u32 %s6829_s25, 7  ;;  %s292_s0 = scalar_lea.vmem [#allocation7], %s6826_s24 }
  0x94   : > { %s6892_s21 = scalar_lea.hbm %s8179_s1, %s8265_s6  ;;  %s300_s2 = sshll.u32 %s292_s0, 4  ;;  %s6896_s2 = int_to_ptr.vmem [resolvable:$true] %s300_s2 }
  0x95   : > { %s288_s3 = sand.u32 1, %s6590_s28   ;;  %s6450_s17 = scalar_lea.hbm %s6892_s21, 2048 }
  0x96   : > { %s6898_s30 = scalar_lea.sflag [#allocation8], %s288_s3  ;;  %p6451_p1 = scmp.ne.s32.totalorder %s6892_s21, %s6450_s17 }
  0x97   : > { %s6455_s15 = scalar_lea.hbm %s8179_s1, 8192  ;;  %p6456_p3 = scmp.lt.u32.totalorder %s6892_s21, %s8179_s1 }
  0x98   : > { %p6453_p11 = pnand %p6451_p1, %p6422_p9  ;;  %p6457_p7 = scmp.lt.u32.totalorder %s6455_s15, %s6450_s17 }
  0x99   : > { %p6459_p2 = scmp.lt.u32.totalorder %s6450_s17, %s6892_s21 }
  0x9a   : > { %p6454_p5 = pneg %p6453_p11  ;;  %p6458_p12 = por %p6457_p7, %p6456_p3 }
  0x9c   : > { %p6460_p6 = por %p6459_p2, %p6458_p12 }
  0x9e   : > { %p6461_p10 = pnand %p6460_p6, %p6454_p5 }
  0xa0   : > { %6464 = shalt.err (!%p6461_p10)
}
  0xa1   : > { %s6465_s0 = scalar_lea.vmem %s6896_s2, 2048  ;;  %s6599_s3 = smov [#allocation7]  }
  0xa2   : > { %p6466_p13 = scmp.ne.s32.totalorder %s6896_s2, %s6465_s0  ;;  %s6470_s24 = sshll.u32 %s6599_s3, 4  ;;  %s6471_s24 = int_to_ptr.vmem [resolvable:$false] %s6470_s24 }
  0xa3   : > { %s6472_s8 = scalar_lea.vmem %s6471_s24, 4096  ;;  %p6473_p1 = scmp.lt.s32.totalorder %s6896_s2, %s6471_s24 }
  0xa4   : > { %p6468_p0 = pnand %p6466_p13, %p6422_p9  ;;  %p6474_p11 = scmp.lt.s32.totalorder %s6472_s8, %s6465_s0 }
  0xa6   : > { %p6469_p4 = pneg %p6468_p0  ;;  %p6475_p3 = por %p6474_p11, %p6473_p1 }
  0xa8   : > { %p6476_p7 = pnand %p6475_p3, %p6469_p4 }
  0xaa   : > { %6479 = shalt.err (!%p6476_p7)
}
  0xab   : > { %6150 = dma.hbm_to_vmem [thread:$0]  (!%p8263_p8), %s6892_s21, 2048, %s6896_s2, %s6898_s30, %s6598_s16, %s6594_s19, %s6595_s20  }
  0xac   : > { %p8266_p9 = scmp.ne.s32.totalorder %s8256_s12, 0 }
  0xae   : > { %312 = sbr.rel (%p8266_p9) target bundleno = 1347 (0x543), region = 44 }
  0xb5   : > { %s6930_s7 = sand.u32 1, %s6566_s22   ;;  %p8267_p5 = scmp.ne.s32.totalorder %s8251_s9, 0 }
  0xb6   : > { %s6933_s17 = sshll.u32 %s6930_s7, 7  ;;  %s315_s18 = scalar_lea.sflag [#allocation5], %s6930_s7 }
  0xb7   : > { %s6937_s25 = scalar_lea.vmem [#allocation4], %s6933_s17 }
  0xb8   : > { %6541 = dma.done.wait (%p8267_p5), %s315_s18, 2048  }
  0xb9   : > { %6543 = vsyncadd (%p8267_p5), %s315_s18, 4294965248  ;;  %s323_s2 = sand.u32 1, %s6684_s29   ;;  %s6945_s19 = scalar_lea.vmem [#allocation7], %s6933_s17 }
  0xba   : > { %s324_s12 = scalar_lea.sflag [#allocation8], %s323_s2 }
  0xbb   : > { %6545 = dma.done.wait (%p8267_p5), %s324_s12, 2048  }
  0xbc   : > { %6547 = vsyncadd (%p8267_p5), %s324_s12, 4294965248  ;;  %p8268_p8 = scmp.eq.s32.totalorder %s6684_s29, 0 }
  0xbe   : > { %6549 = dma.done.wait (%p8268_p8), [#allocation8], 2560   ;;  %p8269_p12 = pmov %p8268_p8 }
  0xbf   : > { %p8270_p2 = pmov %p8268_p8 }
  0xc0   : > { %6551 = vsyncadd (%p8269_p12), [#allocation8], 4294964736 }
  0xc1   : > { %6553 = dma.done.wait (%p8270_p2), [#allocation11], 5120   ;;  %p8271_p6 = pmov %p8270_p2 }
  0xc2   : > { %vm373_vm0 = vcmask 261120   ;;  %v6600_v0 = vmov 0.0   ;;  %v473_v1 = vld [vmem:[#allocation9] sm:$0xff]  ;;  %v474_v2 = vld [vmem:[#allocation9 + $0x8] sm:$0xff]  ;;  %v475_v3 = vld [vmem:[#allocation9 + $0x10] sm:$0xff]  ;;  %s6601_s29 = smov 32  }
  0xc3   : > { %6555 = vsyncadd (%p8271_p6), [#allocation11], 4294962176  ;;  %379 = vst.msk [vmem:[#allocation3] sm:$0xff] %vm373_vm0, %v6600_v0  ;;  %v5848_v4 = vpack.c.bf16 %v474_v2, %v473_v1  ;;  %v476_v5 = vld [vmem:[#allocation9 + $0x18] sm:$0xff]  ;;  %v423_v7 = vld [vmem:[%s6945_s19 + $0x30] sm:$0xff]  ;;  %s8288_s16 = sld [smem:[#allocation58_spill]] }
  0xc4   : > { %374 = vst.msk [vmem:[#allocation2] sm:$0xff] %vm373_vm0, %v6600_v0  ;;  %375 = vst.msk [vmem:[#allocation2 + $0x8] sm:$0xff] %vm373_vm0, %v6600_v0  ;;  %v5852_v8 = vpack.c.bf16 %v476_v5, %v475_v3  ;;  %v424_v9 = vld [vmem:[%s6945_s19 + $0x38] sm:$0xff]  ;;  %v955_v10 = vld [vmem:[#allocation10 + $0x20] sm:$0xff]  ;;  %s6602_s21 = smov 96   ;;  %s6603_s30 = smov 64  }
  0xc5   : > { %377 = vst.msk [vmem:[#allocation2 + $0x90] sm:$0xff] %vm373_vm0, %v6600_v0  ;;  %378 = vst.msk [vmem:[#allocation2 + $0x98] sm:$0xff] %vm373_vm0, %v6600_v0  ;;  %5849 = vmatprep.subr.bf16.mxu0 %v5848_v4  ;;  %5968 = vmatprep.subr.bf16.mxu1 %v5848_v4  ;;  %v956_v11 = vld [vmem:[#allocation10 + $0x28] sm:$0xff]  ;;  %v417_v12 = vld [vmem:[%s6945_s19] sm:$0xff]  ;;  %s8042_s14 = scalar_lea.vmem [#allocation13], %s6933_s17  ;;  %s8322_s15 = sld [smem:[#allocation21_spill]] }
  0xc6   : > { %380 = vst.msk [vmem:[#allocation3 + $0x8] sm:$0xff] %vm373_vm0, %v6600_v0  ;;  %382 = vst.msk [vmem:[#allocation3 + $0x90] sm:$0xff] %vm373_vm0, %v6600_v0  ;;  %v425_v13 = vld [vmem:[%s6945_s19 + $0x40] sm:$0xff]  ;;  %5851 = vmatpush3.bf16.msra.mxu0 %v5848_v4  ;;  %5970 = vmatpush3.bf16.msra.mxu1 %v5848_v4  ;;  %v418_v14 = vld [vmem:[%s6945_s19 + $0x8] sm:$0xff]  ;;  %v5864_v17 = vpack.c.bf16 %v956_v11, %v955_v10  ;;  %s8326_s10 = sld [smem:[#allocation20_spill]]  ;;  %s4645_s24 = sshll.u32 %s8042_s14, 4  ;;  %s8120_s24 = int_to_ptr.vmem [resolvable:$true] %s4645_s24 }
  0xc7   : > { %383 = vst.msk [vmem:[#allocation3 + $0x98] sm:$0xff] %vm373_vm0, %v6600_v0  ;;  %440 = vst.msk [vmem:[#allocation3 + $0x40] sm:$0xff] %vm373_vm0, %v423_v7  ;;  %v426_v15 = vld [vmem:[%s6945_s19 + $0x48] sm:$0xff]  ;;  %v419_v16 = vld [vmem:[%s6945_s19 + $0x10] sm:$0xff]  ;;  %5853 = vmatprep.subr.bf16.mxu0 %v5852_v8  ;;  %5969 = vmatprep.subr.bf16.mxu1 %v5852_v8  ;;  %s8336_s8 = sld [smem:[#allocation22_spill]]  ;;  %s6604_s9 = smov [#allocation13]  }
  0xc8   : > { %441 = vst.msk [vmem:[#allocation3 + $0x48] sm:$0xff] %vm373_vm0, %v424_v9  ;;  %434 = vst.msk [vmem:[#allocation3 + $0x10] sm:$0xff] %vm373_vm0, %v417_v12  ;;  %v427_v18 = vld [vmem:[%s6945_s19 + $0x50] sm:$0xff]  ;;  %v420_v19 = vld [vmem:[%s6945_s19 + $0x18] sm:$0xff]  ;;  %s6484_s20 = sshll.u32 %s6604_s9, 4  ;;  %s6485_s20 = int_to_ptr.vmem [resolvable:$false] %s6484_s20 }
  0xc9   : > { %442 = vst.msk [vmem:[#allocation3 + $0x50] sm:$0xff] %vm373_vm0, %v425_v13  ;;  %435 = vst.msk [vmem:[#allocation3 + $0x18] sm:$0xff] %vm373_vm0, %v418_v14  ;;  %v428_v20 = vld [vmem:[%s6945_s19 + $0x58] sm:$0xff]  ;;  %v724_v21 = vld [vmem:[#allocation9 + $0x20] sm:$0xff]  ;;  %p6487_p1 = scmp.lt.s32.totalorder %s8120_s24, %s6485_s20 }
  0xca   : > { %v457_v6 = vld [vmem:[#allocation3] sm:$0xff]  ;;  %443 = vst.msk [vmem:[#allocation3 + $0x58] sm:$0xff] %vm373_vm0, %v426_v15  ;;  %436 = vst.msk [vmem:[#allocation3 + $0x20] sm:$0xff] %vm373_vm0, %v419_v16  ;;  %v725_v22 = vld [vmem:[#allocation9 + $0x28] sm:$0xff]  ;;  %5855 = vmatpush3.bf16.msra.mxu0 %v5852_v8  ;;  %5971 = vmatpush3.bf16.msra.mxu1 %v5852_v8 }
  0xcb   : > { %5376 = vmatprep.mubr.msk.f32.mxu0 %vm373_vm0, %v457_v6  ;;  %444 = vst.msk [vmem:[#allocation3 + $0x60] sm:$0xff] %vm373_vm0, %v427_v18  ;;  %437 = vst.msk [vmem:[#allocation3 + $0x28] sm:$0xff] %vm373_vm0, %v420_v19  ;;  %v957_v23 = vld [vmem:[#allocation10 + $0x30] sm:$0xff]  ;;  %v5856_v24 = vpack.c.bf16 %v725_v22, %v724_v21  ;;  %v958_v25 = vld [vmem:[#allocation10 + $0x38] sm:$0xff]  ;;  %5865 = vmatprep.subr.bf16.mxu1 %v5864_v17  ;;  %s5064_s6 = sshll.u32 %s8322_s15, 5 }
  0xcc   : > { %445 = vst.msk [vmem:[#allocation3 + $0x68] sm:$0xff] %vm373_vm0, %v428_v20  ;;  %v421_v26 = vld [vmem:[%s6945_s19 + $0x20] sm:$0xff]  ;;  %v422_v29 = vld [vmem:[%s6945_s19 + $0x28] sm:$0xff]  ;;  %v5868_v32 = vpack.c.bf16 %v958_v25, %v957_v23  ;;  %v726_v33 = vld [vmem:[#allocation9 + $0x30] sm:$0xff]  ;;  %s4642_s0 = sadd.s32 %s8326_s10, %s5064_s6 }
  0xcd   : > { %v429_v27 = vld [vmem:[%s6945_s19 + $0x60] sm:$0xff]  ;;  %v6990_v28 = vld [vmem:[#allocation3 + $0x8] sm:$0xff]  ;;  %438 = vst.msk [vmem:[#allocation3 + $0x30] sm:$0xff] %vm373_vm0, %v421_v26  ;;  %5857 = vmatprep.subr.bf16.mxu0 %v5856_v24  ;;  %439 = vst.msk [vmem:[#allocation3 + $0x38] sm:$0xff] %vm373_vm0, %v422_v29  ;;  %s5065_s3 = sshll.u32 %s4642_s0, 7  ;;  %p8340_p13 = scmp.ne.s32.totalorder %s8336_s8, 0 }
  0xce   : > { %446 = vst.msk [vmem:[#allocation3 + $0x70] sm:$0xff] %vm373_vm0, %v429_v27  ;;  %v430_v30 = vld [vmem:[%s6945_s19 + $0x68] sm:$0xff]  ;;  %v6996_v31 = vld [vmem:[#allocation3 + $0x40] sm:$0xff]  ;;  %v727_v34 = vld [vmem:[#allocation9 + $0x38] sm:$0xff]  ;;  %5377 = vmatmul.mubr.msk.f32.vlgmr.msra.gmra.mrb[0].mxu0 %vm373_vm0, %v6990_v28 }
  0xcf   : > { %447 = vst.msk [vmem:[#allocation3 + $0x78] sm:$0xff] %vm373_vm0, %v430_v30  ;;  %5388 = vmatprep.mubr.msk.f32.mxu1 %vm373_vm0, %v6996_v31  ;;  %v7002_v35 = vld [vmem:[#allocation3 + $0x48] sm:$0xff]  ;;  %v7005_v36 = vld [vmem:[%s6937_s25] sm:$0xff]  ;;  %v7011_v38 = vld [vmem:[#allocation3 + $0x10] sm:$0xff]  ;;  %v5860_v45 = vpack.c.bf16 %v727_v34, %v726_v33  ;;  %5859 = vmatpush3.bf16.msra.mxu0 %v5856_v24 }
  0xd0   : > { %8272 = vst [vmem:[#allocation24_spill] sm:$0xff] %v7005_v36  ;;  %v702_v37 = vld [vmem:[#allocation10] sm:$0xff]  ;;  %5389 = vmatmul.mubr.msk.f32.vlgmr.msra.gmra.mrb[0].mxu1 %vm373_vm0, %v7002_v35  ;;  %v7013_v39 = vld [vmem:[#allocation3 + $0x50] sm:$0xff]  ;;  %401 = vst.msk [vmem:[#allocation2 + $0x10] sm:$0xff] %vm373_vm0, %v7005_v36  ;;  %5379 = vmatprep.mubr.msk.f32.mxu0 %vm373_vm0, %v7011_v38 }
  0xd1   : > { %v703_v40 = vld [vmem:[#allocation10 + $0x8] sm:$0xff]  ;;  %5867 = vmatpush3.bf16.msra.mxu1 %v5864_v17  ;;  %v7019_v41 = vld [vmem:[#allocation3 + $0x18] sm:$0xff]  ;;  %5391 = vmatprep.mubr.msk.f32.mxu1 %vm373_vm0, %v7013_v39  ;;  %v7025_v43 = vld [vmem:[#allocation3 + $0x20] sm:$0xff] }
  0xd2   : > { %v7021_v42 = vld [vmem:[#allocation3 + $0x58] sm:$0xff]  ;;  %v7027_v44 = vld [vmem:[#allocation3 + $0x60] sm:$0xff]  ;;  %5869 = vmatprep.subr.bf16.mxu1 %v5868_v32  ;;  %v7029_v46 = vpack.c.bf16 %v703_v40, %v702_v37  ;;  %v7032_v47 = vld [vmem:[%s6937_s25 + $0x8] sm:$0xff]  ;;  %5380 = vmatmul.mubr.msk.f32.gmra.mrb[2].mxu0 %vm373_vm0, %v7019_v41 }
  0xd3   : > { %8273 = vst [vmem:[#allocation25_spill] sm:$0xff] %v7032_v47  ;;  %v7035_v48 = vld [vmem:[%s6937_s25 + $0x10] sm:$0xff]  ;;  %v7038_v49 = vld [vmem:[%s6937_s25 + $0x18] sm:$0xff]  ;;  %v7044_v50 = vld [vmem:[#allocation3 + $0x28] sm:$0xff]  ;;  %5382 = vmatprep.mubr.msk.f32.mxu0 %vm373_vm0, %v7025_v43  ;;  %5861 = vmatprep.subr.bf16.mxu0 %v5860_v45 }
  0xd4   : > { %8274 = vst [vmem:[#allocation26_spill] sm:$0xff] %v7035_v48  ;;  %8275 = vst [vmem:[#allocation27_spill] sm:$0xff] %v7038_v49  ;;  %5392 = vmatmul.mubr.msk.f32.gmra.mrb[2].mxu1 %vm373_vm0, %v7021_v42  ;;  %v7046_v51 = vld [vmem:[#allocation3 + $0x68] sm:$0xff]  ;;  %v7055_v52 = vld [vmem:[%s6937_s25 + $0x20] sm:$0xff]  ;;  %5863 = vmatpush3.bf16.msra.mxu0 %v5860_v45 }
  0xd5   : > { %402 = vst.msk [vmem:[#allocation2 + $0x18] sm:$0xff] %vm373_vm0, %v7032_v47  ;;  %403 = vst.msk [vmem:[#allocation2 + $0x20] sm:$0xff] %vm373_vm0, %v7035_v48  ;;  %5394 = vmatprep.mubr.msk.f32.mxu1 %vm373_vm0, %v7027_v44  ;;  %v7061_v53 = vld [vmem:[#allocation3 + $0x30] sm:$0xff]  ;;  %v7068_v55 = vld [vmem:[%s6937_s25 + $0x28] sm:$0xff]  ;;  %5871 = vmatpush3.bf16.msra.mxu1 %v5868_v32 }
  0xd6   : > { %404 = vst.msk [vmem:[#allocation2 + $0x28] sm:$0xff] %vm373_vm0, %v7038_v49  ;;  %8276 = vst [vmem:[#allocation28_spill] sm:$0xff] %v7055_v52  ;;  %v7063_v54 = vld [vmem:[#allocation3 + $0x70] sm:$0xff]  ;;  %v7076_v57 = vld [vmem:[%s6937_s25 + $0x38] sm:$0xff]  ;;  %5873 = vmatprep.subr.bf16.mxu1 %v7029_v46  ;;  %5383 = vmatmul.mubr.msk.f32.gmra.mrb[4].mxu0 %vm373_vm0, %v7044_v50 }
  0xd7   : > { %405 = vst.msk [vmem:[#allocation2 + $0x30] sm:$0xff] %vm373_vm0, %v7055_v52  ;;  %8277 = vst [vmem:[#allocation29_spill] sm:$0xff] %v7068_v55  ;;  %v7073_v56 = vld [vmem:[%s6937_s25 + $0x30] sm:$0xff]  ;;  %v7079_v58 = vld [vmem:[%s6937_s25 + $0x40] sm:$0xff]  ;;  %5385 = vmatprep.mubr.msk.f32.mxu0 %vm373_vm0, %v7061_v53  ;;  %2857 = vrot.lane.b32.xlu0 %v7005_v36, %s6601_s29 }
  0xd8   : > { %406 = vst.msk [vmem:[#allocation2 + $0x38] sm:$0xff] %vm373_vm0, %v7068_v55  ;;  %8278 = vst [vmem:[#allocation30_spill] sm:$0xff] %v7073_v56  ;;  %v7081_v59 = vld [vmem:[#allocation3 + $0x38] sm:$0xff]  ;;  %5395 = vmatmul.mubr.msk.f32.gmra.mrb[4].mxu1 %vm373_vm0, %v7046_v51  ;;  %v7096_v61 = vld [vmem:[#allocation2 + $0x8] sm:$0xff]  ;;  %2861 = vrot.lane.b32.xlu1 %v7035_v48, %s6601_s29 }
  0xd9   : > { %8279 = vst [vmem:[#allocation31_spill] sm:$0xff] %v7076_v57  ;;  %8280 = vst [vmem:[#allocation32_spill] sm:$0xff] %v7079_v58  ;;  %v7083_v60 = vld [vmem:[#allocation3 + $0x78] sm:$0xff]  ;;  %v7099_v62 = vld [vmem:[%s6937_s25 + $0x48] sm:$0xff]  ;;  %5397 = vmatprep.mubr.msk.f32.mxu1 %vm373_vm0, %v7063_v54 }
  0xda   : > { %407 = vst.msk [vmem:[#allocation2 + $0x40] sm:$0xff] %vm373_vm0, %v7073_v56  ;;  %408 = vst.msk [vmem:[#allocation2 + $0x48] sm:$0xff] %vm373_vm0, %v7076_v57  ;;  %v7102_v63 = vld [vmem:[%s6937_s25 + $0x50] sm:$0xff]  ;;  %v7105_v0 = vld [vmem:[%s6937_s25 + $0x58] sm:$0xff]  ;;  %5386 = vmatmul.mubr.msk.f32.gmra.mrb[6].mxu0 %vm373_vm0, %v7081_v59 }
  0xdb   : > { %409 = vst.msk [vmem:[#allocation2 + $0x50] sm:$0xff] %vm373_vm0, %v7079_v58  ;;  %8281 = vst [vmem:[#allocation33_spill] sm:$0xff] %v7099_v62  ;;  %v7118_v1 = vld [vmem:[%s6937_s25 + $0x60] sm:$0xff]  ;;  %v1363_v3 = vld [vmem:[#allocation9 + $0x48] sm:$0xff]  ;;  %5408 = vmatprep.mubr.msk.f32.mxu0 %vm373_vm0, %v6990_v28  ;;  %2859 = vrot.lane.b32.xlu0 %v7032_v47, %s6601_s29 }
  0xdc   : > { %8282 = vst [vmem:[#allocation34_spill] sm:$0xff] %v7102_v63  ;;  %8283 = vst [vmem:[#allocation35_spill] sm:$0xff] %v7105_v0  ;;  %v1362_v2 = vld [vmem:[#allocation9 + $0x40] sm:$0xff]  ;;  %v7123_v5 = vld [vmem:[%s6937_s25 + $0x68] sm:$0xff]  ;;  %5398 = vmatmul.mubr.msk.f32.gmra.mrb[6].mxu1 %vm373_vm0, %v7083_v60  ;;  %2863 = vrot.lane.b32.xlu1 %v7038_v49, %s6601_s29 }
  0xdd   : > { %410 = vst.msk [vmem:[#allocation2 + $0x58] sm:$0xff] %vm373_vm0, %v7099_v62  ;;  %411 = vst.msk [vmem:[#allocation2 + $0x60] sm:$0xff] %vm373_vm0, %v7102_v63  ;;  %v5880_v4 = vpack.c.bf16 %v1363_v3, %v1362_v2  ;;  %v431_v6 = vld [vmem:[%s6945_s19 + $0x70] sm:$0xff]  ;;  %v705_v9 = vld [vmem:[#allocation10 + $0x18] sm:$0xff]  ;;  %5440 = vmatprep.mubr.msk.f32.mxu1 %vm373_vm0, %v7096_v61 }
  0xde   : > { %412 = vst.msk [vmem:[#allocation2 + $0x68] sm:$0xff] %vm373_vm0, %v7105_v0  ;;  %8284 = vst [vmem:[#allocation36_spill] sm:$0xff] %v7118_v1  ;;  %v7127_v7 = vld [vmem:[%s6937_s25 + $0x70] sm:$0xff]  ;;  %v7144_v12 = vld [vmem:[#allocation2 + $0x18] sm:$0xff]  ;;  %5409 = vmatmul.mubr.msk.f32.vlgmr.msra.gmra.mrb[0].mxu0 %vm373_vm0, %v7011_v38 }
  0xdf   : > { %413 = vst.msk [vmem:[#allocation2 + $0x70] sm:$0xff] %vm373_vm0, %v7118_v1  ;;  %8285 = vst [vmem:[#allocation37_spill] sm:$0xff] %v7123_v5  ;;  %v704_v8 = vld [vmem:[#allocation10 + $0x10] sm:$0xff]  ;;  %5881 = vmatprep.subr.bf16.mxu0 %v5880_v4  ;;  %v1365_v14 = vld [vmem:[#allocation9 + $0x58] sm:$0xff]  ;;  %5411 = vmatprep.mubr.msk.f32.mxu0 %vm373_vm0, %v7019_v41 }
  0xe0   : > { %8286 = vst [vmem:[#allocation38_spill] sm:$0xff] %v7127_v7  ;;  %414 = vst.msk [vmem:[#allocation2 + $0x78] sm:$0xff] %vm373_vm0, %v7123_v5  ;;  %v7142_v10 = vld [vmem:[#allocation2 + $0x10] sm:$0xff]  ;;  %v5876_v11 = vpack.c.bf16 %v705_v9, %v704_v8  ;;  %v1592_v15 = vld [vmem:[#allocation10 + $0x40] sm:$0xff]  ;;  %5883 = vmatpush3.bf16.msra.mxu0 %v5880_v4  ;;  %2867 = vrot.lane.b32.xlu1 %v7068_v55, %s6601_s29 }
  0xe1   : > { %448 = vst.msk [vmem:[#allocation3 + $0x80] sm:$0xff] %vm373_vm0, %v431_v6  ;;  %415 = vst.msk [vmem:[#allocation2 + $0x80] sm:$0xff] %vm373_vm0, %v7127_v7  ;;  %v1364_v13 = vld [vmem:[#allocation9 + $0x50] sm:$0xff]  ;;  %5441 = vmatmul.mubr.msk.f32.vlgmr.msra.gmra.mrb[8].mxu1 %vm373_vm0, %v7142_v10  ;;  %v1593_v16 = vld [vmem:[#allocation10 + $0x48] sm:$0xff]  ;;  %2865 = vrot.lane.b32.xlu0 %v7055_v52, %s6601_s29 }
  0xe2   : > { %5875 = vmatpush3.bf16.msra.mxu1 %v7029_v46  ;;  %v7153_v17 = vld [vmem:[#allocation2 + $0x20] sm:$0xff]  ;;  %5443 = vmatprep.mubr.msk.f32.mxu1 %vm373_vm0, %v7144_v12  ;;  %v7157_v18 = vld [vmem:[#allocation2 + $0x28] sm:$0xff]  ;;  %v5884_v19 = vpack.c.bf16 %v1365_v14, %v1364_v13  ;;  %v5888_v20 = vpack.c.bf16 %v1593_v16, %v1592_v15  ;;  %v432_v23 = vld [vmem:[%s6945_s19 + $0x78] sm:$0xff]  ;;  %s4631_s19 = scalar_lea.sflag [#allocation6], %s6930_s7 }
  0xe3   : > { %5877 = vmatprep.subr.bf16.mxu1 %v5876_v11  ;;  %v1823_v21 = vld [vmem:[#allocation9 + $0x60] sm:$0xff]  ;;  %v1824_v22 = vld [vmem:[#allocation9 + $0x68] sm:$0xff]  ;;  %5412 = vmatmul.mubr.msk.f32.gmra.mrb[2].mxu0 %vm373_vm0, %v7025_v43  ;;  %449 = vst.msk [vmem:[#allocation3 + $0x88] sm:$0xff] %vm373_vm0, %v432_v23  ;;  %v7169_v24 = vld [vmem:[#allocation2 + $0x30] sm:$0xff] }
  0xe4   : > { %5414 = vmatprep.mubr.msk.f32.mxu0 %vm373_vm0, %v7044_v50  ;;  %v7171_v25 = vld [vmem:[#allocation2 + $0x38] sm:$0xff]  ;;  %5885 = vmatprep.subr.bf16.mxu0 %v5884_v19  ;;  %v5896_v26 = vpack.c.bf16 %v1824_v22, %v1823_v21  ;;  %v7186_v28 = vld [vmem:[#allocation2 + $0x40] sm:$0xff]  ;;  %v7188_v29 = vld [vmem:[#allocation2 + $0x48] sm:$0xff] }
  0xe5   : > { %5444 = vmatmul.mubr.msk.f32.gmra.mrb[10].mxu1 %vm373_vm0, %v7153_v17  ;;  %v7174_v27 = vld [vmem:[%s6937_s25 + $0x78] sm:$0xff]  ;;  %5887 = vmatpush3.bf16.msra.mxu0 %v5884_v19  ;;  %v7198_v30 = vld [vmem:[#allocation2 + $0x50] sm:$0xff]  ;;  %v7210_v33 = vld [vmem:[#allocation2 + $0x60] sm:$0xff]  ;;  %s8338_s25 = sld [smem:[#allocation59_spill]] }
  0xe6   : > { %5446 = vmatprep.mubr.msk.f32.mxu1 %vm373_vm0, %v7157_v18  ;;  %5879 = vmatpush3.bf16.msra.mxu1 %v5876_v11  ;;  %8287 = vst [vmem:[#allocation39_spill] sm:$0xff] %v7174_v27  ;;  %416 = vst.msk [vmem:[#allocation2 + $0x88] sm:$0xff] %vm373_vm0, %v7174_v27  ;;  %v7200_v32 = vld [vmem:[#allocation2 + $0x58] sm:$0xff]  ;;  %v7212_v34 = vld [vmem:[#allocation2 + $0x68] sm:$0xff] }
  0xe7   : > { %5889 = vmatprep.subr.bf16.mxu1 %v5888_v20  ;;  %5415 = vmatmul.mubr.msk.f32.gmra.mrb[4].mxu0 %vm373_vm0, %v7061_v53  ;;  %v7222_v37 = vld [vmem:[#allocation2 + $0x70] sm:$0xff]  ;;  %v7224_v40 = vld [vmem:[#allocation2 + $0x78] sm:$0xff]  ;;  %v7238_v2 = vld [vmem:[#allocation2] sm:$0xff] }
  0xe8   : > { %5417 = vmatprep.mubr.msk.f32.mxu0 %vm373_vm0, %v7081_v59  ;;  %5897 = vmatprep.subr.bf16.mxu0 %v5896_v26  ;;  %v7234_v45 = vld [vmem:[#allocation3 + $0x80] sm:$0xff]  ;;  %v1594_v3 = vld [vmem:[#allocation10 + $0x50] sm:$0xff]  ;;  %v1595_v4 = vld [vmem:[#allocation10 + $0x58] sm:$0xff] }
  0xe9   : > { %5447 = vmatmul.mubr.msk.f32.gmra.mrb[12].mxu1 %vm373_vm0, %v7169_v24  ;;  %v7236_v46 = vld [vmem:[#allocation2 + $0x80] sm:$0xff]  ;;  %v5892_v6 = vpack.c.bf16 %v1595_v4, %v1594_v3  ;;  %v1825_v8 = vld [vmem:[#allocation9 + $0x70] sm:$0xff]  ;;  %v1826_v9 = vld [vmem:[#allocation9 + $0x78] sm:$0xff]  ;;  %2871 = vrot.lane.b32.xlu1 %v7076_v57, %s6601_s29 }
  0xea   : > { %5449 = vmatprep.mubr.msk.f32.mxu1 %vm373_vm0, %v7171_v25  ;;  %v2054_v11 = vld [vmem:[#allocation10 + $0x60] sm:$0xff]  ;;  %v2055_v13 = vld [vmem:[#allocation10 + $0x68] sm:$0xff]  ;;  %v2056_v21 = vld [vmem:[#allocation10 + $0x70] sm:$0xff]  ;;  %2869 = vrot.lane.b32.xlu0 %v7073_v56, %s6601_s29 }
  0xeb   : > { %5418 = vmatmul.mubr.msk.f32.gmra.mrb[6].mxu0 %vm373_vm0, %v6996_v31  ;;  %v5904_v14 = vpack.c.bf16 %v2055_v13, %v2054_v11  ;;  %v2285_v15 = vld [vmem:[#allocation9 + $0x80] sm:$0xff]  ;;  %v2286_v16 = vld [vmem:[#allocation9 + $0x88] sm:$0xff]  ;;  %v2057_v22 = vld [vmem:[#allocation10 + $0x78] sm:$0xff]  ;;  %s8339_s2 = smov %s8338_s25  ;;  %s8118_s12 = scalar_lea.hbm %s8338_s25, %s5065_s3 }
  0xec   : > { %5420 = vmatprep.mubr.msk.f32.mxu0 %vm373_vm0, %v7002_v35  ;;  %v5912_v19 = vpack.c.bf16 %v2286_v16, %v2285_v15  ;;  %v5908_v23 = vpack.c.bf16 %v2057_v22, %v2056_v21  ;;  %v2288_v3 = vld [vmem:[#allocation9 + $0x98] sm:$0xff]  ;;  %v2516_v4 = vld [vmem:[#allocation10 + $0x80] sm:$0xff] }
  0xed   : > { %5450 = vmatmul.mubr.msk.f32.gmra.mrb[14].mxu1 %vm373_vm0, %v7186_v28  ;;  %v7378_v13 = vld [vmem:[#allocation2 + $0x88] sm:$0xff]  ;;  %v2519_v15 = vld [vmem:[#allocation10 + $0x98] sm:$0xff]  ;;  %2875 = vrot.lane.b32.xlu1 %v7099_v62, %s6601_s29 }
  0xee   : > { %5452 = vmatprep.mubr.msk.f32.mxu1 %vm373_vm0, %v7188_v29  ;;  %v3020_v21 = vld [vmem:[#allocation12 + $0x18] sm:$0xff]  ;;  %2873 = vrot.lane.b32.xlu0 %v7079_v58, %s6601_s29 }
  0xef   : > { %5421 = vmatmul.mubr.msk.f32.gmra.mrb[8].mxu0 %vm373_vm0, %v7013_v39 }
  0xf0   : > { %5423 = vmatprep.mubr.msk.f32.mxu0 %vm373_vm0, %v7021_v42 }
  0xf1   : > { %5453 = vmatmul.mubr.msk.f32.gmra.mrb[16].mxu1 %vm373_vm0, %v7198_v30  ;;  %2879 = vrot.lane.b32.xlu1 %v7105_v0, %s6601_s29 }
  0xf2   : > { %5455 = vmatprep.mubr.msk.f32.mxu1 %vm373_vm0, %v7200_v32  ;;  %2877 = vrot.lane.b32.xlu0 %v7102_v63, %s6601_s29 }
  0xf3   : > { %5424 = vmatmul.mubr.msk.f32.gmra.mrb[10].mxu0 %vm373_vm0, %v7027_v44 }
  0xf4   : > { %5426 = vmatprep.mubr.msk.f32.mxu0 %vm373_vm0, %v7046_v51 }
  0xf5   : > { %5456 = vmatmul.mubr.msk.f32.gmra.mrb[18].mxu1 %vm373_vm0, %v7210_v33  ;;  %2883 = vrot.lane.b32.xlu1 %v7123_v5, %s6601_s29 }
  0xf6   : > { %5458 = vmatprep.mubr.msk.f32.mxu1 %vm373_vm0, %v7212_v34  ;;  %2881 = vrot.lane.b32.xlu0 %v7118_v1, %s6601_s29  ;;  %v4196_v1 = vld [vmem:[#allocation12 + $0x98] sm:$0xff] }
  0xf7   : > { %5427 = vmatmul.mubr.msk.f32.gmra.mrb[12].mxu0 %vm373_vm0, %v7063_v54 }
  0xf8   : > { %5429 = vmatprep.mubr.msk.f32.mxu0 %vm373_vm0, %v7083_v60 }
  0xf9   : > { %5459 = vmatmul.mubr.msk.f32.gmra.mrb[20].mxu1 %vm373_vm0, %v7222_v37  ;;  %2887 = vrot.lane.b32.xlu1 %v7174_v27, %s6601_s29 }
  0xfa   : > { %5461 = vmatprep.mubr.msk.f32.mxu1 %vm373_vm0, %v7224_v40  ;;  %2885 = vrot.lane.b32.xlu0 %v7127_v7, %s6601_s29  ;;  %s6480_s29 = scalar_lea.vmem %s8120_s24, 2048 }
  0xfb   : > { %5430 = vmatmul.mubr.msk.f32.gmra.mrb[14].mxu0 %vm373_vm0, %v7234_v45  ;;  %p6481_p10 = scmp.ne.s32.totalorder %s8120_s24, %s6480_s29 }
  0xfc   : > { %5504 = vmatprep.mubr.msk.f32.mxu0 %vm373_vm0, %v7011_v38  ;;  %v5900_v38 = vpack.c.bf16 %v1826_v9, %v1825_v8  ;;  %v3017_v8 = vld [vmem:[#allocation12] sm:$0xff]  ;;  %v3018_v9 = vld [vmem:[#allocation12 + $0x8] sm:$0xff] }
  0xfd   : > { %5462 = vmatmul.mubr.msk.f32.gmra.mrb[22].mxu1 %vm373_vm0, %v7236_v46  ;;  %v5928_v11 = vpack.c.bf16 %v3018_v9, %v3017_v8  ;;  %p6482_p0 = pnand %p6481_p10, %p8340_p13 }
  0xfe   : > { %5472 = vmatprep.mubr.msk.f32.mxu1 %vm373_vm0, %v7238_v2 }
  0xff   : > { %5505 = vmatmul.mubr.msk.f32.vlgmr.msra.gmra.mrb[0].mxu0 %vm373_vm0, %v7019_v41  ;;  %p6483_p4 = pneg %p6482_p0 }
 0x100   : > { %5507 = vmatprep.mubr.msk.f32.mxu0 %vm373_vm0, %v7025_v43  ;;  %5899 = vmatpush3.bf16.msra.mxu0 %v5896_v26  ;;  %v2287_v26 = vld [vmem:[#allocation9 + $0x90] sm:$0xff] }
 0x101   : > { %5473 = vmatmul.mubr.msk.f32.vlgmr.msra.gmra.mrb[8].mxu1 %vm373_vm0, %v7096_v61  ;;  %5901 = vmatprep.subr.bf16.mxu0 %v5900_v38 }
 0x102   : > { %5891 = vmatpush3.bf16.msra.mxu1 %v5888_v20  ;;  %5475 = vmatprep.mubr.msk.f32.mxu1 %vm373_vm0, %v7142_v10  ;;  %v7304_v20 = vld [vmem:[#allocation3 + $0x88] sm:$0xff] }
 0x103   : > { %5893 = vmatprep.subr.bf16.mxu1 %v5892_v6  ;;  %5508 = vmatmul.mubr.msk.f32.gmra.mrb[2].mxu0 %vm373_vm0, %v7044_v50 }
 0x104   : > { %5510 = vmatprep.mubr.msk.f32.mxu0 %vm373_vm0, %v7061_v53  ;;  %5903 = vmatpush3.bf16.msra.mxu0 %v5900_v38  ;;  %v1821_v38 = vld [vmem:[#allocation3 + $0x90] sm:$0xff] }
 0x105   : > { %5476 = vmatmul.mubr.msk.f32.gmra.mrb[10].mxu1 %vm373_vm0, %v7144_v12  ;;  %5913 = vmatprep.subr.bf16.mxu0 %v5912_v19 }
 0x106   : > { %5478 = vmatprep.mubr.msk.f32.mxu1 %vm373_vm0, %v7153_v17  ;;  %5895 = vmatpush3.bf16.msra.mxu1 %v5892_v6  ;;  %v2517_v6 = vld [vmem:[#allocation10 + $0x88] sm:$0xff] }
 0x107   : > { %5905 = vmatprep.subr.bf16.mxu1 %v5904_v14  ;;  %5511 = vmatmul.mubr.msk.f32.gmra.mrb[4].mxu0 %vm373_vm0, %v7081_v59 }
 0x108   : > { %5513 = vmatprep.mubr.msk.f32.mxu0 %vm373_vm0, %v6996_v31 }
 0x109   : > { %5479 = vmatmul.mubr.msk.f32.gmra.mrb[12].mxu1 %vm373_vm0, %v7157_v18 }
 0x10a   : > { %5481 = vmatprep.mubr.msk.f32.mxu1 %vm373_vm0, %v7169_v24 }
 0x10b   : > { %5514 = vmatmul.mubr.msk.f32.gmra.mrb[6].mxu0 %vm373_vm0, %v7002_v35 }
 0x10c   : > { %5516 = vmatprep.mubr.msk.f32.mxu0 %vm373_vm0, %v7013_v39 }
 0x10d   : > { %5482 = vmatmul.mubr.msk.f32.gmra.mrb[14].mxu1 %vm373_vm0, %v7171_v25 }
 0x10e   : > { %5484 = vmatprep.mubr.msk.f32.mxu1 %vm373_vm0, %v7186_v28 }
 0x10f   : > { %5517 = vmatmul.mubr.msk.f32.gmra.mrb[8].mxu0 %vm373_vm0, %v7021_v42 }
 0x110   : > { %5519 = vmatprep.mubr.msk.f32.mxu0 %vm373_vm0, %v7027_v44 }
 0x111   : > { %5485 = vmatmul.mubr.msk.f32.gmra.mrb[16].mxu1 %vm373_vm0, %v7188_v29 }
 0x112   : > { %5487 = vmatprep.mubr.msk.f32.mxu1 %vm373_vm0, %v7198_v30 }
 0x113   : > { %5520 = vmatmul.mubr.msk.f32.gmra.mrb[10].mxu0 %vm373_vm0, %v7046_v51 }
 0x114   : > { %5522 = vmatprep.mubr.msk.f32.mxu0 %vm373_vm0, %v7063_v54 }
 0x115   : > { %5488 = vmatmul.mubr.msk.f32.gmra.mrb[18].mxu1 %vm373_vm0, %v7200_v32 }
 0x116   : > { %5490 = vmatprep.mubr.msk.f32.mxu1 %vm373_vm0, %v7210_v33 }
 0x117   : > { %5523 = vmatmul.mubr.msk.f32.gmra.mrb[12].mxu0 %vm373_vm0, %v7083_v60 }
 0x118   : > { %5525 = vmatprep.mubr.msk.f32.mxu0 %vm373_vm0, %v7234_v45 }
 0x119   : > { %5491 = vmatmul.mubr.msk.f32.gmra.mrb[20].mxu1 %vm373_vm0, %v7212_v34 }
 0x11a   : > { %5493 = vmatprep.mubr.msk.f32.mxu1 %vm373_vm0, %v7222_v37 }
 0x11b   : > { %5526 = vmatmul.mubr.msk.f32.gmra.mrb[14].mxu0 %vm373_vm0, %v7304_v20 }
 0x11c   : > { %5568 = vmatprep.mubr.msk.f32.mxu0 %vm373_vm0, %v7019_v41  ;;  %v5916_v41 = vpack.c.bf16 %v2288_v3, %v2287_v26 }
 0x11d   : > { %5494 = vmatmul.mubr.msk.f32.gmra.mrb[22].mxu1 %vm373_vm0, %v7224_v40 }
 0x11e   : > { %5536 = vmatprep.mubr.msk.f32.mxu1 %vm373_vm0, %v7142_v10  ;;  %v5920_v10 = vpack.c.bf16 %v2517_v6, %v2516_v4 }
 0x11f   : > { %5569 = vmatmul.mubr.msk.f32.vlgmr.msra.gmra.mrb[0].mxu0 %vm373_vm0, %v7025_v43 }
 0x120   : > { %5571 = vmatprep.mubr.msk.f32.mxu0 %vm373_vm0, %v7044_v50  ;;  %5915 = vmatpush3.bf16.msra.mxu0 %v5912_v19  ;;  %v3019_v19 = vld [vmem:[#allocation12 + $0x10] sm:$0xff] }
 0x121   : > { %5537 = vmatmul.mubr.msk.f32.vlgmr.msra.gmra.mrb[8].mxu1 %vm373_vm0, %v7144_v12  ;;  %5917 = vmatprep.subr.bf16.mxu0 %v5916_v41 }
 0x122   : > { %5907 = vmatpush3.bf16.msra.mxu1 %v5904_v14  ;;  %5539 = vmatprep.mubr.msk.f32.mxu1 %vm373_vm0, %v7153_v17  ;;  %v2518_v14 = vld [vmem:[#allocation10 + $0x90] sm:$0xff] }
 0x123   : > { %5909 = vmatprep.subr.bf16.mxu1 %v5908_v23  ;;  %5572 = vmatmul.mubr.msk.f32.gmra.mrb[2].mxu0 %vm373_vm0, %v7061_v53  ;;  %v5924_v16 = vpack.c.bf16 %v2519_v15, %v2518_v14 }
 0x124   : > { %5574 = vmatprep.mubr.msk.f32.mxu0 %vm373_vm0, %v7081_v59  ;;  %5919 = vmatpush3.bf16.msra.mxu0 %v5916_v41 }
 0x125   : > { %5540 = vmatmul.mubr.msk.f32.gmra.mrb[10].mxu1 %vm373_vm0, %v7157_v18  ;;  %5929 = vmatprep.subr.bf16.mxu0 %v5928_v11 }
 0x126   : > { %5542 = vmatprep.mubr.msk.f32.mxu1 %vm373_vm0, %v7169_v24  ;;  %5911 = vmatpush3.bf16.msra.mxu1 %v5908_v23 }
 0x127   : > { %5921 = vmatprep.subr.bf16.mxu1 %v5920_v10  ;;  %5575 = vmatmul.mubr.msk.f32.gmra.mrb[4].mxu0 %vm373_vm0, %v6996_v31 }
 0x128   : > { %5577 = vmatprep.mubr.msk.f32.mxu0 %vm373_vm0, %v7002_v35 }
 0x129   : > { %5543 = vmatmul.mubr.msk.f32.gmra.mrb[12].mxu1 %vm373_vm0, %v7171_v25 }
 0x12a   : > { %5545 = vmatprep.mubr.msk.f32.mxu1 %vm373_vm0, %v7186_v28 }
 0x12b   : > { %5578 = vmatmul.mubr.msk.f32.gmra.mrb[6].mxu0 %vm373_vm0, %v7013_v39 }
 0x12c   : > { %5580 = vmatprep.mubr.msk.f32.mxu0 %vm373_vm0, %v7021_v42 }
 0x12d   : > { %5546 = vmatmul.mubr.msk.f32.gmra.mrb[14].mxu1 %vm373_vm0, %v7188_v29 }
 0x12e   : > { %5548 = vmatprep.mubr.msk.f32.mxu1 %vm373_vm0, %v7198_v30 }
 0x12f   : > { %5581 = vmatmul.mubr.msk.f32.gmra.mrb[8].mxu0 %vm373_vm0, %v7027_v44 }
 0x130   : > { %5583 = vmatprep.mubr.msk.f32.mxu0 %vm373_vm0, %v7046_v51 }
 0x131   : > { %5549 = vmatmul.mubr.msk.f32.gmra.mrb[16].mxu1 %vm373_vm0, %v7200_v32 }
 0x132   : > { %5551 = vmatprep.mubr.msk.f32.mxu1 %vm373_vm0, %v7210_v33 }
 0x133   : > { %5584 = vmatmul.mubr.msk.f32.gmra.mrb[10].mxu0 %vm373_vm0, %v7063_v54 }
 0x134   : > { %5586 = vmatprep.mubr.msk.f32.mxu0 %vm373_vm0, %v7083_v60 }
 0x135   : > { %5552 = vmatmul.mubr.msk.f32.gmra.mrb[18].mxu1 %vm373_vm0, %v7212_v34 }
 0x136   : > { %5554 = vmatprep.mubr.msk.f32.mxu1 %vm373_vm0, %v7222_v37 }
 0x137   : > { %5587 = vmatmul.mubr.msk.f32.gmra.mrb[12].mxu0 %vm373_vm0, %v7234_v45 }
 0x138   : > { %5589 = vmatprep.mubr.msk.f32.mxu0 %vm373_vm0, %v7304_v20 }
 0x139   : > { %5555 = vmatmul.mubr.msk.f32.gmra.mrb[20].mxu1 %vm373_vm0, %v7224_v40 }
 0x13a   : > { %5557 = vmatprep.mubr.msk.f32.mxu1 %vm373_vm0, %v7236_v46 }
 0x13b   : > { %5590 = vmatmul.mubr.msk.f32.gmra.mrb[14].mxu0 %vm373_vm0, %v1821_v38 }
 0x13c   : > { %5632 = vmatprep.mubr.msk.f32.mxu0 %vm373_vm0, %v7025_v43  ;;  %v5932_v43 = vpack.c.bf16 %v3020_v21, %v3019_v19 }
 0x13d   : > { %5558 = vmatmul.mubr.msk.f32.gmra.mrb[22].mxu1 %vm373_vm0, %v7378_v13 }
 0x13e   : > { %5600 = vmatprep.mubr.msk.f32.mxu1 %vm373_vm0, %v7144_v12  ;;  %v3312_v12 = vld [vmem:[#allocation12 + $0x28] sm:$0xff] }
 0x13f   : > { %5633 = vmatmul.mubr.msk.f32.vlgmr.msra.gmra.mrb[0].mxu0 %vm373_vm0, %v7044_v50 }
 0x140   : > { %5635 = vmatprep.mubr.msk.f32.mxu0 %vm373_vm0, %v7061_v53  ;;  %5931 = vmatpush3.bf16.msra.mxu0 %v5928_v11 }
 0x141   : > { %5601 = vmatmul.mubr.msk.f32.vlgmr.msra.gmra.mrb[8].mxu1 %vm373_vm0, %v7153_v17  ;;  %5933 = vmatprep.subr.bf16.mxu0 %v5932_v43 }
 0x142   : > { %5923 = vmatpush3.bf16.msra.mxu1 %v5920_v10  ;;  %5603 = vmatprep.mubr.msk.f32.mxu1 %vm373_vm0, %v7157_v18 }
 0x143   : > { %5925 = vmatprep.subr.bf16.mxu1 %v5924_v16  ;;  %5636 = vmatmul.mubr.msk.f32.gmra.mrb[2].mxu0 %vm373_vm0, %v7081_v59 }
 0x144   : > { %5638 = vmatprep.mubr.msk.f32.mxu0 %vm373_vm0, %v6996_v31  ;;  %5935 = vmatpush3.bf16.msra.mxu0 %v5932_v43  ;;  %v7466_v31 = vld [vmem:[#allocation2 + $0x90] sm:$0xff] }
 0x145   : > { %5604 = vmatmul.mubr.msk.f32.gmra.mrb[10].mxu1 %vm373_vm0, %v7169_v24 }
 0x146   : > { %5606 = vmatprep.mubr.msk.f32.mxu1 %vm373_vm0, %v7171_v25  ;;  %5927 = vmatpush3.bf16.msra.mxu1 %v5924_v16 }
 0x147   : > { %5639 = vmatmul.mubr.msk.f32.gmra.mrb[4].mxu0 %vm373_vm0, %v7002_v35  ;;  %v2283_v35 = vld [vmem:[#allocation3 + $0x98] sm:$0xff] }
 0x148   : > { %5641 = vmatprep.mubr.msk.f32.mxu0 %vm373_vm0, %v7013_v39  ;;  %v7505_v39 = vld [vmem:[#allocation2 + $0x98] sm:$0xff] }
 0x149   : > { %5607 = vmatmul.mubr.msk.f32.gmra.mrb[12].mxu1 %vm373_vm0, %v7186_v28 }
 0x14a   : > { %5609 = vmatprep.mubr.msk.f32.mxu1 %vm373_vm0, %v7188_v29 }
 0x14b   : > { %5642 = vmatmul.mubr.msk.f32.gmra.mrb[6].mxu0 %vm373_vm0, %v7021_v42 }
 0x14c   : > { %5644 = vmatprep.mubr.msk.f32.mxu0 %vm373_vm0, %v7027_v44 }
 0x14d   : > { %5610 = vmatmul.mubr.msk.f32.gmra.mrb[14].mxu1 %vm373_vm0, %v7198_v30 }
 0x14e   : > { %5612 = vmatprep.mubr.msk.f32.mxu1 %vm373_vm0, %v7200_v32 }
 0x14f   : > { %5645 = vmatmul.mubr.msk.f32.gmra.mrb[8].mxu0 %vm373_vm0, %v7046_v51 }
 0x150   : > { %5647 = vmatprep.mubr.msk.f32.mxu0 %vm373_vm0, %v7063_v54 }
 0x151   : > { %5613 = vmatmul.mubr.msk.f32.gmra.mrb[16].mxu1 %vm373_vm0, %v7210_v33 }
 0x152   : > { %5615 = vmatprep.mubr.msk.f32.mxu1 %vm373_vm0, %v7212_v34 }
 0x153   : > { %5648 = vmatmul.mubr.msk.f32.gmra.mrb[10].mxu0 %vm373_vm0, %v7083_v60 }
 0x154   : > { %5650 = vmatprep.mubr.msk.f32.mxu0 %vm373_vm0, %v7234_v45 }
 0x155   : > { %5616 = vmatmul.mubr.msk.f32.gmra.mrb[18].mxu1 %vm373_vm0, %v7222_v37 }
 0x156   : > { %5618 = vmatprep.mubr.msk.f32.mxu1 %vm373_vm0, %v7224_v40 }
 0x157   : > { %5651 = vmatmul.mubr.msk.f32.gmra.mrb[12].mxu0 %vm373_vm0, %v7304_v20 }
 0x158   : > { %5653 = vmatprep.mubr.msk.f32.mxu0 %vm373_vm0, %v1821_v38 }
 0x159   : > { %5619 = vmatmul.mubr.msk.f32.gmra.mrb[20].mxu1 %vm373_vm0, %v7236_v46 }
 0x15a   : > { %5621 = vmatprep.mubr.msk.f32.mxu1 %vm373_vm0, %v7378_v13 }
 0x15b   : > { %5654 = vmatmul.mubr.msk.f32.gmra.mrb[14].mxu0 %vm373_vm0, %v2283_v35 }
 0x15c   : > { %5696 = vmatprep.mubr.msk.f32.mxu0 %vm373_vm0, %v7238_v2 }
 0x15d   : > { %5622 = vmatmul.mubr.msk.f32.gmra.mrb[22].mxu1 %vm373_vm0, %v7466_v31 }
 0x15e   : > { %5664 = vmatprep.mubr.msk.f32.mxu1 %vm373_vm0, %v7153_v17  ;;  %v3313_v17 = vld [vmem:[#allocation12 + $0x30] sm:$0xff] }
 0x15f   : > { %5697 = vmatmul.mubr.msk.f32.vlgmr.msra.gmra.mrb[16].mxu0 %vm373_vm0, %v7096_v61  ;;  %v3311_v61 = vld [vmem:[#allocation12 + $0x20] sm:$0xff] }
 0x161   : > { %5665 = vmatmul.mubr.msk.f32.vlgmr.msra.gmra.mrb[8].mxu1 %vm373_vm0, %v7157_v18  ;;  %v5936_v18 = vpack.c.bf16 %v3312_v12, %v3311_v61 }
 0x162   : > { %5667 = vmatprep.mubr.msk.f32.mxu1 %vm373_vm0, %v7169_v24  ;;  %v3314_v24 = vld [vmem:[#allocation12 + $0x38] sm:$0xff] }
 0x163   : > { %5937 = vmatprep.subr.bf16.mxu1 %v5936_v18 }
 0x164   : > { %5939 = vmatpush3.bf16.msra.mxu1 %v5936_v18 }
 0x165   : > { %5668 = vmatmul.mubr.msk.f32.gmra.mrb[10].mxu1 %vm373_vm0, %v7171_v25  ;;  %v5940_v25 = vpack.c.bf16 %v3314_v24, %v3313_v17 }
 0x166   : > { %5670 = vmatprep.mubr.msk.f32.mxu1 %vm373_vm0, %v7186_v28 }
 0x167   : > { %5941 = vmatprep.subr.bf16.mxu1 %v5940_v25 }
 0x168   : > { %5943 = vmatpush3.bf16.msra.mxu1 %v5940_v25 }
 0x169   : > { %5671 = vmatmul.mubr.msk.f32.gmra.mrb[12].mxu1 %vm373_vm0, %v7188_v29 }
 0x16a   : > { %5673 = vmatprep.mubr.msk.f32.mxu1 %vm373_vm0, %v7198_v30 }
 0x16d   : > { %5674 = vmatmul.mubr.msk.f32.gmra.mrb[14].mxu1 %vm373_vm0, %v7200_v32 }
 0x16e   : > { %5676 = vmatprep.mubr.msk.f32.mxu1 %vm373_vm0, %v7210_v33 }
 0x171   : > { %5677 = vmatmul.mubr.msk.f32.gmra.mrb[16].mxu1 %vm373_vm0, %v7212_v34 }
 0x172   : > { %5679 = vmatprep.mubr.msk.f32.mxu1 %vm373_vm0, %v7222_v37  ;;  %v4806_v37 = vld [vmem:[%s8288_s16] ss:$0 sm:$0xff]  ;;  %s6486_s16 = scalar_lea.vmem %s6485_s20, 4096 }
 0x173   : > { %p6488_p11 = scmp.lt.s32.totalorder %s6486_s16, %s6480_s29 }
 0x175   : > { %5680 = vmatmul.mubr.msk.f32.gmra.mrb[18].mxu1 %vm373_vm0, %v7224_v40  ;;  %p6489_p3 = por %p6488_p11, %p6487_p1 }
 0x176   : > { %5682 = vmatprep.mubr.msk.f32.mxu1 %vm373_vm0, %v7236_v46 }
 0x177   : > { %p6490_p7 = pnand %p6489_p3, %p6483_p4 }
 0x179   : > { %5683 = vmatmul.mubr.msk.f32.gmra.mrb[20].mxu1 %vm373_vm0, %v7378_v13 }
 0x17a   : > { %5685 = vmatprep.mubr.msk.f32.mxu1 %vm373_vm0, %v7466_v31 }
 0x17d   : > { %5686 = vmatmul.mubr.msk.f32.gmra.mrb[22].mxu1 %vm373_vm0, %v7505_v39 }
 0x1a3   : > { %v5390_v42 = vpop.f32.mrb[0].mxu1 }
 0x1a4   : > { %v631_v44 = vpop.f32.mrb[1].mxu1  ;;  %v679_v46 = vadd.f32 %v5390_v42, %v4806_v37 }
 0x1a5   : > { %v678_v2 = vadd.f32 %v4806_v37, %v631_v44 }
 0x1a7   : > { %v5393_v50 = vpop.f32.mrb[2].mxu1 }
 0x1a8   : > { %v641_v51 = vpop.f32.mrb[3].mxu1  ;;  %v681_v3 = vadd.f32 %v5393_v50, %v4806_v37 }
 0x1a9   : > { %v680_v4 = vadd.f32 %v4806_v37, %v641_v51 }
 0x1ab   : > { %v5396_v53 = vpop.f32.mrb[4].mxu1 }
 0x1ac   : > { %v651_v54 = vpop.f32.mrb[5].mxu1  ;;  %v683_v9 = vadd.f32 %v5396_v53, %v4806_v37 }
 0x1ad   : > { %v682_v11 = vadd.f32 %v4806_v37, %v651_v54 }
 0x1af   : > { %v5399_v59 = vpop.f32.mrb[6].mxu1 }
 0x1b0   : > { %v661_v60 = vpop.f32.mrb[7].mxu1  ;;  %v685_v16 = vadd.f32 %v5399_v59, %v4806_v37 }
 0x1b1   : > { %v684_v19 = vadd.f32 %v4806_v37, %v661_v60 }
 0x212   : > { %v5634_v28 = vpop.f32.mrb[0].mxu0 }
 0x213   : > { %v2403_v29 = vpop.f32.mrb[1].mxu0  ;;  %v7528_v44 = vadd.f32 %v5634_v28, %v4806_v37 }
 0x214   : > { %v7530_v50 = vadd.f32 %v4806_v37, %v2403_v29 }
 0x216   : > { %v5637_v30 = vpop.f32.mrb[2].mxu0 }
 0x217   : > { %v2413_v32 = vpop.f32.mrb[3].mxu0  ;;  %v7538_v60 = vadd.f32 %v5637_v30, %v4806_v37 }
 0x218   : > { %v7540_v18 = vadd.f32 %v4806_v37, %v2413_v32 }
 0x21a   : > { %v5640_v33 = vpop.f32.mrb[4].mxu0 }
 0x21b   : > { %v2423_v34 = vpop.f32.mrb[5].mxu0 }
 0x21e   : > { %v5643_v40 = vpop.f32.mrb[6].mxu0 }
 0x21f   : > { %v2433_v45 = vpop.f32.mrb[7].mxu0 }
 0x222   : > { %v5646_v20 = vpop.f32.mrb[8].mxu0 }
 0x223   : > { %v7512_v22 = vadd.f32 %v5646_v20, %v679_v46  ;;  %v2443_v23 = vpop.f32.mrb[9].mxu0 }
 0x224   : > { %v7514_v26 = vadd.f32 %v2443_v23, %v678_v2  ;;  %v7544_v2 = vadd.f32 %v5640_v33, %v4806_v37  ;;  %v7546_v23 = vadd.f32 %v4806_v37, %v2423_v34 }
 0x226   : > { %v5649_v6 = vpop.f32.mrb[10].mxu0 }
 0x227   : > { %v7516_v41 = vadd.f32 %v5649_v6, %v681_v3  ;;  %v2453_v10 = vpop.f32.mrb[11].mxu0 }
 0x228   : > { %v7518_v8 = vadd.f32 %v2453_v10, %v680_v4  ;;  %v7550_v10 = vadd.f32 %v5643_v40, %v4806_v37 }
 0x22a   : > { %v5652_v13 = vpop.f32.mrb[12].mxu0 }
 0x22b   : > { %v7520_v38 = vadd.f32 %v5652_v13, %v683_v9  ;;  %v2463_v14 = vpop.f32.mrb[13].mxu0 }
 0x22c   : > { %v7522_v15 = vadd.f32 %v2463_v14, %v682_v11  ;;  %v7552_v11 = vadd.f32 %v4806_v37, %v2433_v45 }
 0x22e   : > { %v5655_v21 = vpop.f32.mrb[14].mxu0 }
 0x22f   : > { %v7524_v43 = vadd.f32 %v5655_v21, %v685_v16  ;;  %v2473_v35 = vpop.f32.mrb[15].mxu0 }
 0x230   : > { %v7526_v42 = vadd.f32 %v2473_v35, %v684_v19  ;;  %v7556_v19 = vpop.permute.xlu1 %2861 }
 0x232   : > { %v7532_v53 = vpop.f32.mrb[16].mxu0 }
 0x233   : > { %v7535_v12 = vpop.f32.mrb[17].mxu0 }
 0x234   : > { %v5666_v51 = vpop.f32.mrb[8].mxu1 }
 0x235   : > { %v2730_v54 = vadd.f32 %v7528_v44, %v5666_v51  ;;  %v2634_v61 = vpop.f32.mrb[9].mxu1 }
 0x236   : > { %v2729_v59 = vadd.f32 %v7530_v50, %v2634_v61 }
 0x237   : > { %v4968_v17 = vmul.f32 -1.442695, %v2730_v54 }
 0x238   : > { %v4967_v24 = vmul.f32 -1.442695, %v2729_v59  ;;  %v5669_v25 = vpop.f32.mrb[10].mxu1 }
 0x239   : > { %6240 = vpow2.f32 %v4968_v17  ;;  %v2732_v28 = vadd.f32 %v7538_v60, %v5669_v25  ;;  %v2644_v29 = vpop.f32.mrb[11].mxu1  ;;  %v2858_v17 = vpop.permute.xlu0 %2857 }
 0x23a   : > { %6242 = vpow2.f32 %v4967_v24  ;;  %v2731_v46 = vadd.f32 %v7540_v18, %v2644_v29 }
 0x23b   : > { %v4970_v20 = vmul.f32 -1.442695, %v2732_v28 }
 0x23c   : > { %v4969_v3 = vmul.f32 -1.442695, %v2731_v46  ;;  %v5672_v30 = vpop.f32.mrb[12].mxu1 }
 0x23d   : > { %6244 = vpow2.f32 %v4970_v20  ;;  %v2734_v32 = vadd.f32 %v7544_v2, %v5672_v30  ;;  %v2654_v4 = vpop.f32.mrb[13].mxu1  ;;  %v2864_v30 = vpop.permute.xlu1 %2863 }
 0x23e   : > { %6246 = vpow2.f32 %v4969_v3  ;;  %v2733_v6 = vadd.f32 %v7546_v23, %v2654_v4 }
 0x23f   : > { %v4972_v9 = vmul.f32 -1.442695, %v2734_v32 }
 0x240   : > { %v4971_v13 = vmul.f32 -1.442695, %v2733_v6  ;;  %v5675_v33 = vpop.f32.mrb[14].mxu1 }
 0x241   : > { %6248 = vpow2.f32 %v4972_v9  ;;  %v2736_v34 = vadd.f32 %v7550_v10, %v5675_v33  ;;  %v2664_v14 = vpop.f32.mrb[15].mxu1 }
 0x242   : > { %6250 = vpow2.f32 %v4971_v13  ;;  %v2735_v16 = vadd.f32 %v7552_v11, %v2664_v14 }
 0x243   : > { %v6241_v21 = vpop.eup %6240  ;;  %v4974_v35 = vmul.f32 -1.442695, %v2736_v34  ;;  %v2860_v34 = vpop.permute.xlu0 %2859 }
 0x244   : > { %v6243_v51 = vpop.eup %6242  ;;  %v2794_v54 = vadd.f32 1.0, %v6241_v21  ;;  %v4973_v40 = vmul.f32 -1.442695, %v2735_v16  ;;  %v5678_v61 = vpop.f32.mrb[16].mxu1 }
 0x245   : > { %v2793_v59 = vadd.f32 1.0, %v6243_v51  ;;  %6252 = vpow2.f32 %v4974_v35  ;;  %v2738_v37 = vadd.f32 %v7512_v22, %v5678_v61  ;;  %v2674_v45 = vpop.f32.mrb[17].mxu1 }
 0x246   : > { %6254 = vrcp.f32 %v2794_v54  ;;  %v2737_v24 = vadd.f32 %v7514_v26, %v2674_v45 }
 0x247   : > { %v6245_v25 = vpop.eup %6244  ;;  %6256 = vrcp.f32 %v2793_v59  ;;  %v4976_v28 = vmul.f32 -1.442695, %v2738_v37  ;;  %v2868_v59 = vpop.permute.xlu1 %2867  ;;  %v3294_v37 = vld [vmem:[#allocation2 + $0x8] sm:$0xff] }
 0x248   : > { %v6247_v29 = vpop.eup %6246  ;;  %v2796_v46 = vadd.f32 1.0, %v6245_v25  ;;  %6258 = vpow2.f32 %v4973_v40  ;;  %v4975_v20 = vmul.f32 -1.442695, %v2737_v24  ;;  %v5681_v3 = vpop.f32.mrb[18].mxu1  ;;  %5728 = vmatprep.mubr.msk.f32.mxu1 %vm373_vm0, %v3294_v37 }
 0x249   : > { %v2795_v32 = vadd.f32 1.0, %v6247_v29  ;;  %6260 = vpow2.f32 %v4976_v28  ;;  %v2740_v4 = vadd.f32 %v7516_v41, %v5681_v3  ;;  %v2684_v6 = vpop.f32.mrb[19].mxu1  ;;  %v2866_v25 = vpop.permute.xlu0 %2865 }
 0x24a   : > { %6262 = vrcp.f32 %v2796_v46  ;;  %v2739_v9 = vadd.f32 %v7518_v8, %v2684_v6 }
 0x24b   : > { %v6249_v13 = vpop.eup %6248  ;;  %6264 = vrcp.f32 %v2795_v32  ;;  %v4978_v33 = vmul.f32 -1.442695, %v2740_v4 }
 0x24c   : > { %v6251_v14 = vpop.eup %6250  ;;  %v2798_v16 = vadd.f32 1.0, %v6249_v13  ;;  %6266 = vpow2.f32 %v4975_v20  ;;  %v4977_v21 = vmul.f32 -1.442695, %v2739_v9  ;;  %v5684_v35 = vpop.f32.mrb[20].mxu1 }
 0x24d   : > { %v2797_v51 = vadd.f32 1.0, %v6251_v14  ;;  %6268 = vpow2.f32 %v4978_v33  ;;  %v2742_v54 = vadd.f32 %v7520_v38, %v5684_v35  ;;  %v2694_v40 = vpop.f32.mrb[21].mxu1 }
 0x24e   : > { %6270 = vrcp.f32 %v2798_v16  ;;  %v2741_v61 = vadd.f32 %v7522_v15, %v2694_v40 }
 0x24f   : > { %v6253_v45 = vpop.eup %6252  ;;  %6272 = vrcp.f32 %v2797_v51  ;;  %v4980_v24 = vmul.f32 -1.442695, %v2742_v54  ;;  %v2872_v54 = vpop.permute.xlu1 %2871 }
 0x250   : > { %v7565_v28 = vpop.eup %6254  ;;  %v2800_v29 = vadd.f32 1.0, %v6253_v45  ;;  %6274 = vpow2.f32 %v4977_v21  ;;  %v4979_v46 = vmul.f32 -1.442695, %v2741_v61  ;;  %v5687_v20 = vpop.f32.mrb[22].mxu1 }
 0x251   : > { %v7567_v3 = vpop.eup %6256  ;;  %6276 = vpow2.f32 %v4980_v24  ;;  %v2906_v32 = vmul.f32 %v7565_v28, %v2860_v34  ;;  %v2744_v4 = vadd.f32 %v7524_v43, %v5687_v20  ;;  %v2704_v6 = vpop.f32.mrb[23].mxu1 }
 0x252   : > { %8289 = vst [vmem:[#allocation40_spill] sm:$0xff] %v7567_v3  ;;  %v6259_v9 = vpop.eup %6258  ;;  %6278 = vrcp.f32 %v2800_v29  ;;  %v2905_v13 = vmul.f32 %v7567_v3, %v2858_v17  ;;  %v2743_v33 = vadd.f32 %v7526_v42, %v2704_v6  ;;  %v2870_v61 = vpop.permute.xlu0 %2869 }
 0x253   : > { %v6261_v14 = vpop.eup %6260  ;;  %v2799_v16 = vadd.f32 1.0, %v6259_v9  ;;  %6280 = vpow2.f32 %v4979_v46  ;;  %v4982_v21 = vmul.f32 -1.442695, %v2744_v4  ;;  %2939 = vrot.lane.b32.xlu1 %v2906_v32, %s6602_s21  ;;  %v2876_v6 = vpop.permute.xlu1 %2875 }
 0x254   : > { %v7574_v35 = vpop.eup %6262  ;;  %v2802_v51 = vadd.f32 1.0, %v6261_v14  ;;  %v4981_v34 = vmul.f32 -1.442695, %v2743_v33  ;;  %2937 = vrot.lane.b32.xlu0 %v2905_v13, %s6602_s21 }
 0x255   : > { %8290 = vst [vmem:[#allocation41_spill] sm:$0xff] %v7574_v35  ;;  %v7577_v40 = vpop.eup %6264  ;;  %6282 = vrcp.f32 %v2799_v16  ;;  %v2908_v17 = vmul.f32 %v7574_v35, %v2864_v30 }
 0x256   : > { %8291 = vst [vmem:[#allocation42_spill] sm:$0xff] %v7577_v40  ;;  %v6267_v37 = vpop.eup %6266  ;;  %6284 = vrcp.f32 %v2802_v51  ;;  %v2907_v45 = vmul.f32 %v7577_v40, %v7556_v19  ;;  %v2874_v33 = vpop.permute.xlu0 %2873 }
 0x257   : > { %v6269_v24 = vpop.eup %6268  ;;  %v2801_v29 = vadd.f32 1.0, %v6267_v37  ;;  %6286 = vpow2.f32 %v4982_v21  ;;  %2943 = vrot.lane.b32.xlu1 %v2908_v17, %s6602_s21  ;;  %v2880_v37 = vpop.permute.xlu1 %2879 }
 0x258   : > { %v7583_v46 = vpop.eup %6270  ;;  %v2804_v20 = vadd.f32 1.0, %v6269_v24  ;;  %6288 = vpow2.f32 %v4981_v34  ;;  %2941 = vrot.lane.b32.xlu0 %v2907_v45, %s6602_s21 }
 0x259   : > { %8292 = vst [vmem:[#allocation43_spill] sm:$0xff] %v7583_v46  ;;  %v7586_v32 = vpop.eup %6272  ;;  %6290 = vrcp.f32 %v2801_v29  ;;  %v2910_v30 = vmul.f32 %v7583_v46, %v2868_v59 }
 0x25a   : > { %8293 = vst [vmem:[#allocation44_spill] sm:$0xff] %v7586_v32  ;;  %v6275_v4 = vpop.eup %6274  ;;  %6292 = vrcp.f32 %v2804_v20  ;;  %v2909_v19 = vmul.f32 %v7586_v32, %v2866_v25  ;;  %v2878_v29 = vpop.permute.xlu0 %2877 }
 0x25b   : > { %v6277_v9 = vpop.eup %6276  ;;  %v2803_v13 = vadd.f32 1.0, %v6275_v4  ;;  %2947 = vrot.lane.b32.xlu1 %v2910_v30, %s6602_s21 }
 0x25c   : > { %v7591_v14 = vpop.eup %6278  ;;  %v2806_v16 = vadd.f32 1.0, %v6277_v9  ;;  %2945 = vrot.lane.b32.xlu0 %v2909_v19, %s6602_s21  ;;  %v3605_v19 = vld [vmem:[#allocation12 + $0x40] sm:$0xff]  ;;  %v3606_v9 = vld [vmem:[#allocation12 + $0x48] sm:$0xff] }
 0x25d   : > { %8294 = vst [vmem:[#allocation45_spill] sm:$0xff] %v7591_v14  ;;  %v6281_v21 = vpop.eup %6280  ;;  %6294 = vrcp.f32 %v2803_v13  ;;  %v2912_v51 = vmul.f32 %v7591_v14, %v2872_v54 }
 0x25e   : > { %6296 = vrcp.f32 %v2806_v16  ;;  %v2805_v59 = vadd.f32 1.0, %v6281_v21  ;;  %v5944_v16 = vpack.c.bf16 %v3606_v9, %v3605_v19  ;;  %v2884_v21 = vpop.permute.xlu1 %2883 }
 0x25f   : > { %v7595_v34 = vpop.eup %6282  ;;  %2951 = vrot.lane.b32.xlu1 %v2912_v51, %s6602_s21  ;;  %v3899_v51 = vld [vmem:[#allocation12 + $0x60] sm:$0xff] }
 0x260   : > { %8295 = vst [vmem:[#allocation46_spill] sm:$0xff] %v7595_v34  ;;  %v7598_v25 = vpop.eup %6284  ;;  %6298 = vrcp.f32 %v2805_v59  ;;  %v2911_v17 = vmul.f32 %v7595_v34, %v2870_v61  ;;  %5945 = vmatprep.subr.bf16.mxu0 %v5944_v16  ;;  %v3900_v59 = vld [vmem:[#allocation12 + $0x68] sm:$0xff] }
 0x261   : > { %8296 = vst [vmem:[#allocation47_spill] sm:$0xff] %v7598_v25  ;;  %v6287_v45 = vpop.eup %6286  ;;  %v2914_v24 = vmul.f32 %v7598_v25, %v2876_v6  ;;  %5947 = vmatpush3.bf16.msra.mxu0 %v5944_v16 }
 0x262   : > { %v6289_v20 = vpop.eup %6288  ;;  %v2808_v30 = vadd.f32 1.0, %v6287_v45  ;;  %2949 = vrot.lane.b32.xlu0 %v2911_v17, %s6602_s21  ;;  %v2882_v45 = vpop.permute.xlu0 %2881 }
 0x263   : > { %v7603_v54 = vpop.eup %6290  ;;  %v2807_v4 = vadd.f32 1.0, %v6289_v20  ;;  %2955 = vrot.lane.b32.xlu1 %v2914_v24, %s6602_s21  ;;  %v5952_v24 = vpack.c.bf16 %v3900_v59, %v3899_v51  ;;  %v3607_v20 = vld [vmem:[#allocation12 + $0x50] sm:$0xff]  ;;  %v2888_v16 = vpop.permute.xlu1 %2887 }
 0x264   : > { %8297 = vst [vmem:[#allocation48_spill] sm:$0xff] %v7603_v54  ;;  %v7606_v13 = vpop.eup %6292  ;;  %6300 = vrcp.f32 %v2808_v30  ;;  %v2913_v61 = vmul.f32 %v7603_v54, %v2874_v33  ;;  %v3608_v30 = vld [vmem:[#allocation12 + $0x58] sm:$0xff] }
 0x265   : > { %8298 = vst [vmem:[#allocation49_spill] sm:$0xff] %v7606_v13  ;;  %6302 = vrcp.f32 %v2807_v4  ;;  %v2916_v6 = vmul.f32 %v7606_v13, %v2880_v37  ;;  %v5948_v37 = vpack.c.bf16 %v3608_v30, %v3607_v20  ;;  %5953 = vmatprep.subr.bf16.mxu1 %v5952_v24  ;;  %v4194_v20 = vld [vmem:[#allocation12 + $0x88] sm:$0xff] }
 0x266   : > { %2953 = vrot.lane.b32.xlu0 %v2913_v61, %s6602_s21 }
 0x267   : > { %v7611_v17 = vpop.eup %6294  ;;  %2959 = vrot.lane.b32.xlu1 %v2916_v6, %s6602_s21  ;;  %5949 = vmatprep.subr.bf16.mxu0 %v5948_v37  ;;  %v2886_v6 = vpop.permute.xlu0 %2885 }
 0x268   : > { %8299 = vst [vmem:[#allocation50_spill] sm:$0xff] %v7611_v17  ;;  %v7614_v33 = vpop.eup %6296  ;;  %v2915_v4 = vmul.f32 %v7611_v17, %v2878_v29  ;;  %5951 = vmatpush3.bf16.msra.mxu0 %v5948_v37 }
 0x269   : > { %8300 = vst [vmem:[#allocation51_spill] sm:$0xff] %v7614_v33  ;;  %v2918_v19 = vmul.f32 %v7614_v33, %v2884_v21 }
 0x26a   : > { %v7618_v9 = vpop.eup %6298  ;;  %2957 = vrot.lane.b32.xlu0 %v2915_v4, %s6602_s21 }
 0x26b   : > { %8301 = vst [vmem:[#allocation52_spill] sm:$0xff] %v7618_v9  ;;  %v2917_v61 = vmul.f32 %v7618_v9, %v2882_v45  ;;  %2963 = vrot.lane.b32.xlu1 %v2918_v19, %s6602_s21  ;;  %v4193_v45 = vld [vmem:[#allocation12 + $0x80] sm:$0xff] }
 0x26c   : > { %v7636_v30 = vpack.c.bf16 %v4194_v20, %v4193_v45 }
 0x26e   : > { %v7623_v51 = vpop.eup %6300  ;;  %2961 = vrot.lane.b32.xlu0 %v2917_v61, %s6602_s21  ;;  %5961 = vmatprep.subr.bf16.mxu0 %v7636_v30 }
 0x26f   : > { %8302 = vst [vmem:[#allocation53_spill] sm:$0xff] %v7623_v51  ;;  %v7626_v29 = vpop.eup %6302  ;;  %v2920_v21 = vmul.f32 %v7623_v51, %v2888_v16 }
 0x270   : > { %8303 = vst [vmem:[#allocation54_spill] sm:$0xff] %v7626_v29  ;;  %v2919_v59 = vmul.f32 %v7626_v29, %v2886_v6 }
 0x271   : > { %2967 = vrot.lane.b32.xlu1 %v2920_v21, %s6602_s21 }
 0x272   : > { %2965 = vrot.lane.b32.xlu0 %v2919_v59, %s6602_s21 }
 0x275   : > { %3232 = vrot.lane.b32.xlu1 %v7532_v53, %s6603_s30  ;;  %v3901_v53 = vld [vmem:[#allocation12 + $0x70] sm:$0xff] }
 0x276   : > { %3230 = vrot.lane.b32.xlu0 %v7535_v12, %s6603_s30  ;;  %v3902_v12 = vld [vmem:[#allocation12 + $0x78] sm:$0xff] }
 0x277   : > { %v5956_v59 = vpack.c.bf16 %v3902_v12, %v3901_v53 }
 0x2c5   : > { %v2940_v4 = vpop.permute.xlu1 %2939 }
 0x2c6   : > { %2986 = vst.msk [vmem:[#allocation2 + $0x18] sm:$0xff] %vm373_vm0, %v2940_v4  ;;  %v2938_v37 = vpop.permute.xlu0 %2937 }
 0x2c7   : > { %2985 = vst.msk [vmem:[#allocation2 + $0x10] sm:$0xff] %vm373_vm0, %v2938_v37 }
 0x2c9   : > { %v2944_v19 = vpop.permute.xlu1 %2943 }
 0x2ca   : > { %2988 = vst.msk [vmem:[#allocation2 + $0x28] sm:$0xff] %vm373_vm0, %v2944_v19  ;;  %v2942_v61 = vpop.permute.xlu0 %2941 }
 0x2cb   : > { %2987 = vst.msk [vmem:[#allocation2 + $0x20] sm:$0xff] %vm373_vm0, %v2942_v61 }
 0x2cd   : > { %v2948_v16 = vpop.permute.xlu1 %2947  ;;  %v7651_v45 = vld [vmem:[#allocation2 + $0x18] sm:$0xff] }
 0x2ce   : > { %2990 = vst.msk [vmem:[#allocation2 + $0x38] sm:$0xff] %vm373_vm0, %v2948_v16  ;;  %v2946_v6 = vpop.permute.xlu0 %2945  ;;  %v7644_v21 = vld [vmem:[#allocation2 + $0x10] sm:$0xff] }
 0x2cf   : > { %2989 = vst.msk [vmem:[#allocation2 + $0x30] sm:$0xff] %vm373_vm0, %v2946_v6  ;;  %5699 = vmatprep.mubr.msk.f32.mxu0 %vm373_vm0, %v7644_v21  ;;  %5729 = vmatmul.mubr.msk.f32.vlgmr.msra.gmra.mrb[24].mxu1 %vm373_vm0, %v7644_v21 }
 0x2d0   : > { %5700 = vmatmul.mubr.msk.f32.gmra.mrb[18].mxu0 %vm373_vm0, %v7651_v45  ;;  %5731 = vmatprep.mubr.msk.f32.mxu1 %vm373_vm0, %v7651_v45 }
 0x2d1   : > { %v2952_v20 = vpop.permute.xlu1 %2951  ;;  %5955 = vmatpush3.bf16.msra.mxu1 %v5952_v24  ;;  %v7664_v37 = vld [vmem:[#allocation2 + $0x28] sm:$0xff] }
 0x2d2   : > { %2992 = vst.msk [vmem:[#allocation2 + $0x48] sm:$0xff] %vm373_vm0, %v2952_v20  ;;  %v7658_v4 = vld [vmem:[#allocation2 + $0x20] sm:$0xff]  ;;  %5957 = vmatprep.subr.bf16.mxu1 %v5956_v59 }
 0x2d3   : > { %5702 = vmatprep.mubr.msk.f32.mxu0 %vm373_vm0, %v7658_v4  ;;  %5732 = vmatmul.mubr.msk.f32.gmra.mrb[26].mxu1 %vm373_vm0, %v7658_v4 }
 0x2d4   : > { %v2950_v19 = vpop.permute.xlu0 %2949  ;;  %5703 = vmatmul.mubr.msk.f32.gmra.mrb[20].mxu0 %vm373_vm0, %v7664_v37  ;;  %5734 = vmatprep.mubr.msk.f32.mxu1 %vm373_vm0, %v7664_v37 }
 0x2d5   : > { %2991 = vst.msk [vmem:[#allocation2 + $0x40] sm:$0xff] %vm373_vm0, %v2950_v19  ;;  %v2956_v24 = vpop.permute.xlu1 %2955  ;;  %5959 = vmatpush3.bf16.msra.mxu1 %v5956_v59  ;;  %v7678_v53 = vld [vmem:[#allocation2 + $0x38] sm:$0xff] }
 0x2d6   : > { %2994 = vst.msk [vmem:[#allocation2 + $0x58] sm:$0xff] %vm373_vm0, %v2956_v24  ;;  %v7672_v61 = vld [vmem:[#allocation2 + $0x30] sm:$0xff] }
 0x2d7   : > { %5705 = vmatprep.mubr.msk.f32.mxu0 %vm373_vm0, %v7672_v61  ;;  %5735 = vmatmul.mubr.msk.f32.gmra.mrb[28].mxu1 %vm373_vm0, %v7672_v61 }
 0x2d8   : > { %v2954_v12 = vpop.permute.xlu0 %2953  ;;  %5706 = vmatmul.mubr.msk.f32.gmra.mrb[22].mxu0 %vm373_vm0, %v7678_v53  ;;  %5737 = vmatprep.mubr.msk.f32.mxu1 %vm373_vm0, %v7678_v53 }
 0x2d9   : > { %2993 = vst.msk [vmem:[#allocation2 + $0x50] sm:$0xff] %vm373_vm0, %v2954_v12  ;;  %v2960_v16 = vpop.permute.xlu1 %2959  ;;  %v7693_v20 = vld [vmem:[#allocation2 + $0x48] sm:$0xff] }
 0x2da   : > { %2996 = vst.msk [vmem:[#allocation2 + $0x68] sm:$0xff] %vm373_vm0, %v2960_v16 }
 0x2dc   : > { %v2958_v6 = vpop.permute.xlu0 %2957  ;;  %v7686_v59 = vld [vmem:[#allocation2 + $0x40] sm:$0xff] }
 0x2dd   : > { %2995 = vst.msk [vmem:[#allocation2 + $0x60] sm:$0xff] %vm373_vm0, %v2958_v6  ;;  %5708 = vmatprep.mubr.msk.f32.mxu0 %vm373_vm0, %v7686_v59  ;;  %5738 = vmatmul.mubr.msk.f32.gmra.mrb[30].mxu1 %vm373_vm0, %v7686_v59  ;;  %v2964_v19 = vpop.permute.xlu1 %2963  ;;  %v7707_v16 = vld [vmem:[#allocation2 + $0x58] sm:$0xff] }
 0x2de   : > { %5709 = vmatmul.mubr.msk.f32.gmra.mrb[24].mxu0 %vm373_vm0, %v7693_v20  ;;  %5740 = vmatprep.mubr.msk.f32.mxu1 %vm373_vm0, %v7693_v20  ;;  %2998 = vst.msk [vmem:[#allocation2 + $0x78] sm:$0xff] %vm373_vm0, %v2964_v19 }
 0x2e0   : > { %v2962_v24 = vpop.permute.xlu0 %2961  ;;  %v7700_v12 = vld [vmem:[#allocation2 + $0x50] sm:$0xff] }
 0x2e1   : > { %2997 = vst.msk [vmem:[#allocation2 + $0x70] sm:$0xff] %vm373_vm0, %v2962_v24  ;;  %5711 = vmatprep.mubr.msk.f32.mxu0 %vm373_vm0, %v7700_v12  ;;  %5741 = vmatmul.mubr.msk.f32.gmra.mrb[32].mxu1 %vm373_vm0, %v7700_v12  ;;  %v3014_v24 = vld [vmem:[#allocation2 + $0x68] sm:$0xff] }
 0x2e2   : > { %5712 = vmatmul.mubr.msk.f32.gmra.mrb[26].mxu0 %vm373_vm0, %v7707_v16  ;;  %5743 = vmatprep.mubr.msk.f32.mxu1 %vm373_vm0, %v7707_v16 }
 0x2e3   : > { %v2968_v6 = vpop.permute.xlu1 %2967 }
 0x2e4   : > { %3000 = vst.msk [vmem:[#allocation2 + $0x88] sm:$0xff] %vm373_vm0, %v2968_v6  ;;  %v2966_v19 = vpop.permute.xlu0 %2965  ;;  %v3013_v7 = vld [vmem:[#allocation2 + $0x60] sm:$0xff]  ;;  %v4195_v6 = vld [vmem:[#allocation12 + $0x90] sm:$0xff] }
 0x2e5   : > { %2999 = vst.msk [vmem:[#allocation2 + $0x80] sm:$0xff] %vm373_vm0, %v2966_v19  ;;  %5714 = vmatprep.mubr.msk.f32.mxu0 %vm373_vm0, %v3013_v7  ;;  %5744 = vmatmul.mubr.msk.f32.gmra.mrb[34].mxu1 %vm373_vm0, %v3013_v7  ;;  %v3016_v29 = vld [vmem:[#allocation2 + $0x78] sm:$0xff]  ;;  %v5964_v51 = vpack.c.bf16 %v4196_v1, %v4195_v6 }
 0x2e6   : > { %5715 = vmatmul.mubr.msk.f32.gmra.mrb[28].mxu0 %vm373_vm0, %v3014_v24  ;;  %5746 = vmatprep.mubr.msk.f32.mxu1 %vm373_vm0, %v3014_v24 }
 0x2e8   : > { %v3015_v27 = vld [vmem:[#allocation2 + $0x70] sm:$0xff] }
 0x2e9   : > { %5717 = vmatprep.mubr.msk.f32.mxu0 %vm373_vm0, %v3015_v27  ;;  %5747 = vmatmul.mubr.msk.f32.gmra.mrb[36].mxu1 %vm373_vm0, %v3015_v27 }
 0x2ea   : > { %5718 = vmatmul.mubr.msk.f32.gmra.mrb[30].mxu0 %vm373_vm0, %v3016_v29  ;;  %5749 = vmatprep.mubr.msk.f32.mxu1 %vm373_vm0, %v3016_v29 }
 0x2eb   : > { %5760 = vmatprep.mubr.msk.f32.mxu0 %vm373_vm0, %v7644_v21  ;;  %v3603_v1 = vld [vmem:[#allocation2 + $0x88] sm:$0xff] }
 0x2ec   : > { %v3309_v19 = vld [vmem:[#allocation2 + $0x80] sm:$0xff] }
 0x2ed   : > { %5750 = vmatmul.mubr.msk.f32.gmra.mrb[38].mxu1 %vm373_vm0, %v3309_v19 }
 0x2ee   : > { %5761 = vmatmul.mubr.msk.f32.vlgmr.msra.gmra.mrb[32].mxu0 %vm373_vm0, %v7651_v45  ;;  %5792 = vmatprep.mubr.msk.f32.mxu1 %vm373_vm0, %v7651_v45 }
 0x2ef   : > { %5763 = vmatprep.mubr.msk.f32.mxu0 %vm373_vm0, %v7658_v4  ;;  %5963 = vmatpush3.bf16.msra.mxu0 %v7636_v30 }
 0x2f0   : > { %5965 = vmatprep.subr.bf16.mxu0 %v5964_v51 }
 0x2f1   : > { %5793 = vmatmul.mubr.msk.f32.vlgmr.msra.gmra.mrb[40].mxu1 %vm373_vm0, %v7658_v4 }
 0x2f2   : > { %5764 = vmatmul.mubr.msk.f32.gmra.mrb[34].mxu0 %vm373_vm0, %v7664_v37  ;;  %5795 = vmatprep.mubr.msk.f32.mxu1 %vm373_vm0, %v7664_v37 }
 0x2f3   : > { %5766 = vmatprep.mubr.msk.f32.mxu0 %vm373_vm0, %v7672_v61  ;;  %5967 = vmatpush3.bf16.msra.mxu0 %v5964_v51 }
 0x2f5   : > { %5796 = vmatmul.mubr.msk.f32.gmra.mrb[42].mxu1 %vm373_vm0, %v7672_v61 }
 0x2f6   : > { %5767 = vmatmul.mubr.msk.f32.gmra.mrb[36].mxu0 %vm373_vm0, %v7678_v53  ;;  %5798 = vmatprep.mubr.msk.f32.mxu1 %vm373_vm0, %v7678_v53 }
 0x2f7   : > { %5769 = vmatprep.mubr.msk.f32.mxu0 %vm373_vm0, %v7686_v59 }
 0x2f9   : > { %5799 = vmatmul.mubr.msk.f32.gmra.mrb[44].mxu1 %vm373_vm0, %v7686_v59 }
 0x2fa   : > { %5770 = vmatmul.mubr.msk.f32.gmra.mrb[38].mxu0 %vm373_vm0, %v7693_v20  ;;  %5801 = vmatprep.mubr.msk.f32.mxu1 %vm373_vm0, %v7693_v20 }
 0x2fb   : > { %5772 = vmatprep.mubr.msk.f32.mxu0 %vm373_vm0, %v7700_v12 }
 0x2fd   : > { %5802 = vmatmul.mubr.msk.f32.gmra.mrb[46].mxu1 %vm373_vm0, %v7700_v12 }
 0x2fe   : > { %5773 = vmatmul.mubr.msk.f32.gmra.mrb[40].mxu0 %vm373_vm0, %v7707_v16  ;;  %5804 = vmatprep.mubr.msk.f32.mxu1 %vm373_vm0, %v7707_v16 }
 0x2ff   : > { %5775 = vmatprep.mubr.msk.f32.mxu0 %vm373_vm0, %v3013_v7 }
 0x301   : > { %5805 = vmatmul.mubr.msk.f32.gmra.mrb[48].mxu1 %vm373_vm0, %v3013_v7 }
 0x302   : > { %5776 = vmatmul.mubr.msk.f32.gmra.mrb[42].mxu0 %vm373_vm0, %v3014_v24  ;;  %5807 = vmatprep.mubr.msk.f32.mxu1 %vm373_vm0, %v3014_v24 }
 0x303   : > { %5778 = vmatprep.mubr.msk.f32.mxu0 %vm373_vm0, %v3015_v27 }
 0x305   : > { %5808 = vmatmul.mubr.msk.f32.gmra.mrb[50].mxu1 %vm373_vm0, %v3015_v27 }
 0x306   : > { %5779 = vmatmul.mubr.msk.f32.gmra.mrb[44].mxu0 %vm373_vm0, %v3016_v29  ;;  %5810 = vmatprep.mubr.msk.f32.mxu1 %vm373_vm0, %v3016_v29 }
 0x307   : > { %5781 = vmatprep.mubr.msk.f32.mxu0 %vm373_vm0, %v3309_v19 }
 0x309   : > { %5811 = vmatmul.mubr.msk.f32.gmra.mrb[52].mxu1 %vm373_vm0, %v3309_v19 }
 0x30a   : > { %5782 = vmatmul.mubr.msk.f32.gmra.mrb[46].mxu0 %vm373_vm0, %v3603_v1  ;;  %5813 = vmatprep.mubr.msk.f32.mxu1 %vm373_vm0, %v3603_v1 }
 0x30b   : > { %5824 = vmatprep.mubr.msk.f32.mxu0 %vm373_vm0, %v7658_v4 }
 0x30d   : > { %5814 = vmatmul.mubr.msk.f32.gmra.mrb[54].mxu1 %vm373_vm0, %v7466_v31 }
 0x30e   : > { %5825 = vmatmul.mubr.msk.f32.vlgmr.msra.gmra.mrb[48].mxu0 %vm373_vm0, %v7664_v37 }
 0x30f   : > { %5827 = vmatprep.mubr.msk.f32.mxu0 %vm373_vm0, %v7672_v61 }
 0x312   : > { %5828 = vmatmul.mubr.msk.f32.gmra.mrb[50].mxu0 %vm373_vm0, %v7678_v53 }
 0x313   : > { %5830 = vmatprep.mubr.msk.f32.mxu0 %vm373_vm0, %v7686_v59 }
 0x316   : > { %5831 = vmatmul.mubr.msk.f32.gmra.mrb[52].mxu0 %vm373_vm0, %v7693_v20 }
 0x317   : > { %5833 = vmatprep.mubr.msk.f32.mxu0 %vm373_vm0, %v7700_v12 }
 0x31a   : > { %5834 = vmatmul.mubr.msk.f32.gmra.mrb[54].mxu0 %vm373_vm0, %v7707_v16 }
 0x31b   : > { %5836 = vmatprep.mubr.msk.f32.mxu0 %vm373_vm0, %v3013_v7 }
 0x31e   : > { %5837 = vmatmul.mubr.msk.f32.gmra.mrb[56].mxu0 %vm373_vm0, %v3014_v24 }
 0x31f   : > { %5839 = vmatprep.mubr.msk.f32.mxu0 %vm373_vm0, %v3015_v27 }
 0x322   : > { %5840 = vmatmul.mubr.msk.f32.gmra.mrb[58].mxu0 %vm373_vm0, %v3016_v29 }
 0x323   : > { %5842 = vmatprep.mubr.msk.f32.mxu0 %vm373_vm0, %v3309_v19 }
 0x326   : > { %5843 = vmatmul.mubr.msk.f32.gmra.mrb[60].mxu0 %vm373_vm0, %v3603_v1 }
 0x327   : > { %5845 = vmatprep.mubr.msk.f32.mxu0 %vm373_vm0, %v7466_v31 }
 0x32a   : > { %5846 = vmatmul.mubr.msk.f32.gmra.mrb[62].mxu0 %vm373_vm0, %v7505_v39 }
 0x3a2   : > { %v5730_v51 = vpop.f32.mrb[24].mxu1 }
 0x3a3   : > { %v5701_v30 = vpop.f32.mrb[18].mxu0  ;;  %3526 = vrot.lane.b32.xlu1 %v5730_v51, %s6603_s30  ;;  %v3429_v7 = vpop.f32.mrb[25].mxu1 }
 0x3a4   : > { %v3145_v21 = vpop.f32.mrb[19].mxu0  ;;  %3524 = vrot.lane.b32.xlu0 %v3429_v7, %s6603_s30 }
 0x3a6   : > { %v5733_v27 = vpop.f32.mrb[26].mxu1 }
 0x3a7   : > { %v5704_v29 = vpop.f32.mrb[20].mxu0  ;;  %3236 = vrot.lane.b32.xlu1 %v5701_v30, %s6603_s30  ;;  %v3439_v45 = vpop.f32.mrb[27].mxu1 }
 0x3a8   : > { %v3155_v4 = vpop.f32.mrb[21].mxu0  ;;  %3234 = vrot.lane.b32.xlu0 %v3145_v21, %s6603_s30 }
 0x3aa   : > { %v5736_v31 = vpop.f32.mrb[28].mxu1 }
 0x3ab   : > { %v5707_v37 = vpop.f32.mrb[22].mxu0  ;;  %3530 = vrot.lane.b32.xlu1 %v5733_v27, %s6603_s30  ;;  %v3449_v39 = vpop.f32.mrb[29].mxu1 }
 0x3ac   : > { %v3165_v61 = vpop.f32.mrb[23].mxu0  ;;  %3528 = vrot.lane.b32.xlu0 %v3439_v45, %s6603_s30 }
 0x3af   : > { %3240 = vrot.lane.b32.xlu1 %v5704_v29, %s6603_s30 }
 0x3b0   : > { %v5739_v53 = vpop.f32.mrb[30].mxu1  ;;  %3238 = vrot.lane.b32.xlu0 %v3155_v4, %s6603_s30 }
 0x3b1   : > { %v5710_v59 = vpop.f32.mrb[24].mxu0  ;;  %v3459_v20 = vpop.f32.mrb[31].mxu1 }
 0x3b2   : > { %v3175_v12 = vpop.f32.mrb[25].mxu0 }
 0x3b3   : > { %3534 = vrot.lane.b32.xlu1 %v5736_v31, %s6603_s30 }
 0x3b4   : > { %v5742_v16 = vpop.f32.mrb[32].mxu1  ;;  %3532 = vrot.lane.b32.xlu0 %v3449_v39, %s6603_s30 }
 0x3b5   : > { %v5713_v24 = vpop.f32.mrb[26].mxu0  ;;  %v3469_v6 = vpop.f32.mrb[33].mxu1 }
 0x3b6   : > { %v3185_v19 = vpop.f32.mrb[27].mxu0 }
 0x3b7   : > { %3244 = vrot.lane.b32.xlu1 %v5707_v37, %s6603_s30 }
 0x3b8   : > { %v5745_v1 = vpop.f32.mrb[34].mxu1  ;;  %3242 = vrot.lane.b32.xlu0 %v3165_v61, %s6603_s30 }
 0x3b9   : > { %v5716_v51 = vpop.f32.mrb[28].mxu0  ;;  %v3479_v30 = vpop.f32.mrb[35].mxu1 }
 0x3ba   : > { %v3195_v7 = vpop.f32.mrb[29].mxu0 }
 0x3bb   : > { %3538 = vrot.lane.b32.xlu1 %v5739_v53, %s6603_s30 }
 0x3bc   : > { %v5748_v21 = vpop.f32.mrb[36].mxu1  ;;  %3536 = vrot.lane.b32.xlu0 %v3459_v20, %s6603_s30 }
 0x3bd   : > { %v5719_v27 = vpop.f32.mrb[30].mxu0  ;;  %v3489_v29 = vpop.f32.mrb[37].mxu1 }
 0x3be   : > { %v3205_v45 = vpop.f32.mrb[31].mxu0 }
 0x3bf   : > { %3248 = vrot.lane.b32.xlu1 %v5710_v59, %s6603_s30 }
 0x3c0   : > { %v5751_v4 = vpop.f32.mrb[38].mxu1  ;;  %3246 = vrot.lane.b32.xlu0 %v3175_v12, %s6603_s30 }
 0x3c1   : > { %v5762_v31 = vpop.f32.mrb[32].mxu0  ;;  %v3499_v37 = vpop.f32.mrb[39].mxu1 }
 0x3c2   : > { %v3723_v39 = vpop.f32.mrb[33].mxu0 }
 0x3c3   : > { %3542 = vrot.lane.b32.xlu1 %v5742_v16, %s6603_s30 }
 0x3c4   : > { %v5794_v61 = vpop.f32.mrb[40].mxu1  ;;  %3540 = vrot.lane.b32.xlu0 %v3469_v6, %s6603_s30 }
 0x3c5   : > { %v5765_v53 = vpop.f32.mrb[34].mxu0  ;;  %v4017_v5 = vpop.f32.mrb[41].mxu1 }
 0x3c6   : > { %v3733_v9 = vpop.f32.mrb[35].mxu0 }
 0x3c7   : > { %3252 = vrot.lane.b32.xlu1 %v5713_v24, %s6603_s30 }
 0x3c8   : > { %v5797_v20 = vpop.f32.mrb[42].mxu1  ;;  %3250 = vrot.lane.b32.xlu0 %v3185_v19, %s6603_s30 }
 0x3c9   : > { %v5768_v59 = vpop.f32.mrb[36].mxu0  ;;  %v4027_v63 = vpop.f32.mrb[43].mxu1 }
 0x3ca   : > { %v3743_v33 = vpop.f32.mrb[37].mxu0 }
 0x3cb   : > { %3546 = vrot.lane.b32.xlu1 %v5745_v1, %s6603_s30 }
 0x3cc   : > { %v5800_v12 = vpop.f32.mrb[44].mxu1  ;;  %3544 = vrot.lane.b32.xlu0 %v3479_v30, %s6603_s30 }
 0x3cd   : > { %v5771_v16 = vpop.f32.mrb[38].mxu0  ;;  %v4037_v0 = vpop.f32.mrb[45].mxu1 }
 0x3ce   : > { %v3753_v17 = vpop.f32.mrb[39].mxu0 }
 0x3cf   : > { %3256 = vrot.lane.b32.xlu1 %v5716_v51, %s6603_s30 }
 0x3d0   : > { %v5803_v6 = vpop.f32.mrb[46].mxu1  ;;  %3254 = vrot.lane.b32.xlu0 %v3195_v7, %s6603_s30 }
 0x3d1   : > { %v5774_v24 = vpop.f32.mrb[40].mxu0  ;;  %v4047_v58 = vpop.f32.mrb[47].mxu1 }
 0x3d2   : > { %v3763_v13 = vpop.f32.mrb[41].mxu0 }
 0x3d3   : > { %3550 = vrot.lane.b32.xlu1 %v5748_v21, %s6603_s30 }
 0x3d4   : > { %v5806_v19 = vpop.f32.mrb[48].mxu1  ;;  %3548 = vrot.lane.b32.xlu0 %v3489_v29, %s6603_s30 }
 0x3d5   : > { %v5777_v1 = vpop.f32.mrb[42].mxu0  ;;  %v4057_v62 = vpop.f32.mrb[49].mxu1 }
 0x3d6   : > { %v3773_v54 = vpop.f32.mrb[43].mxu0 }
 0x3d7   : > { %3260 = vrot.lane.b32.xlu1 %v5719_v27, %s6603_s30 }
 0x3d8   : > { %v5809_v30 = vpop.f32.mrb[50].mxu1  ;;  %3258 = vrot.lane.b32.xlu0 %v3205_v45, %s6603_s30 }
 0x3d9   : > { %v5780_v51 = vpop.f32.mrb[44].mxu0  ;;  %v4067_v56 = vpop.f32.mrb[51].mxu1 }
 0x3da   : > { %v3783_v25 = vpop.f32.mrb[45].mxu0 }
 0x3db   : > { %3554 = vrot.lane.b32.xlu1 %v5751_v4, %s6603_s30 }
 0x3dc   : > { %v5812_v7 = vpop.f32.mrb[52].mxu1  ;;  %3552 = vrot.lane.b32.xlu0 %v3499_v37, %s6603_s30 }
 0x3dd   : > { %v5783_v21 = vpop.f32.mrb[46].mxu0  ;;  %v4077_v57 = vpop.f32.mrb[53].mxu1 }
 0x3de   : > { %v3793_v34 = vpop.f32.mrb[47].mxu0 }
 0x3df   : > { %3820 = vrot.lane.b32.xlu1 %v5762_v31, %s6603_s30 }
 0x3e0   : > { %3818 = vrot.lane.b32.xlu0 %v3723_v39, %s6603_s30  ;;  %v5815_v29 = vpop.f32.mrb[54].mxu1 }
 0x3e1   : > { %v5826_v27 = vpop.f32.mrb[48].mxu0  ;;  %v4087_v52 = vpop.f32.mrb[55].mxu1 }
 0x3e2   : > { %v4311_v14 = vpop.f32.mrb[49].mxu0 }
 0x3e3   : > { %4114 = vrot.lane.b32.xlu1 %v5794_v61, %s6603_s30 }
 0x3e4   : > { %4112 = vrot.lane.b32.xlu0 %v4017_v5, %s6603_s30 }
 0x3e5   : > { %v5829_v45 = vpop.f32.mrb[50].mxu0 }
 0x3e6   : > { %v4321_v4 = vpop.f32.mrb[51].mxu0 }
 0x3e7   : > { %3824 = vrot.lane.b32.xlu1 %v5765_v53, %s6603_s30 }
 0x3e8   : > { %3822 = vrot.lane.b32.xlu0 %v3733_v9, %s6603_s30 }
 0x3e9   : > { %v5832_v37 = vpop.f32.mrb[52].mxu0 }
 0x3ea   : > { %v4331_v55 = vpop.f32.mrb[53].mxu0 }
 0x3eb   : > { %4118 = vrot.lane.b32.xlu1 %v5797_v20, %s6603_s30 }
 0x3ec   : > { %4116 = vrot.lane.b32.xlu0 %v4027_v63, %s6603_s30 }
 0x3ed   : > { %v5835_v31 = vpop.f32.mrb[54].mxu0 }
 0x3ee   : > { %v7841_v39 = vpop.f32.mrb[55].mxu0 }
 0x3ef   : > { %3828 = vrot.lane.b32.xlu1 %v5768_v59, %s6603_s30 }
 0x3f0   : > { %3826 = vrot.lane.b32.xlu0 %v3743_v33, %s6603_s30 }
 0x3f1   : > { %v7845_v5 = vpop.f32.mrb[56].mxu0 }
 0x3f2   : > { %v7847_v61 = vpop.f32.mrb[57].mxu0 }
 0x3f3   : > { %4122 = vrot.lane.b32.xlu1 %v5800_v12, %s6603_s30 }
 0x3f4   : > { %4120 = vrot.lane.b32.xlu0 %v4037_v0, %s6603_s30  ;;  %v7879_v0 = vpop.permute.xlu0 %3230 }
 0x3f5   : > { %v7851_v9 = vpop.f32.mrb[58].mxu0 }
 0x3f6   : > { %v7853_v53 = vpop.f32.mrb[59].mxu0 }
 0x3f7   : > { %3832 = vrot.lane.b32.xlu1 %v5771_v16, %s6603_s30 }
 0x3f8   : > { %3830 = vrot.lane.b32.xlu0 %v3753_v17, %s6603_s30 }
 0x3f9   : > { %v7857_v63 = vpop.f32.mrb[60].mxu0 }
 0x3fa   : > { %v7859_v20 = vpop.f32.mrb[61].mxu0 }
 0x3fb   : > { %4126 = vrot.lane.b32.xlu1 %v5803_v6, %s6603_s30 }
 0x3fc   : > { %4124 = vrot.lane.b32.xlu0 %v4047_v58, %s6603_s30  ;;  %v7877_v58 = vpop.permute.xlu1 %3232 }
 0x3fd   : > { %v7863_v33 = vpop.f32.mrb[62].mxu0 }
 0x3fe   : > { %v7865_v59 = vpop.f32.mrb[63].mxu0 }
 0x3ff   : > { %3836 = vrot.lane.b32.xlu1 %v5774_v24, %s6603_s30 }
 0x400   : > { %3834 = vrot.lane.b32.xlu0 %v3763_v13, %s6603_s30 }
 0x403   : > { %4130 = vrot.lane.b32.xlu1 %v5806_v19, %s6603_s30 }
 0x404   : > { %4128 = vrot.lane.b32.xlu0 %v4057_v62, %s6603_s30 }
 0x407   : > { %3840 = vrot.lane.b32.xlu1 %v5777_v1, %s6603_s30 }
 0x408   : > { %3838 = vrot.lane.b32.xlu0 %v3773_v54, %s6603_s30 }
 0x40b   : > { %4134 = vrot.lane.b32.xlu1 %v5809_v30, %s6603_s30 }
 0x40c   : > { %4132 = vrot.lane.b32.xlu0 %v4067_v56, %s6603_s30 }
 0x40f   : > { %3844 = vrot.lane.b32.xlu1 %v5780_v51, %s6603_s30 }
 0x410   : > { %3842 = vrot.lane.b32.xlu0 %v3783_v25, %s6603_s30 }
 0x413   : > { %4138 = vrot.lane.b32.xlu1 %v5812_v7, %s6603_s30 }
 0x414   : > { %4136 = vrot.lane.b32.xlu0 %v4077_v57, %s6603_s30 }
 0x415   : > { %v7883_v62 = vpop.permute.xlu1 %3526 }
 0x416   : > { %v7885_v13 = vpop.permute.xlu0 %3524 }
 0x417   : > { %3848 = vrot.lane.b32.xlu1 %v5783_v21, %s6603_s30 }
 0x418   : > { %3846 = vrot.lane.b32.xlu0 %v3793_v34, %s6603_s30 }
 0x419   : > { %v3237_v56 = vpop.permute.xlu1 %3236 }
 0x41a   : > { %v3235_v54 = vpop.permute.xlu0 %3234  ;;  %v3281_v25 = vadd.f32 %v7538_v60, %v3237_v56 }
 0x41b   : > { %4142 = vrot.lane.b32.xlu1 %v5815_v29, %s6603_s30  ;;  %v3280_v17 = vadd.f32 %v7540_v18, %v3235_v54 }
 0x41c   : > { %4140 = vrot.lane.b32.xlu0 %v4087_v52, %s6603_s30 }
 0x41d   : > { %v3531_v12 = vpop.permute.xlu1 %3530 }
 0x41e   : > { %v7893_v57 = vadd.f32 %v3531_v12, %v3281_v25  ;;  %v3529_v16 = vpop.permute.xlu0 %3528 }
 0x41f   : > { %v7895_v6 = vadd.f32 %v3529_v16, %v3280_v17  ;;  %4408 = vrot.lane.b32.xlu1 %v5826_v27, %s6603_s30 }
 0x420   : > { %4406 = vrot.lane.b32.xlu0 %v4311_v14, %s6603_s30 }
 0x421   : > { %v3241_v34 = vpop.permute.xlu1 %3240 }
 0x422   : > { %v3239_v24 = vpop.permute.xlu0 %3238  ;;  %v3283_v60 = vadd.f32 %v7544_v2, %v3241_v34 }
 0x423   : > { %4412 = vrot.lane.b32.xlu1 %v5829_v45, %s6603_s30  ;;  %v3282_v52 = vadd.f32 %v7546_v23, %v3239_v24 }
 0x424   : > { %4410 = vrot.lane.b32.xlu0 %v4321_v4, %s6603_s30 }
 0x425   : > { %v3535_v18 = vpop.permute.xlu1 %3534 }
 0x426   : > { %v7903_v19 = vadd.f32 %v3535_v18, %v3283_v60  ;;  %v3533_v1 = vpop.permute.xlu0 %3532 }
 0x427   : > { %v7905_v30 = vadd.f32 %v3533_v1, %v3282_v52  ;;  %4416 = vrot.lane.b32.xlu1 %v5832_v37, %s6603_s30 }
 0x428   : > { %4414 = vrot.lane.b32.xlu0 %v4331_v55, %s6603_s30 }
 0x429   : > { %v3245_v14 = vpop.permute.xlu1 %3244 }
 0x42a   : > { %v3243_v51 = vpop.permute.xlu0 %3242  ;;  %v3285_v2 = vadd.f32 %v7550_v10, %v3245_v14 }
 0x42b   : > { %4420 = vrot.lane.b32.xlu1 %v5835_v31, %s6603_s30  ;;  %v3284_v23 = vadd.f32 %v7552_v11, %v3243_v51 }
 0x42c   : > { %4418 = vrot.lane.b32.xlu0 %v7841_v39, %s6603_s30 }
 0x42d   : > { %v3539_v7 = vpop.permute.xlu1 %3538 }
 0x42e   : > { %v7914_v21 = vadd.f32 %v3539_v7, %v3285_v2  ;;  %v3537_v29 = vpop.permute.xlu0 %3536 }
 0x42f   : > { %v7916_v27 = vadd.f32 %v3537_v29, %v3284_v23  ;;  %4424 = vrot.lane.b32.xlu1 %v7845_v5, %s6603_s30 }
 0x430   : > { %4422 = vrot.lane.b32.xlu0 %v7847_v61, %s6603_s30 }
 0x431   : > { %v3249_v55 = vpop.permute.xlu1 %3248 }
 0x432   : > { %v3247_v45 = vpop.permute.xlu0 %3246  ;;  %v3287_v10 = vadd.f32 %v7512_v22, %v3249_v55 }
 0x433   : > { %4428 = vrot.lane.b32.xlu1 %v7851_v9, %s6603_s30  ;;  %v3286_v11 = vadd.f32 %v7514_v26, %v3247_v45 }
 0x434   : > { %4426 = vrot.lane.b32.xlu0 %v7853_v53, %s6603_s30 }
 0x435   : > { %v3543_v4 = vpop.permute.xlu1 %3542 }
 0x436   : > { %v7928_v37 = vadd.f32 %v3543_v4, %v3287_v10  ;;  %v3541_v31 = vpop.permute.xlu0 %3540 }
 0x437   : > { %v7930_v39 = vadd.f32 %v3541_v31, %v3286_v11  ;;  %4432 = vrot.lane.b32.xlu1 %v7857_v63, %s6603_s30 }
 0x438   : > { %4430 = vrot.lane.b32.xlu0 %v7859_v20, %s6603_s30 }
 0x439   : > { %v3253_v5 = vpop.permute.xlu1 %3252 }
 0x43a   : > { %v3251_v61 = vpop.permute.xlu0 %3250  ;;  %v3289_v22 = vadd.f32 %v7516_v41, %v3253_v5 }
 0x43b   : > { %4436 = vrot.lane.b32.xlu1 %v7863_v33, %s6603_s30  ;;  %v3288_v26 = vadd.f32 %v7518_v8, %v3251_v61 }
 0x43c   : > { %4434 = vrot.lane.b32.xlu0 %v7865_v59, %s6603_s30 }
 0x43d   : > { %v3547_v9 = vpop.permute.xlu1 %3546 }
 0x43e   : > { %v7942_v53 = vadd.f32 %v3547_v9, %v3289_v22  ;;  %v3545_v56 = vpop.permute.xlu0 %3544 }
 0x43f   : > { %v7944_v63 = vadd.f32 %v3545_v56, %v3288_v26 }
 0x441   : > { %v3257_v54 = vpop.permute.xlu1 %3256 }
 0x442   : > { %v3255_v20 = vpop.permute.xlu0 %3254  ;;  %v3291_v25 = vadd.f32 %v7520_v38, %v3257_v54 }
 0x443   : > { %v3290_v17 = vadd.f32 %v7522_v15, %v3255_v20 }
 0x445   : > { %v3551_v33 = vpop.permute.xlu1 %3550 }
 0x446   : > { %v7948_v12 = vadd.f32 %v3551_v33, %v3291_v25  ;;  %v3549_v41 = vpop.permute.xlu0 %3548 }
 0x447   : > { %v7950_v16 = vadd.f32 %v3549_v41, %v3290_v17 }
 0x449   : > { %v3261_v59 = vpop.permute.xlu1 %3260 }
 0x44a   : > { %v3259_v8 = vpop.permute.xlu0 %3258  ;;  %v3293_v34 = vadd.f32 %v7524_v43, %v3261_v59 }
 0x44b   : > { %v3292_v24 = vadd.f32 %v7526_v42, %v3259_v8  ;;  %v3279_v8 = vadd.f32 %v7528_v44, %v7877_v58 }
 0x44d   : > { %v3555_v60 = vpop.permute.xlu1 %3554 }
 0x44e   : > { %v7954_v52 = vadd.f32 %v3555_v60, %v3293_v34  ;;  %v3553_v18 = vpop.permute.xlu0 %3552  ;;  %v3573_v60 = vadd.f32 %v7883_v62, %v3279_v8 }
 0x44f   : > { %v7956_v1 = vadd.f32 %v3553_v18, %v3292_v24  ;;  %v3278_v24 = vadd.f32 %v7530_v50, %v7879_v0 }
 0x451   : > { %v3821_v38 = vpop.permute.xlu1 %3820  ;;  %v3572_v18 = vadd.f32 %v7885_v13, %v3278_v24 }
 0x452   : > { %v3819_v15 = vpop.permute.xlu0 %3818  ;;  %v3867_v48 = vadd.f32 %v3821_v38, %v3573_v60 }
 0x453   : > { %v3866_v49 = vadd.f32 %v3819_v15, %v3572_v18 }
 0x455   : > { %v4115_v14 = vpop.permute.xlu1 %4114 }
 0x456   : > { %v4113_v51 = vpop.permute.xlu0 %4112  ;;  %v4161_v40 = vadd.f32 %v4115_v14, %v3867_v48 }
 0x457   : > { %v4160_v36 = vadd.f32 %v4113_v51, %v3866_v49 }
 0x459   : > { %v3825_v2 = vpop.permute.xlu1 %3824 }
 0x45a   : > { %v3823_v23 = vpop.permute.xlu0 %3822  ;;  %v3869_v44 = vadd.f32 %v3825_v2, %v7893_v57 }
 0x45b   : > { %v3868_v3 = vadd.f32 %v3823_v23, %v7895_v6 }
 0x45d   : > { %v4119_v7 = vpop.permute.xlu1 %4118 }
 0x45e   : > { %v4117_v29 = vpop.permute.xlu0 %4116  ;;  %v4163_v0 = vadd.f32 %v4119_v7, %v3869_v44 }
 0x45f   : > { %v4162_v62 = vadd.f32 %v4117_v29, %v3868_v3 }
 0x461   : > { %v3829_v55 = vpop.permute.xlu1 %3828 }
 0x462   : > { %v3827_v45 = vpop.permute.xlu0 %3826  ;;  %v3871_v38 = vadd.f32 %v3829_v55, %v7903_v19 }
 0x463   : > { %v3870_v48 = vadd.f32 %v3827_v45, %v7905_v30 }
 0x465   : > { %v4123_v10 = vpop.permute.xlu1 %4122 }
 0x466   : > { %v4121_v43 = vpop.permute.xlu0 %4120  ;;  %v4165_v15 = vadd.f32 %v4123_v10, %v3871_v38 }
 0x467   : > { %v4164_v57 = vadd.f32 %v4121_v43, %v3870_v48 }
 0x469   : > { %v3833_v11 = vpop.permute.xlu1 %3832 }
 0x46a   : > { %v3831_v42 = vpop.permute.xlu0 %3830 }
 0x46b   : > { %v3872_v3 = vadd.f32 %v3831_v42, %v7916_v27 }
 0x46d   : > { %v4127_v4 = vpop.permute.xlu1 %4126 }
 0x46e   : > { %v4125_v31 = vpop.permute.xlu0 %4124 }
 0x46f   : > { %v4166_v19 = vadd.f32 %v4125_v31, %v3872_v3 }
 0x471   : > { %v3837_v5 = vpop.permute.xlu1 %3836 }
 0x472   : > { %v3835_v61 = vpop.permute.xlu0 %3834  ;;  %v3875_v30 = vadd.f32 %v3837_v5, %v7928_v37 }
 0x473   : > { %v3874_v55 = vadd.f32 %v3835_v61, %v7930_v39 }
 0x475   : > { %v4131_v22 = vpop.permute.xlu1 %4130 }
 0x476   : > { %v7958_v26 = vpop.permute.xlu0 %4128 }
 0x477   : > { %v4168_v27 = vadd.f32 %v7958_v26, %v3874_v55 }
 0x479   : > { %v7960_v9 = vpop.permute.xlu1 %3840 }
 0x47a   : > { %v7962_v56 = vpop.permute.xlu0 %3838  ;;  %v3877_v37 = vadd.f32 %v7960_v9, %v7942_v53 }
 0x47b   : > { %v3876_v39 = vadd.f32 %v7962_v56, %v7944_v63 }
 0x47d   : > { %v7964_v54 = vpop.permute.xlu1 %4134 }
 0x47e   : > { %v7966_v20 = vpop.permute.xlu0 %4132  ;;  %v4171_v5 = vadd.f32 %v7964_v54, %v3877_v37  ;;  %v8311_v37 = vld [vmem:[#allocation26_spill] sm:$0xff] }
 0x47f   : > { %v4170_v61 = vadd.f32 %v7966_v20, %v3876_v39 }
 0x481   : > { %v7968_v25 = vpop.permute.xlu1 %3844 }
 0x482   : > { %v7970_v17 = vpop.permute.xlu0 %3842  ;;  %v3879_v53 = vadd.f32 %v7968_v25, %v7948_v12 }
 0x483   : > { %v3878_v63 = vadd.f32 %v7970_v17, %v7950_v16 }
 0x485   : > { %v7972_v33 = vpop.permute.xlu1 %4138 }
 0x486   : > { %v7974_v41 = vpop.permute.xlu0 %4136  ;;  %v4173_v54 = vadd.f32 %v7972_v33, %v3879_v53 }
 0x487   : > { %v4172_v20 = vadd.f32 %v7974_v41, %v3878_v63  ;;  %v8315_v63 = vld [vmem:[#allocation28_spill] sm:$0xff] }
 0x489   : > { %v7976_v59 = vpop.permute.xlu1 %3848 }
 0x48a   : > { %v7980_v34 = vpop.permute.xlu0 %3846  ;;  %v3881_v12 = vadd.f32 %v7976_v59, %v7954_v52 }
 0x48b   : > { %v3880_v16 = vadd.f32 %v7980_v34, %v7956_v1 }
 0x48d   : > { %v7986_v32 = vpop.permute.xlu1 %4142 }
 0x48e   : > { %v7988_v46 = vpop.permute.xlu0 %4140  ;;  %v4175_v33 = vadd.f32 %v7986_v32, %v3881_v12 }
 0x48f   : > { %v4174_v41 = vadd.f32 %v7988_v46, %v3880_v16 }
 0x491   : > { %v4409_v35 = vpop.permute.xlu1 %4408 }
 0x492   : > { %v4455_v58 = vadd.f32 %v4409_v35, %v4161_v40  ;;  %v4407_v47 = vpop.permute.xlu0 %4406  ;;  %v3873_v40 = vadd.f32 %v3833_v11, %v7914_v21  ;;  %v4169_v21 = vadd.f32 %v4131_v22, %v3875_v30  ;;  %v8308_v30 = vld [vmem:[#allocation42_spill] sm:$0xff] }
 0x493   : > { %v4454_v50 = vadd.f32 %v4407_v47, %v4160_v36 }
 0x494   : > { %6304 = vtanh.f32 %v4455_v58  ;;  %v4167_v14 = vadd.f32 %v4127_v4, %v3873_v40  ;;  %v8305_v40 = vld [vmem:[#allocation25_spill] sm:$0xff] }
 0x495   : > { %6306 = vtanh.f32 %v4454_v50  ;;  %v4413_v13 = vpop.permute.xlu1 %4412 }
 0x496   : > { %v4457_v8 = vadd.f32 %v4413_v13, %v4163_v0  ;;  %v4411_v24 = vpop.permute.xlu0 %4410 }
 0x497   : > { %v4456_v49 = vadd.f32 %v4411_v24, %v4162_v62 }
 0x498   : > { %6308 = vtanh.f32 %v4457_v8 }
 0x499   : > { %6310 = vtanh.f32 %v4456_v49  ;;  %v4417_v35 = vpop.permute.xlu1 %4416  ;;  %v4487_v49 = vsub.f32 1.0, %v7565_v28 }
 0x49a   : > { %v4459_v36 = vadd.f32 %v4417_v35, %v4165_v15  ;;  %v4415_v47 = vpop.permute.xlu0 %4414  ;;  %v8304_v15 = vld [vmem:[#allocation40_spill] sm:$0xff] }
 0x49b   : > { %v4458_v6 = vadd.f32 %v4415_v47, %v4164_v57  ;;  %v4486_v57 = vsub.f32 1.0, %v8304_v15 }
 0x49c   : > { %6312 = vtanh.f32 %v4459_v36  ;;  %v4503_v36 = vmul.f32 %v4487_v49, %v8305_v40  ;;  %v8323_v49 = vld [vmem:[#allocation49_spill] sm:$0xff] }
 0x49d   : > { %6314 = vtanh.f32 %v4458_v6  ;;  %v4421_v51 = vpop.permute.xlu1 %4420  ;;  %v8306_v6 = vld [vmem:[#allocation41_spill] sm:$0xff] }
 0x49e   : > { %v6305_v2 = vpop.eup %6304  ;;  %v4461_v23 = vadd.f32 %v4421_v51, %v4167_v14  ;;  %v4419_v7 = vpop.permute.xlu0 %4418  ;;  %v4489_v14 = vsub.f32 1.0, %v8306_v6 }
 0x49f   : > { %v6307_v29 = vpop.eup %6306  ;;  %v4460_v45 = vadd.f32 %v4419_v7, %v4166_v19  ;;  %4536 = vrot.lane.b32.xlu1 %v6305_v2, %s6603_s30  ;;  %v8307_v19 = vld [vmem:[#allocation24_spill] sm:$0xff] }
 0x4a0   : > { %6316 = vtanh.f32 %v4461_v23  ;;  %4534 = vrot.lane.b32.xlu0 %v6307_v29, %s6603_s30  ;;  %v4502_v51 = vmul.f32 %v4486_v57, %v8307_v19  ;;  %v4488_v23 = vsub.f32 1.0, %v8308_v30  ;;  %v8324_v57 = vld [vmem:[#allocation32_spill] sm:$0xff]  ;;  %v8327_v19 = vld [vmem:[#allocation35_spill] sm:$0xff] }
 0x4a1   : > { %6318 = vtanh.f32 %v4460_v45  ;;  %v4425_v10 = vpop.permute.xlu1 %4424 }
 0x4a2   : > { %v6309_v43 = vpop.eup %6308  ;;  %v4463_v11 = vadd.f32 %v4425_v10, %v4169_v21  ;;  %v4423_v42 = vpop.permute.xlu0 %4422  ;;  %v8310_v10 = vld [vmem:[#allocation43_spill] sm:$0xff] }
 0x4a3   : > { %v6311_v4 = vpop.eup %6310  ;;  %v4462_v31 = vadd.f32 %v4423_v42, %v4168_v27  ;;  %4540 = vrot.lane.b32.xlu1 %v6309_v43, %s6603_s30  ;;  %v4491_v43 = vsub.f32 1.0, %v8310_v10 }
 0x4a4   : > { %6320 = vtanh.f32 %v4463_v11  ;;  %4538 = vrot.lane.b32.xlu0 %v6311_v4, %s6603_s30  ;;  %v4504_v11 = vmul.f32 %v4488_v23, %v8311_v37  ;;  %v8312_v4 = vld [vmem:[#allocation44_spill] sm:$0xff]  ;;  %v8328_v23 = vld [vmem:[#allocation51_spill] sm:$0xff]  ;;  %v8331_v37 = vld [vmem:[#allocation37_spill] sm:$0xff] }
 0x4a5   : > { %6322 = vtanh.f32 %v4462_v31  ;;  %v4429_v22 = vpop.permute.xlu1 %4428  ;;  %v4490_v39 = vsub.f32 1.0, %v8312_v4 }
 0x4a6   : > { %v6313_v26 = vpop.eup %6312  ;;  %v4465_v9 = vadd.f32 %v4429_v22, %v4171_v5  ;;  %v4427_v60 = vpop.permute.xlu0 %4426  ;;  %v8313_v22 = vld [vmem:[#allocation29_spill] sm:$0xff] }
 0x4a7   : > { %v6315_v18 = vpop.eup %6314  ;;  %v4464_v56 = vadd.f32 %v4427_v60, %v4170_v61  ;;  %4544 = vrot.lane.b32.xlu1 %v6313_v26, %s6603_s30  ;;  %v4507_v26 = vmul.f32 %v4491_v43, %v8313_v22  ;;  %v8314_v60 = vld [vmem:[#allocation45_spill] sm:$0xff] }
 0x4a8   : > { %6324 = vtanh.f32 %v4465_v9  ;;  %4542 = vrot.lane.b32.xlu0 %v6315_v18, %s6603_s30  ;;  %v4493_v18 = vsub.f32 1.0, %v8314_v60 }
 0x4a9   : > { %6326 = vtanh.f32 %v4464_v56  ;;  %v4433_v44 = vpop.permute.xlu1 %4432  ;;  %v4506_v56 = vmul.f32 %v4490_v39, %v8315_v63  ;;  %v8332_v39 = vld [vmem:[#allocation53_spill] sm:$0xff]  ;;  %v8335_v63 = vld [vmem:[#allocation39_spill] sm:$0xff] }
 0x4aa   : > { %v6317_v58 = vpop.eup %6316  ;;  %v4467_v25 = vadd.f32 %v4433_v44, %v4173_v54  ;;  %v4431_v50 = vpop.permute.xlu0 %4430 }
 0x4ab   : > { %v6319_v0 = vpop.eup %6318  ;;  %v4466_v17 = vadd.f32 %v4431_v50, %v4172_v20  ;;  %4548 = vrot.lane.b32.xlu1 %v6317_v58, %s6603_s30  ;;  %v8316_v20 = vld [vmem:[#allocation46_spill] sm:$0xff]  ;;  %v8317_v50 = vld [vmem:[#allocation31_spill] sm:$0xff] }
 0x4ac   : > { %6328 = vtanh.f32 %v4467_v25  ;;  %4546 = vrot.lane.b32.xlu0 %v6319_v0, %s6603_s30  ;;  %v4492_v44 = vsub.f32 1.0, %v8316_v20  ;;  %v4509_v0 = vmul.f32 %v4493_v18, %v8317_v50 }
 0x4ad   : > { %6330 = vtanh.f32 %v4466_v17  ;;  %v4437_v62 = vpop.permute.xlu1 %4436 }
 0x4ae   : > { %v6321_v13 = vpop.eup %6320  ;;  %v4469_v52 = vadd.f32 %v4437_v62, %v4175_v33  ;;  %v4435_v59 = vpop.permute.xlu0 %4434  ;;  %v8318_v33 = vld [vmem:[#allocation47_spill] sm:$0xff]  ;;  %v8319_v62 = vld [vmem:[#allocation30_spill] sm:$0xff] }
 0x4af   : > { %v6323_v38 = vpop.eup %6322  ;;  %v4468_v8 = vadd.f32 %v4435_v59, %v4174_v41  ;;  %4552 = vrot.lane.b32.xlu1 %v6321_v13, %s6603_s30  ;;  %v4495_v41 = vsub.f32 1.0, %v8318_v33  ;;  %v4508_v13 = vmul.f32 %v4492_v44, %v8319_v62  ;;  %v8320_v59 = vld [vmem:[#allocation48_spill] sm:$0xff]  ;;  %v8337_v44 = vld [vmem:[#allocation38_spill] sm:$0xff] }
 0x4b0   : > { %6332 = vtanh.f32 %v4469_v52  ;;  %4550 = vrot.lane.b32.xlu0 %v6323_v38, %s6603_s30  ;;  %v4494_v38 = vsub.f32 1.0, %v8320_v59 }
 0x4b1   : > { %6334 = vtanh.f32 %v4468_v8 }
 0x4b2   : > { %v6325_v1 = vpop.eup %6324 }
 0x4b3   : > { %v6327_v32 = vpop.eup %6326  ;;  %4556 = vrot.lane.b32.xlu1 %v6325_v1, %s6603_s30 }
 0x4b4   : > { %4554 = vrot.lane.b32.xlu0 %v6327_v32, %s6603_s30 }
 0x4b6   : > { %v6329_v46 = vpop.eup %6328 }
 0x4b7   : > { %v6331_v34 = vpop.eup %6330  ;;  %4560 = vrot.lane.b32.xlu1 %v6329_v46, %s6603_s30  ;;  %v8321_v46 = vld [vmem:[#allocation33_spill] sm:$0xff] }
 0x4b8   : > { %4558 = vrot.lane.b32.xlu0 %v6331_v34, %s6603_s30  ;;  %v4511_v34 = vmul.f32 %v4495_v41, %v8321_v46 }
 0x4ba   : > { %v6333_v24 = vpop.eup %6332 }
 0x4bb   : > { %v6335_v48 = vpop.eup %6334  ;;  %4564 = vrot.lane.b32.xlu1 %v6333_v24, %s6603_s30 }
 0x4bc   : > { %4562 = vrot.lane.b32.xlu0 %v6335_v48, %s6603_s30 }
 0x511   : > { %v4537_v35 = vpop.permute.xlu1 %4536 }
 0x512   : > { %v4583_v47 = vmul.f32 %v7565_v28, %v4537_v35  ;;  %v4535_v3 = vpop.permute.xlu0 %4534  ;;  %v8309_v28 = vld [vmem:[#allocation27_spill] sm:$0xff]  ;;  %v4510_v35 = vmul.f32 %v4494_v38, %v8324_v57 }
 0x513   : > { %v4582_v2 = vmul.f32 %v8304_v15, %v4535_v3  ;;  %v4505_v45 = vmul.f32 %v4489_v14, %v8309_v28  ;;  %v4497_v15 = vsub.f32 1.0, %v8323_v49 }
 0x514   : > { %v4599_v7 = vadd.f32 %v4583_v47, %v4503_v36  ;;  %v8325_v36 = vld [vmem:[#allocation50_spill] sm:$0xff] }
 0x515   : > { %v4598_v29 = vadd.f32 %v4582_v2, %v4502_v51  ;;  %v4541_v55 = vpop.permute.xlu1 %4540  ;;  %v4496_v47 = vsub.f32 1.0, %v8325_v36  ;;  %v4513_v51 = vmul.f32 %v4497_v15, %v8327_v19 }
 0x516   : > { %4615 = vst.msk [vmem:[%s8042_s14 + $0x8] sm:$0xff] %vm373_vm0, %v4599_v7  ;;  %v4585_v21 = vmul.f32 %v8306_v6, %v4541_v55  ;;  %v4539_v27 = vpop.permute.xlu0 %4538  ;;  %v4499_v7 = vsub.f32 1.0, %v8328_v23 }
 0x517   : > { %4614 = vst.msk [vmem:[%s8042_s14] sm:$0xff] %vm373_vm0, %v4598_v29  ;;  %v4584_v42 = vmul.f32 %v8308_v30, %v4539_v27  ;;  %v8329_v29 = vld [vmem:[#allocation34_spill] sm:$0xff] }
 0x518   : > { %v4601_v31 = vadd.f32 %v4585_v21, %v4505_v45  ;;  %v4512_v55 = vmul.f32 %v4496_v47, %v8329_v29  ;;  %v8330_v45 = vld [vmem:[#allocation52_spill] sm:$0xff] }
 0x519   : > { %v4600_v5 = vadd.f32 %v4584_v42, %v4504_v11  ;;  %v4545_v61 = vpop.permute.xlu1 %4544  ;;  %v4498_v21 = vsub.f32 1.0, %v8330_v45  ;;  %v4515_v11 = vmul.f32 %v4499_v7, %v8331_v37 }
 0x51a   : > { %4617 = vst.msk [vmem:[%s8042_s14 + $0x18] sm:$0xff] %vm373_vm0, %v4601_v31  ;;  %v4587_v53 = vmul.f32 %v8310_v10, %v4545_v61  ;;  %v4543_v9 = vpop.permute.xlu0 %4542  ;;  %v4501_v31 = vsub.f32 1.0, %v8332_v39 }
 0x51b   : > { %4616 = vst.msk [vmem:[%s8042_s14 + $0x10] sm:$0xff] %vm373_vm0, %v4600_v5  ;;  %v4586_v54 = vmul.f32 %v8312_v4, %v4543_v9  ;;  %v8333_v5 = vld [vmem:[#allocation36_spill] sm:$0xff] }
 0x51c   : > { %v4603_v58 = vadd.f32 %v4587_v53, %v4507_v26  ;;  %v4514_v61 = vmul.f32 %v4498_v21, %v8333_v5  ;;  %v8334_v26 = vld [vmem:[#allocation54_spill] sm:$0xff] }
 0x51d   : > { %v4602_v12 = vadd.f32 %v4586_v54, %v4506_v56  ;;  %v4549_v25 = vpop.permute.xlu1 %4548  ;;  %v4500_v53 = vsub.f32 1.0, %v8334_v26  ;;  %v4517_v56 = vmul.f32 %v4501_v31, %v8335_v63 }
 0x51e   : > { %4619 = vst.msk [vmem:[%s8042_s14 + $0x28] sm:$0xff] %vm373_vm0, %v4603_v58  ;;  %v4589_v16 = vmul.f32 %v8314_v60, %v4549_v25  ;;  %v4547_v17 = vpop.permute.xlu0 %4546 }
 0x51f   : > { %4618 = vst.msk [vmem:[%s8042_s14 + $0x20] sm:$0xff] %vm373_vm0, %v4602_v12  ;;  %v4588_v52 = vmul.f32 %v8316_v20, %v4547_v17  ;;  %v4516_v58 = vmul.f32 %v4500_v53, %v8337_v44 }
 0x520   : > { %v4605_v8 = vadd.f32 %v4589_v16, %v4509_v0 }
 0x521   : > { %v4604_v1 = vadd.f32 %v4588_v52, %v4508_v13  ;;  %v4553_v32 = vpop.permute.xlu1 %4552 }
 0x522   : > { %4621 = vst.msk [vmem:[%s8042_s14 + $0x38] sm:$0xff] %vm373_vm0, %v4605_v8  ;;  %v4591_v24 = vmul.f32 %v8318_v33, %v4553_v32  ;;  %v4551_v48 = vpop.permute.xlu0 %4550 }
 0x523   : > { %4620 = vst.msk [vmem:[%s8042_s14 + $0x30] sm:$0xff] %vm373_vm0, %v4604_v1  ;;  %v4590_v40 = vmul.f32 %v8320_v59, %v4551_v48 }
 0x524   : > { %v4607_v3 = vadd.f32 %v4591_v24, %v4511_v34 }
 0x525   : > { %v4606_v6 = vadd.f32 %v4590_v40, %v4510_v35  ;;  %v4557_v14 = vpop.permute.xlu1 %4556 }
 0x526   : > { %4623 = vst.msk [vmem:[%s8042_s14 + $0x48] sm:$0xff] %vm373_vm0, %v4607_v3  ;;  %v4593_v2 = vmul.f32 %v8323_v49, %v4557_v14  ;;  %v4555_v30 = vpop.permute.xlu0 %4554 }
 0x527   : > { %4622 = vst.msk [vmem:[%s8042_s14 + $0x40] sm:$0xff] %vm373_vm0, %v4606_v6  ;;  %v4592_v28 = vmul.f32 %v8325_v36, %v4555_v30 }
 0x528   : > { %v4609_v27 = vadd.f32 %v4593_v2, %v4513_v51 }
 0x529   : > { %v4608_v10 = vadd.f32 %v4592_v28, %v4512_v55  ;;  %v4561_v43 = vpop.permute.xlu1 %4560 }
 0x52a   : > { %4625 = vst.msk [vmem:[%s8042_s14 + $0x58] sm:$0xff] %vm373_vm0, %v4609_v27  ;;  %v4595_v42 = vmul.f32 %v8328_v23, %v4561_v43  ;;  %v4559_v4 = vpop.permute.xlu0 %4558 }
 0x52b   : > { %4624 = vst.msk [vmem:[%s8042_s14 + $0x50] sm:$0xff] %vm373_vm0, %v4608_v10  ;;  %v4594_v22 = vmul.f32 %v8330_v45, %v4559_v4 }
 0x52c   : > { %v4611_v9 = vadd.f32 %v4595_v42, %v4515_v11 }
 0x52d   : > { %v4610_v60 = vadd.f32 %v4594_v22, %v4514_v61  ;;  %v4565_v18 = vpop.permute.xlu1 %4564 }
 0x52e   : > { %4627 = vst.msk [vmem:[%s8042_s14 + $0x68] sm:$0xff] %vm373_vm0, %v4611_v9  ;;  %v4597_v54 = vmul.f32 %v8332_v39, %v4565_v18  ;;  %v4563_v20 = vpop.permute.xlu0 %4562 }
 0x52f   : > { %4626 = vst.msk [vmem:[%s8042_s14 + $0x60] sm:$0xff] %vm373_vm0, %v4610_v60  ;;  %v4596_v12 = vmul.f32 %v8334_v26, %v4563_v20 }
 0x530   : > { %v4613_v25 = vadd.f32 %v4597_v54, %v4517_v56 }
 0x531   : > { %v4612_v50 = vadd.f32 %v4596_v12, %v4516_v58 }
 0x532   : > { %4629 = vst.msk [vmem:[%s8042_s14 + $0x78] sm:$0xff] %vm373_vm0, %v4613_v25 }
 0x533   : > { %4628 = vst.msk [vmem:[%s8042_s14 + $0x70] sm:$0xff] %vm373_vm0, %v4612_v50 }
 0x534   : > { %6493 = shalt.err (!%p6490_p7)
}
 0x535   : > { %s6494_s21 = scalar_lea.hbm %s8118_s12, 2048  ;;  %s6498_s15 = scalar_lea.hbm %s8339_s2, 8192 }
 0x536   : > { %p6495_p9 = scmp.ne.s32.totalorder %s8118_s12, %s6494_s21  ;;  %p6499_p12 = scmp.lt.u32.totalorder %s8118_s12, %s8339_s2 }
 0x537   : > { %p6500_p2 = scmp.lt.u32.totalorder %s6498_s15, %s6494_s21  ;;  %p6502_p10 = scmp.lt.u32.totalorder %s6494_s21, %s8118_s12 }
 0x538   : > { %p6496_p5 = pnand %p6495_p9, %p8340_p13 }
 0x539   : > { %p6501_p6 = por %p6500_p2, %p6499_p12 }
 0x53a   : > { %p6497_p8 = pneg %p6496_p5 }
 0x53b   : > { %p6503_p0 = por %p6502_p10, %p6501_p6 }
 0x53d   : > { %p6504_p4 = pnand %p6503_p0, %p6497_p8 }
 0x53f   : > { %6507 = shalt.err (!%p6504_p4)
}
 0x540   : > { %s6605_s0 = smov 128   ;;  %s6606_s3 = smov 256  }
 0x541   : > { %s6607_s17 = smov 8  }
 0x542   : > { %6132 = dma.vmem_to_hbm [thread:$0]  (%p8340_p13), %s8120_s24, 2048, %s8118_s12, %s4631_s19, %s6605_s0, %s6606_s3, %s6607_s17  }
 0x543 PF: > { %s8341_s18 = sld [smem:[#allocation19_spill]]  ;;  %s8342_s25 = sld [smem:[#allocation23_spill]] }
 0x544   : > { %p6162_p1 = scmp.ge.s32.totalorder %s6590_s28, 2 }
 0x549   : > { %s4660_s29 = sand.u32 1, %s8341_s18   ;;  %p8343_p11 = scmp.ne.s32.totalorder %s8342_s25, 0 }
 0x54a   : > { %s4661_s9 = scalar_lea.sflag [#allocation6], %s4660_s29 }
 0x54b   : > { %p6152_p3 = pnand %p6162_p1, %p8343_p11 }
 0x54d   : > { %6557 = dma.done.wait (!%p6152_p3), %s4661_s9, 2048  }
 0x54e   : > { %6559 = vsyncadd (!%p6152_p3), %s4661_s9, 4294965248  ;;  %s26_s28 = sadd.s32 1, %s6590_s28   ;;  %s8344_s21 = smov %s6566_s22 }
 0x54f   : > { %p23_p7 = scmp.ge.s32.totalorder %s26_s28, 6   ;;  %s8345_s22 = smov %s6570_s23 }
 0x550   : > { %s8346_s23 = smov %s6885_s13  ;;  %s8347_s24 = smov %s6582_s26 }
 0x551   : > { %s8348_s25 = smov %s6586_s27  ;;  %s8349_s26 = smov %s8352_s11 }
 0x552   : > { %s8350_s27 = smov %s8356_s5  ;;  %25 = sbr.rel (!%p23_p7) target bundleno = 16 (0x10), region = 136 }
 0x559   :  { %4666 = vsyncpa [#allocation5], 1 }
 0x55a   :  { %4668 = vsyncpa [#allocation5 + $0x1], 1 }
 0x55b   :  { %4669 = vsyncpa [#allocation8], 1 }
 0x55c   :  { %4671 = vsyncpa [#allocation8 + $0x1], 1 }
 0x55d   :  { %4672 = vsyncpa [#allocation11], 1 }
 0x55e   :  { %4673 = vsyncpa [#allocation6], 1 }
 0x55f   :  { %4675 = vsyncpa [#allocation6 + $0x1], 1 }

</bundles_post_ra>
